<compile_context>
chip_gen: v5e
topology: v5e:2x2
jax: 0.10.0
libtpu: 0.0.40
codegen_flags: <defaults>
</compile_context>

<pallas_src>
import numpy as np

import jax
import jax.numpy as jnp
from jax import lax
from jax.experimental import pallas as pl
from jax.experimental.pallas import tpu as pltpu


_WEIGHT_ORDER = ("w1c", "b1p", "w2c", "b2", "w3q", "b3",
                 "l1w", "l1b", "f1w", "f1b", "f2w", "f2b", "hw", "hb")


# ---------------------------------------------------------------------------
# Static gather table for the wrapper-side conv1 input repack.
#
# c1 row layout (per sample, 512 rows):  row = s*128 + (pa*2+pb)*32 + ph2*6 + pw2
#   with conv1 output row  oh = 4*(2*ph2+pa) + s   (0..39)
#   and  conv2 column group g = 2*pw2 + pb          (0..11),
#   rows with (ph2*6+pw2) >= 30 are pads.
# For each row and each conv1 term t = 2*d + k the kernel needs the packed input row
# (oh+d)*12 + (g+k) of x2[b, hh*12+gg, p*32+r*4+c] = image[b, 2*hh+p, 8*gg+r, c].
# ---------------------------------------------------------------------------
def _build_gather_index():
    idx = np.zeros((512, 4), np.int32)
    for row in range(512):
        s, r = divmod(row, 128)
        blk, rr = divmod(r, 32)
        pa, pb = divmod(blk, 2)
        if rr >= 30:                       # pad row: any finite data is fine
            continue
        ph2, pw2 = divmod(rr, 6)
        ph = 2 * ph2 + pa                  # pool1 row 0..9
        g = 2 * pw2 + pb                   # conv2 column group 0..11
        oh = 4 * ph + s                    # conv1 output row 0..39
        for d in range(2):
            for k in range(2):
                idx[row, 2 * d + k] = min((oh + d) * 12 + (g + k), 503)
    return idx


_GATHER_IDX = _build_gather_index()


# ---------------------------------------------------------------------------
# The fused kernel (one grid step = one block of BB samples)
# ---------------------------------------------------------------------------
def _actor_fused_kernel(x_ref, w1c_ref, b1p_ref, w2c_ref, b2_ref, w3q_ref, b3_ref,
                        l1w_ref, l1b_ref, f1w_ref, f1b_ref, f2w_ref, f2b_ref,
                        hw_ref, hb_ref, out_ref, p1_scr, f_scr):
    f32 = jnp.float32
    bb = x_ref.shape[0]
    two_a = out_ref.shape[2]
    a_sz = two_a // 2

    def dot(a, b):
        return jnp.dot(a, b, preferred_element_type=f32)

    for bi in range(bb):
        # ---- conv1 (4x4/s2, K=256 lane-folded) + LeakyReLU, fused with
        # ---- conv2 (2x2/s2, both column phases in lanes) + maxpool1 (2x2) ----
        for q in range(2):                       # 64-row chunks of the 128 block rows
            r0 = 64 * q

            def c1(s, _r0=r0, _bi=bi):
                acc = dot(x_ref[_bi, pl.ds(128 * s + _r0, 64), :],
                          w1c_ref[...]) + b1p_ref[...]
                return jnp.where(acc >= 0.0, acc, 0.01 * acc)      # LeakyReLU(0.01)

            # conv2 row-candidate partials: rows s=2*i2+a share the same in-block index
            v0 = dot(c1(0), w2c_ref[0]) + dot(c1(1), w2c_ref[1])   # i2 = 0
            v1 = dot(c1(2), w2c_ref[0]) + dot(c1(3), w2c_ref[1])   # i2 = 1
            w = jnp.maximum(v0, v1)                                # max over pool rows
            # max over pool cols (the two j2 lane halves); bias after the max
            p1_scr[pl.ds(r0, 64), :] = (jnp.maximum(w[:, 0:64], w[:, 64:128])
                                        + b2_ref[...])

        # ---- conv3 (2x2/s1, 2x2 window lane-folded to K=256) + maxpool2 (2x2) ----
        # parity-split pool1 layout => every stride-2 access is a contiguous slice
        svals = {}
        for al in range(3):
            for be in range(3):
                start = (32 * ((al % 2) * 2 + (be % 2))
                         + (al // 2) * 6 + (be // 2))
                svals[(al, be)] = p1_scr[pl.ds(start, 24), :]       # (24, 64)

        pool2 = None
        for u in range(2):
            for v in range(2):
                lhs = jnp.concatenate([svals[(u, v)], svals[(u, v + 1)],
                                       svals[(u + 1, v)], svals[(u + 1, v + 1)]],
                                      axis=1)                       # (24, 256)
                cand = dot(lhs, w3q_ref[...])                       # (24, 64)
                pool2 = cand if pool2 is None else jnp.maximum(pool2, cand)
        pool2 = pool2 + b3_ref[...]                                 # bias after max

        # ---- flatten this sample's 20 valid (qh, qw) rows lane-major into f_scr ----
        for qh in range(4):
            for qw in range(5):
                row = qh * 6 + qw
                col = (qh * 5 + qw) * 64
                f_scr[pl.ds(bi, 1), pl.ds(col, 64)] = pool2[row:row + 1, :]

    # ---- batched MLP tail: line_1 + LeakyReLU, fc1 + ReLU, fc2 + ReLU, fused heads ----
    feats = f_scr[...]                                              # (BB, 1280)
    z = dot(feats, l1w_ref[...]) + l1b_ref[...]
    z = jnp.where(z >= 0.0, z, 0.01 * z)
    h = jnp.maximum(dot(z, f1w_ref[...]) + f1b_ref[...], 0.0)
    h = jnp.maximum(dot(h, f2w_ref[...]) + f2b_ref[...], 0.0)
    head = dot(h, hw_ref[...]) + hb_ref[...]                        # (BB, 2A) = mu | log_std
    col = lax.broadcasted_iota(jnp.int32, head.shape, 1)
    head = jnp.where(col >= a_sz, jnp.clip(head, -20.0, 2.0), head)
    out_ref[0] = head.astype(out_ref.dtype)


# ---------------------------------------------------------------------------
# Wrapper
# ---------------------------------------------------------------------------
def _const_spec(shape):
    nd = len(shape)
    return pl.BlockSpec(shape, lambda i, _nd=nd: (0,) * _nd)


def _pick_block(batch):
    # keep the grid length >= 2 when possible (v7x has 2 TensorCores), cap BB at 8
    if batch >= 16:
        return 8
    if batch >= 2:
        return max(1, batch // 2)
    return 1


@jax.jit
def actor_forward(kparams, state_nchw):
    """state_nchw: (B, 4, 84, 96) float32 -> (mu, log_std), each (B, action_size)."""
    if state_nchw.ndim == 3:                       # mirror CNNBackbone's unsqueeze(0)
        state_nchw = state_nchw[None]
    B = state_nchw.shape[0]
    A = kparams["hw"].shape[1] // 2

    bb = _pick_block(B)
    nblk = pl.cdiv(B, bb)
    b_pad = nblk * bb

    # NCHW -> packed x2[b, hh*12+gg, p*32+r*4+c] = image[b, c, 2*hh+p, 8*gg+r]
    x = jnp.transpose(state_nchw, (0, 2, 3, 1)).astype(jnp.float32)   # (B, 84, 96, 4)
    x = x.reshape(B, 42, 2, 12, 8, 4)                                 # [b, hh, p, gg, r, c]
    x = jnp.transpose(x, (0, 1, 3, 2, 4, 5))                          # [b, hh, gg, p, r, c]
    x2 = x.reshape(B, 504, 64)
    # lane-fold the 4 conv1 terms (K=256) and bake in the parity-split row permutation
    xc = x2[:, _GATHER_IDX, :].reshape(B, 512, 256)
    if b_pad > B:
        xc = jnp.concatenate(
            [xc, jnp.zeros((b_pad - B, 512, 256), jnp.float32)], axis=0)

    args = [kparams[k] for k in _WEIGHT_ORDER]
    in_specs = [pl.BlockSpec((bb, 512, 256), lambda i: (i, 0, 0))]
    in_specs += [_const_spec(tuple(a.shape)) for a in args]
    out_spec = pl.BlockSpec((1, bb, 2 * A), lambda i: (i, 0, 0))

    out = pl.pallas_call(
        _actor_fused_kernel,
        out_shape=jax.ShapeDtypeStruct((nblk, bb, 2 * A), jnp.float32),
        grid=(nblk,),
        in_specs=in_specs,
        out_specs=out_spec,
        scratch_shapes=[pltpu.VMEM((128, 64), jnp.float32),    # pool1 (parity-split)
                        pltpu.VMEM((bb, 1280), jnp.float32)],  # flattened features
        compiler_params=pltpu.CompilerParams(
            dimension_semantics=("parallel",),
            vmem_limit_bytes=32 * 1024 * 1024),
    )(xc, *args)

    out = out.reshape(b_pad, 2 * A)[:B]
    return out[:, :A], out[:, A:]


# ---------------------------------------------------------------------------
# Synthetic torch-layout parameters and their kernel-layout repacking
# ---------------------------------------------------------------------------
def init_torch_params(key, action_size=3, hidden_size=32, init_w=3e-3):
    ks = jax.random.split(key, 16)

    def kaiming_out(k, shape, fan_out):
        return (jnp.sqrt(2.0 / fan_out) * jax.random.normal(k, shape)).astype(jnp.float32)

    def unif(k, shape, bound):
        return jax.random.uniform(k, shape, minval=-bound, maxval=bound, dtype=jnp.float32)

    p = {}
    p["conv1_w"] = kaiming_out(ks[0], (32, 4, 4, 4), 32 * 16)
    p["conv1_b"] = unif(ks[1], (32,), 1.0 / np.sqrt(4 * 16))
    p["conv2_w"] = kaiming_out(ks[2], (64, 32, 2, 2), 64 * 4)
    p["conv2_b"] = unif(ks[3], (64,), 1.0 / np.sqrt(32 * 4))
    p["conv3_w"] = kaiming_out(ks[4], (64, 64, 2, 2), 64 * 4)
    p["conv3_b"] = unif(ks[5], (64,), 1.0 / np.sqrt(64 * 4))
    p["line1_w"] = kaiming_out(ks[6], (256, 1280), 256)
    p["line1_b"] = unif(ks[7], (256,), 1.0 / np.sqrt(1280))
    p["fc1_w"] = kaiming_out(ks[8], (hidden_size, 256), hidden_size)
    p["fc1_b"] = unif(ks[9], (hidden_size,), 1.0 / np.sqrt(256))
    p["fc2_w"] = kaiming_out(ks[10], (hidden_size, hidden_size), hidden_size)
    p["fc2_b"] = unif(ks[11], (hidden_size,), 1.0 / np.sqrt(hidden_size))
    p["mu_w"] = unif(ks[12], (action_size, hidden_size), init_w)
    p["mu_b"] = unif(ks[13], (action_size,), 1.0 / np.sqrt(hidden_size))
    p["ls_w"] = unif(ks[14], (action_size, hidden_size), init_w)
    p["ls_b"] = unif(ks[15], (action_size,), 1.0 / np.sqrt(hidden_size))
    return p


def build_kernel_params(tp):
    """Repack torch-layout parameters into the layouts the fused kernel consumes."""
    w1t = np.asarray(tp["conv1_w"], np.float32)     # (32, 4, 4, 4)  [co, ci, kh, kw]
    w2t = np.asarray(tp["conv2_w"], np.float32)     # (64, 32, 2, 2)
    w3t = np.asarray(tp["conv3_w"], np.float32)     # (64, 64, 2, 2)
    l1t = np.asarray(tp["line1_w"], np.float32)     # (256, 1280) NCHW-flatten columns

    # conv1, lane-folded K=256: rows t*64 + p*32 + r*4 + c (t = 2*d + k), cols m*32 + co
    # kw = 8*k + r - 2*m, kh = 2*d + p
    w1c = np.zeros((256, 128), np.float32)
    for d in range(2):
        for k in range(2):
            t = 2 * d + k
            for p in range(2):
                for r in range(8):
                    for m in range(4):
                        kw = 8 * k + r - 2 * m
                        if 0 <= kw <= 3:
                            rr = t * 64 + p * 32 + r * 4
                            w1c[rr:rr + 4, m * 32:(m + 1) * 32] = w1t[:, :, 2 * d + p, kw].T
    b1p = np.tile(np.asarray(tp["conv1_b"], np.float32), 4).reshape(1, 128)

    # conv2: per kernel row a, both column phases j2 in lanes; rows m*32 + c1, m = 2*j2 + b
    w2c = np.zeros((2, 128, 128), np.float32)
    for a in range(2):
        for j2 in range(2):
            for b in range(2):
                m = 2 * j2 + b
                w2c[a, m * 32:(m + 1) * 32, j2 * 64:(j2 + 1) * 64] = w2t[:, :, a, b].T
    b2 = np.asarray(tp["conv2_b"], np.float32).reshape(1, 64)

    # conv3: 2x2 window lane-folded into K=256; rows (d*2+e)*64 + c2
    w3q = np.zeros((256, 64), np.float32)
    for d in range(2):
        for e in range(2):
            w3q[(d * 2 + e) * 64:(d * 2 + e + 1) * 64, :] = w3t[:, :, d, e].T
    b3 = np.asarray(tp["conv3_b"], np.float32).reshape(1, 64)

    # line_1: kernel feature order (qh, qw, c3)  <-  torch NCHW flatten  c3*20 + qh*5 + qw
    src = np.zeros(1280, np.int64)
    f = 0
    for qh in range(4):
        for qw in range(5):
            for c3 in range(64):
                src[f] = c3 * 20 + qh * 5 + qw
                f += 1
    l1w = np.ascontiguousarray(l1t[:, src].T)                       # (1280, 256)
    l1b = np.asarray(tp["line1_b"], np.float32).reshape(1, 256)

    # fused mu|log_std head
    hw = np.concatenate([np.asarray(tp["mu_w"], np.float32).T,
                         np.asarray(tp["ls_w"], np.float32).T], axis=1)   # (32, 2A)
    hb = np.concatenate([np.asarray(tp["mu_b"], np.float32),
                         np.asarray(tp["ls_b"], np.float32)]).reshape(1, -1)

    kp = {"w1c": w1c, "b1p": b1p, "w2c": w2c, "b2": b2, "w3q": w3q, "b3": b3,
          "l1w": l1w, "l1b": l1b,
          "f1w": np.asarray(tp["fc1_w"], np.float32).T,
          "f1b": np.asarray(tp["fc1_b"], np.float32).reshape(1, -1),
          "f2w": np.asarray(tp["fc2_w"], np.float32).T,
          "f2b": np.asarray(tp["fc2_b"], np.float32).reshape(1, -1),
          "hw": hw, "hb": hb}
    return {k: jnp.asarray(v, jnp.float32) for k, v in kp.items()}


# ---------------------------------------------------------------------------
# Pure-JAX reference of the PyTorch forward (for the numeric self-check)
# ---------------------------------------------------------------------------
def reference_forward(tp, state):
    dn = ("NCHW", "OIHW", "NCHW")
    hp = lax.Precision.HIGHEST
    x = state.astype(jnp.float32)
    x = lax.conv_general_dilated(x, tp["conv1_w"], (2, 2), "VALID",
                                 dimension_numbers=dn, precision=hp)
    x = x + tp["conv1_b"][None, :, None, None]
    x = jnp.where(x >= 0, x, 0.01 * x)
    x = lax.conv_general_dilated(x, tp["conv2_w"], (2, 2), "VALID",
                                 dimension_numbers=dn, precision=hp)
    x = x + tp["conv2_b"][None, :, None, None]
    x = lax.reduce_window(x, -jnp.inf, lax.max, (1, 1, 2, 2), (1, 1, 2, 2), "VALID")
    x = lax.conv_general_dilated(x, tp["conv3_w"], (1, 1), "VALID",
                                 dimension_numbers=dn, precision=hp)
    x = x + tp["conv3_b"][None, :, None, None]
    x = lax.reduce_window(x, -jnp.inf, lax.max, (1, 1, 2, 2), (1, 1, 2, 2), "VALID")
    x = x.reshape(x.shape[0], -1)                                   # torch Flatten (NCHW)
    x = jnp.dot(x, tp["line1_w"].T, precision=hp) + tp["line1_b"]
    x = jnp.where(x >= 0, x, 0.01 * x)
    x = jnp.maximum(jnp.dot(x, tp["fc1_w"].T, precision=hp) + tp["fc1_b"], 0.0)
    x = jnp.maximum(jnp.dot(x, tp["fc2_w"].T, precision=hp) + tp["fc2_b"], 0.0)
    mu = jnp.dot(x, tp["mu_w"].T, precision=hp) + tp["mu_b"]
    ls = jnp.clip(jnp.dot(x, tp["ls_w"].T, precision=hp) + tp["ls_b"], -20.0, 2.0)
    return mu, ls


if __name__ == "__main__":
    key = jax.random.PRNGKey(0)
    pkey, xkey = jax.random.split(key)
    torch_params = init_torch_params(pkey, action_size=3, hidden_size=32)
    kparams = build_kernel_params(torch_params)

    # Input shape fixed by CNNBackbone's input_dim=(4, 84, 96); batch=2.
    state = jax.random.normal(xkey, (2, 4, 84, 96), dtype=jnp.float32)

    mu, log_std = actor_forward(kparams, state)
    jax.block_until_ready(mu)
    jax.block_until_ready(log_std)

    assert mu.shape == (2, 3) and log_std.shape == (2, 3)
    assert bool(jnp.all(log_std >= -20.0)) and bool(jnp.all(log_std <= 2.0))

    # Numerical self-check against the pure-JAX/XLA reference of the PyTorch forward.
    mu_ref, ls_ref = jax.jit(reference_forward)(torch_params, state)
    ok = (bool(jnp.allclose(mu, mu_ref, atol=1e-2, rtol=1e-2)) and
          bool(jnp.allclose(log_std, ls_ref, atol=1e-2, rtol=1e-2)))
    if not ok:
        raise AssertionError(
            "Pallas kernel mismatch vs reference: "
            f"max|dmu|={float(jnp.max(jnp.abs(mu - mu_ref))):.3e}, "
            f"max|dlog_std|={float(jnp.max(jnp.abs(log_std - ls_ref))):.3e}")

    # TODO(synk): Actor.get_action (Normal(0,1) sampling, tanh, action offsets, .cpu())
    # is host-side post-processing outside forward() and is intentionally not a kernel.
    print("KERNEL_OK")
</pallas_src>

<mosaic_0001>
module attributes {stable_mosaic.version = 11 : i64} {
  func.func @_actor_fused_kernel(%arg0: i32, %arg1: memref<1x512x256xf32, #tpu.memory_space<vmem>>, %arg2: memref<256x128xf32, #tpu.memory_space<vmem>>, %arg3: memref<1x128xf32, #tpu.memory_space<vmem>>, %arg4: memref<2x128x128xf32, #tpu.memory_space<vmem>>, %arg5: memref<1x64xf32, #tpu.memory_space<vmem>>, %arg6: memref<256x64xf32, #tpu.memory_space<vmem>>, %arg7: memref<1x64xf32, #tpu.memory_space<vmem>>, %arg8: memref<1280x256xf32, #tpu.memory_space<vmem>>, %arg9: memref<1x256xf32, #tpu.memory_space<vmem>>, %arg10: memref<256x32xf32, #tpu.memory_space<vmem>>, %arg11: memref<1x32xf32, #tpu.memory_space<vmem>>, %arg12: memref<32x32xf32, #tpu.memory_space<vmem>>, %arg13: memref<1x32xf32, #tpu.memory_space<vmem>>, %arg14: memref<32x6xf32, #tpu.memory_space<vmem>>, %arg15: memref<1x6xf32, #tpu.memory_space<vmem>>, %arg16: memref<1x1x6xf32, #tpu.memory_space<vmem>>, %arg17: memref<128x64xf32, #tpu.memory_space<vmem>>, %arg18: memref<1x1280xf32, #tpu.memory_space<vmem>>) attributes {dimension_semantics = [#tpu.dimension_semantics<parallel>], iteration_bounds = array<i64: 2>, scalar_prefetch = 0 : i64, scratch_operands = 2 : i64, tpu.core_type = #tpu.core_type<tc>, window_params = [{transform_indices = @transform_0, window_bounds = array<i64: 1, 512, 256>}, {pipeline_mode = #tpu.pipeline_mode<synchronous>, transform_indices = @transform_1, window_bounds = array<i64: 256, 128>}, {pipeline_mode = #tpu.pipeline_mode<synchronous>, transform_indices = @transform_2, window_bounds = array<i64: 1, 128>}, {pipeline_mode = #tpu.pipeline_mode<synchronous>, transform_indices = @transform_3, window_bounds = array<i64: 2, 128, 128>}, {pipeline_mode = #tpu.pipeline_mode<synchronous>, transform_indices = @transform_4, window_bounds = array<i64: 1, 64>}, {pipeline_mode = #tpu.pipeline_mode<synchronous>, transform_indices = @transform_5, window_bounds = array<i64: 256, 64>}, {pipeline_mode = #tpu.pipeline_mode<synchronous>, transform_indices = @transform_6, window_bounds = array<i64: 1, 64>}, {pipeline_mode = #tpu.pipeline_mode<synchronous>, transform_indices = @transform_7, window_bounds = array<i64: 1280, 256>}, {pipeline_mode = #tpu.pipeline_mode<synchronous>, transform_indices = @transform_8, window_bounds = array<i64: 1, 256>}, {pipeline_mode = #tpu.pipeline_mode<synchronous>, transform_indices = @transform_9, window_bounds = array<i64: 256, 32>}, {pipeline_mode = #tpu.pipeline_mode<synchronous>, transform_indices = @transform_10, window_bounds = array<i64: 1, 32>}, {pipeline_mode = #tpu.pipeline_mode<synchronous>, transform_indices = @transform_11, window_bounds = array<i64: 32, 32>}, {pipeline_mode = #tpu.pipeline_mode<synchronous>, transform_indices = @transform_12, window_bounds = array<i64: 1, 32>}, {pipeline_mode = #tpu.pipeline_mode<synchronous>, transform_indices = @transform_13, window_bounds = array<i64: 32, 6>}, {pipeline_mode = #tpu.pipeline_mode<synchronous>, transform_indices = @transform_14, window_bounds = array<i64: 1, 6>}, {transform_indices = @transform_15, window_bounds = array<i64: 1, 1, 6>}]} {
    %c0 = arith.constant 0 : index
    %c0_0 = arith.constant 0 : index
    %c0_1 = arith.constant 0 : index
    %0 = vector.load %arg1[%c0, %c0_0, %c0_1] : memref<1x512x256xf32, #tpu.memory_space<vmem>>, vector<1x64x256xf32>
    %1 = vector.shape_cast %0 : vector<1x64x256xf32> to vector<64x256xf32>
    %c0_2 = arith.constant 0 : index
    %c0_3 = arith.constant 0 : index
    %2 = vector.load %arg2[%c0_2, %c0_3] : memref<256x128xf32, #tpu.memory_space<vmem>>, vector<256x128xf32>
    %cst = arith.constant dense<0.000000e+00> : vector<64x128xf32>
    %3 = tpu.matmul %1, %2, %cst {dimension_numbers = #tpu.dot_dimension_numbers<[1], [0], [0], [1], [0, 0, 1, 1], [], []>} : vector<64x256xf32>, vector<256x128xf32>, vector<64x128xf32> -> vector<64x128xf32>
    %c0_4 = arith.constant 0 : index
    %c0_5 = arith.constant 0 : index
    %4 = vector.load %arg3[%c0_4, %c0_5] : memref<1x128xf32, #tpu.memory_space<vmem>>, vector<1x128xf32>
    %5 = vector.broadcast %4 : vector<1x128xf32> to vector<64x128xf32>
    %6 = arith.addf %3, %5 : vector<64x128xf32>
    %cst_6 = arith.constant 0.000000e+00 : f32
    %7 = vector.broadcast %cst_6 : f32 to vector<64x128xf32>
    %8 = arith.cmpf oge, %6, %7 : vector<64x128xf32>
    %cst_7 = arith.constant 0.00999999977 : f32
    %9 = vector.broadcast %cst_7 : f32 to vector<64x128xf32>
    %10 = arith.mulf %9, %6 : vector<64x128xf32>
    %11 = arith.select %8, %6, %10 : vector<64x128xi1>, vector<64x128xf32>
    %c0_8 = arith.constant 0 : index
    %c0_9 = arith.constant 0 : index
    %c0_10 = arith.constant 0 : index
    %12 = vector.load %arg4[%c0_8, %c0_9, %c0_10] : memref<2x128x128xf32, #tpu.memory_space<vmem>>, vector<1x128x128xf32>
    %13 = vector.shape_cast %12 : vector<1x128x128xf32> to vector<128x128xf32>
    %cst_11 = arith.constant dense<0.000000e+00> : vector<64x128xf32>
    %14 = tpu.matmul %11, %13, %cst_11 {dimension_numbers = #tpu.dot_dimension_numbers<[1], [0], [0], [1], [0, 0, 1, 1], [], []>} : vector<64x128xf32>, vector<128x128xf32>, vector<64x128xf32> -> vector<64x128xf32>
    %c0_12 = arith.constant 0 : index
    %c128 = arith.constant 128 : index
    %c0_13 = arith.constant 0 : index
    %15 = vector.load %arg1[%c0_12, %c128, %c0_13] : memref<1x512x256xf32, #tpu.memory_space<vmem>>, vector<1x64x256xf32>
    %16 = vector.shape_cast %15 : vector<1x64x256xf32> to vector<64x256xf32>
    %c0_14 = arith.constant 0 : index
    %c0_15 = arith.constant 0 : index
    %17 = vector.load %arg2[%c0_14, %c0_15] : memref<256x128xf32, #tpu.memory_space<vmem>>, vector<256x128xf32>
    %cst_16 = arith.constant dense<0.000000e+00> : vector<64x128xf32>
    %18 = tpu.matmul %16, %17, %cst_16 {dimension_numbers = #tpu.dot_dimension_numbers<[1], [0], [0], [1], [0, 0, 1, 1], [], []>} : vector<64x256xf32>, vector<256x128xf32>, vector<64x128xf32> -> vector<64x128xf32>
    %c0_17 = arith.constant 0 : index
    %c0_18 = arith.constant 0 : index
    %19 = vector.load %arg3[%c0_17, %c0_18] : memref<1x128xf32, #tpu.memory_space<vmem>>, vector<1x128xf32>
    %20 = vector.broadcast %19 : vector<1x128xf32> to vector<64x128xf32>
    %21 = arith.addf %18, %20 : vector<64x128xf32>
    %cst_19 = arith.constant 0.000000e+00 : f32
    %22 = vector.broadcast %cst_19 : f32 to vector<64x128xf32>
    %23 = arith.cmpf oge, %21, %22 : vector<64x128xf32>
    %cst_20 = arith.constant 0.00999999977 : f32
    %24 = vector.broadcast %cst_20 : f32 to vector<64x128xf32>
    %25 = arith.mulf %24, %21 : vector<64x128xf32>
    %26 = arith.select %23, %21, %25 : vector<64x128xi1>, vector<64x128xf32>
    %c1 = arith.constant 1 : index
    %c0_21 = arith.constant 0 : index
    %c0_22 = arith.constant 0 : index
    %27 = vector.load %arg4[%c1, %c0_21, %c0_22] : memref<2x128x128xf32, #tpu.memory_space<vmem>>, vector<1x128x128xf32>
    %28 = vector.shape_cast %27 : vector<1x128x128xf32> to vector<128x128xf32>
    %cst_23 = arith.constant dense<0.000000e+00> : vector<64x128xf32>
    %29 = tpu.matmul %26, %28, %cst_23 {dimension_numbers = #tpu.dot_dimension_numbers<[1], [0], [0], [1], [0, 0, 1, 1], [], []>} : vector<64x128xf32>, vector<128x128xf32>, vector<64x128xf32> -> vector<64x128xf32>
    %30 = arith.addf %14, %29 : vector<64x128xf32>
    %c0_24 = arith.constant 0 : index
    %c256 = arith.constant 256 : index
    %c0_25 = arith.constant 0 : index
    %31 = vector.load %arg1[%c0_24, %c256, %c0_25] : memref<1x512x256xf32, #tpu.memory_space<vmem>>, vector<1x64x256xf32>
    %32 = vector.shape_cast %31 : vector<1x64x256xf32> to vector<64x256xf32>
    %c0_26 = arith.constant 0 : index
    %c0_27 = arith.constant 0 : index
    %33 = vector.load %arg2[%c0_26, %c0_27] : memref<256x128xf32, #tpu.memory_space<vmem>>, vector<256x128xf32>
    %cst_28 = arith.constant dense<0.000000e+00> : vector<64x128xf32>
    %34 = tpu.matmul %32, %33, %cst_28 {dimension_numbers = #tpu.dot_dimension_numbers<[1], [0], [0], [1], [0, 0, 1, 1], [], []>} : vector<64x256xf32>, vector<256x128xf32>, vector<64x128xf32> -> vector<64x128xf32>
    %c0_29 = arith.constant 0 : index
    %c0_30 = arith.constant 0 : index
    %35 = vector.load %arg3[%c0_29, %c0_30] : memref<1x128xf32, #tpu.memory_space<vmem>>, vector<1x128xf32>
    %36 = vector.broadcast %35 : vector<1x128xf32> to vector<64x128xf32>
    %37 = arith.addf %34, %36 : vector<64x128xf32>
    %cst_31 = arith.constant 0.000000e+00 : f32
    %38 = vector.broadcast %cst_31 : f32 to vector<64x128xf32>
    %39 = arith.cmpf oge, %37, %38 : vector<64x128xf32>
    %cst_32 = arith.constant 0.00999999977 : f32
    %40 = vector.broadcast %cst_32 : f32 to vector<64x128xf32>
    %41 = arith.mulf %40, %37 : vector<64x128xf32>
    %42 = arith.select %39, %37, %41 : vector<64x128xi1>, vector<64x128xf32>
    %c0_33 = arith.constant 0 : index
    %c0_34 = arith.constant 0 : index
    %c0_35 = arith.constant 0 : index
    %43 = vector.load %arg4[%c0_33, %c0_34, %c0_35] : memref<2x128x128xf32, #tpu.memory_space<vmem>>, vector<1x128x128xf32>
    %44 = vector.shape_cast %43 : vector<1x128x128xf32> to vector<128x128xf32>
    %cst_36 = arith.constant dense<0.000000e+00> : vector<64x128xf32>
    %45 = tpu.matmul %42, %44, %cst_36 {dimension_numbers = #tpu.dot_dimension_numbers<[1], [0], [0], [1], [0, 0, 1, 1], [], []>} : vector<64x128xf32>, vector<128x128xf32>, vector<64x128xf32> -> vector<64x128xf32>
    %c0_37 = arith.constant 0 : index
    %c384 = arith.constant 384 : index
    %c0_38 = arith.constant 0 : index
    %46 = vector.load %arg1[%c0_37, %c384, %c0_38] : memref<1x512x256xf32, #tpu.memory_space<vmem>>, vector<1x64x256xf32>
    %47 = vector.shape_cast %46 : vector<1x64x256xf32> to vector<64x256xf32>
    %c0_39 = arith.constant 0 : index
    %c0_40 = arith.constant 0 : index
    %48 = vector.load %arg2[%c0_39, %c0_40] : memref<256x128xf32, #tpu.memory_space<vmem>>, vector<256x128xf32>
    %cst_41 = arith.constant dense<0.000000e+00> : vector<64x128xf32>
    %49 = tpu.matmul %47, %48, %cst_41 {dimension_numbers = #tpu.dot_dimension_numbers<[1], [0], [0], [1], [0, 0, 1, 1], [], []>} : vector<64x256xf32>, vector<256x128xf32>, vector<64x128xf32> -> vector<64x128xf32>
    %c0_42 = arith.constant 0 : index
    %c0_43 = arith.constant 0 : index
    %50 = vector.load %arg3[%c0_42, %c0_43] : memref<1x128xf32, #tpu.memory_space<vmem>>, vector<1x128xf32>
    %51 = vector.broadcast %50 : vector<1x128xf32> to vector<64x128xf32>
    %52 = arith.addf %49, %51 : vector<64x128xf32>
    %cst_44 = arith.constant 0.000000e+00 : f32
    %53 = vector.broadcast %cst_44 : f32 to vector<64x128xf32>
    %54 = arith.cmpf oge, %52, %53 : vector<64x128xf32>
    %cst_45 = arith.constant 0.00999999977 : f32
    %55 = vector.broadcast %cst_45 : f32 to vector<64x128xf32>
    %56 = arith.mulf %55, %52 : vector<64x128xf32>
    %57 = arith.select %54, %52, %56 : vector<64x128xi1>, vector<64x128xf32>
    %c1_46 = arith.constant 1 : index
    %c0_47 = arith.constant 0 : index
    %c0_48 = arith.constant 0 : index
    %58 = vector.load %arg4[%c1_46, %c0_47, %c0_48] : memref<2x128x128xf32, #tpu.memory_space<vmem>>, vector<1x128x128xf32>
    %59 = vector.shape_cast %58 : vector<1x128x128xf32> to vector<128x128xf32>
    %cst_49 = arith.constant dense<0.000000e+00> : vector<64x128xf32>
    %60 = tpu.matmul %57, %59, %cst_49 {dimension_numbers = #tpu.dot_dimension_numbers<[1], [0], [0], [1], [0, 0, 1, 1], [], []>} : vector<64x128xf32>, vector<128x128xf32>, vector<64x128xf32> -> vector<64x128xf32>
    %61 = arith.addf %45, %60 : vector<64x128xf32>
    %62 = arith.maximumf %30, %61 : vector<64x128xf32>
    %63 = vector.extract_strided_slice %62 {offsets = [0, 0], sizes = [64, 64], strides = [1, 1]} : vector<64x128xf32> to vector<64x64xf32>
    %64 = vector.extract_strided_slice %62 {offsets = [0, 64], sizes = [64, 64], strides = [1, 1]} : vector<64x128xf32> to vector<64x64xf32>
    %65 = arith.maximumf %63, %64 : vector<64x64xf32>
    %c0_50 = arith.constant 0 : index
    %c0_51 = arith.constant 0 : index
    %66 = vector.load %arg5[%c0_50, %c0_51] : memref<1x64xf32, #tpu.memory_space<vmem>>, vector<1x64xf32>
    %67 = vector.broadcast %66 : vector<1x64xf32> to vector<64x64xf32>
    %68 = arith.addf %65, %67 : vector<64x64xf32>
    %c0_52 = arith.constant 0 : index
    %c0_53 = arith.constant 0 : index
    %69 = vector.load %arg17[%c0_52, %c0_53] : memref<128x64xf32, #tpu.memory_space<vmem>>, vector<64x64xf32>
    tpu.vector_store %arg17[%c0_52, %c0_53], %68 {strides = array<i32>} : memref<128x64xf32, #tpu.memory_space<vmem>>, vector<64x64xf32>,
    %c0_54 = arith.constant 0 : index
    %c64 = arith.constant 64 : index
    %c0_55 = arith.constant 0 : index
    %70 = vector.load %arg1[%c0_54, %c64, %c0_55] : memref<1x512x256xf32, #tpu.memory_space<vmem>>, vector<1x64x256xf32>
    %71 = vector.shape_cast %70 : vector<1x64x256xf32> to vector<64x256xf32>
    %c0_56 = arith.constant 0 : index
    %c0_57 = arith.constant 0 : index
    %72 = vector.load %arg2[%c0_56, %c0_57] : memref<256x128xf32, #tpu.memory_space<vmem>>, vector<256x128xf32>
    %cst_58 = arith.constant dense<0.000000e+00> : vector<64x128xf32>
    %73 = tpu.matmul %71, %72, %cst_58 {dimension_numbers = #tpu.dot_dimension_numbers<[1], [0], [0], [1], [0, 0, 1, 1], [], []>} : vector<64x256xf32>, vector<256x128xf32>, vector<64x128xf32> -> vector<64x128xf32>
    %c0_59 = arith.constant 0 : index
    %c0_60 = arith.constant 0 : index
    %74 = vector.load %arg3[%c0_59, %c0_60] : memref<1x128xf32, #tpu.memory_space<vmem>>, vector<1x128xf32>
    %75 = vector.broadcast %74 : vector<1x128xf32> to vector<64x128xf32>
    %76 = arith.addf %73, %75 : vector<64x128xf32>
    %cst_61 = arith.constant 0.000000e+00 : f32
    %77 = vector.broadcast %cst_61 : f32 to vector<64x128xf32>
    %78 = arith.cmpf oge, %76, %77 : vector<64x128xf32>
    %cst_62 = arith.constant 0.00999999977 : f32
    %79 = vector.broadcast %cst_62 : f32 to vector<64x128xf32>
    %80 = arith.mulf %79, %76 : vector<64x128xf32>
    %81 = arith.select %78, %76, %80 : vector<64x128xi1>, vector<64x128xf32>
    %c0_63 = arith.constant 0 : index
    %c0_64 = arith.constant 0 : index
    %c0_65 = arith.constant 0 : index
    %82 = vector.load %arg4[%c0_63, %c0_64, %c0_65] : memref<2x128x128xf32, #tpu.memory_space<vmem>>, vector<1x128x128xf32>
    %83 = vector.shape_cast %82 : vector<1x128x128xf32> to vector<128x128xf32>
    %cst_66 = arith.constant dense<0.000000e+00> : vector<64x128xf32>
    %84 = tpu.matmul %81, %83, %cst_66 {dimension_numbers = #tpu.dot_dimension_numbers<[1], [0], [0], [1], [0, 0, 1, 1], [], []>} : vector<64x128xf32>, vector<128x128xf32>, vector<64x128xf32> -> vector<64x128xf32>
    %c0_67 = arith.constant 0 : index
    %c192 = arith.constant 192 : index
    %c0_68 = arith.constant 0 : index
    %85 = vector.load %arg1[%c0_67, %c192, %c0_68] : memref<1x512x256xf32, #tpu.memory_space<vmem>>, vector<1x64x256xf32>
    %86 = vector.shape_cast %85 : vector<1x64x256xf32> to vector<64x256xf32>
    %c0_69 = arith.constant 0 : index
    %c0_70 = arith.constant 0 : index
    %87 = vector.load %arg2[%c0_69, %c0_70] : memref<256x128xf32, #tpu.memory_space<vmem>>, vector<256x128xf32>
    %cst_71 = arith.constant dense<0.000000e+00> : vector<64x128xf32>
    %88 = tpu.matmul %86, %87, %cst_71 {dimension_numbers = #tpu.dot_dimension_numbers<[1], [0], [0], [1], [0, 0, 1, 1], [], []>} : vector<64x256xf32>, vector<256x128xf32>, vector<64x128xf32> -> vector<64x128xf32>
    %c0_72 = arith.constant 0 : index
    %c0_73 = arith.constant 0 : index
    %89 = vector.load %arg3[%c0_72, %c0_73] : memref<1x128xf32, #tpu.memory_space<vmem>>, vector<1x128xf32>
    %90 = vector.broadcast %89 : vector<1x128xf32> to vector<64x128xf32>
    %91 = arith.addf %88, %90 : vector<64x128xf32>
    %cst_74 = arith.constant 0.000000e+00 : f32
    %92 = vector.broadcast %cst_74 : f32 to vector<64x128xf32>
    %93 = arith.cmpf oge, %91, %92 : vector<64x128xf32>
    %cst_75 = arith.constant 0.00999999977 : f32
    %94 = vector.broadcast %cst_75 : f32 to vector<64x128xf32>
    %95 = arith.mulf %94, %91 : vector<64x128xf32>
    %96 = arith.select %93, %91, %95 : vector<64x128xi1>, vector<64x128xf32>
    %c1_76 = arith.constant 1 : index
    %c0_77 = arith.constant 0 : index
    %c0_78 = arith.constant 0 : index
    %97 = vector.load %arg4[%c1_76, %c0_77, %c0_78] : memref<2x128x128xf32, #tpu.memory_space<vmem>>, vector<1x128x128xf32>
    %98 = vector.shape_cast %97 : vector<1x128x128xf32> to vector<128x128xf32>
    %cst_79 = arith.constant dense<0.000000e+00> : vector<64x128xf32>
    %99 = tpu.matmul %96, %98, %cst_79 {dimension_numbers = #tpu.dot_dimension_numbers<[1], [0], [0], [1], [0, 0, 1, 1], [], []>} : vector<64x128xf32>, vector<128x128xf32>, vector<64x128xf32> -> vector<64x128xf32>
    %100 = arith.addf %84, %99 : vector<64x128xf32>
    %c0_80 = arith.constant 0 : index
    %c320 = arith.constant 320 : index
    %c0_81 = arith.constant 0 : index
    %101 = vector.load %arg1[%c0_80, %c320, %c0_81] : memref<1x512x256xf32, #tpu.memory_space<vmem>>, vector<1x64x256xf32>
    %102 = vector.shape_cast %101 : vector<1x64x256xf32> to vector<64x256xf32>
    %c0_82 = arith.constant 0 : index
    %c0_83 = arith.constant 0 : index
    %103 = vector.load %arg2[%c0_82, %c0_83] : memref<256x128xf32, #tpu.memory_space<vmem>>, vector<256x128xf32>
    %cst_84 = arith.constant dense<0.000000e+00> : vector<64x128xf32>
    %104 = tpu.matmul %102, %103, %cst_84 {dimension_numbers = #tpu.dot_dimension_numbers<[1], [0], [0], [1], [0, 0, 1, 1], [], []>} : vector<64x256xf32>, vector<256x128xf32>, vector<64x128xf32> -> vector<64x128xf32>
    %c0_85 = arith.constant 0 : index
    %c0_86 = arith.constant 0 : index
    %105 = vector.load %arg3[%c0_85, %c0_86] : memref<1x128xf32, #tpu.memory_space<vmem>>, vector<1x128xf32>
    %106 = vector.broadcast %105 : vector<1x128xf32> to vector<64x128xf32>
    %107 = arith.addf %104, %106 : vector<64x128xf32>
    %cst_87 = arith.constant 0.000000e+00 : f32
    %108 = vector.broadcast %cst_87 : f32 to vector<64x128xf32>
    %109 = arith.cmpf oge, %107, %108 : vector<64x128xf32>
    %cst_88 = arith.constant 0.00999999977 : f32
    %110 = vector.broadcast %cst_88 : f32 to vector<64x128xf32>
    %111 = arith.mulf %110, %107 : vector<64x128xf32>
    %112 = arith.select %109, %107, %111 : vector<64x128xi1>, vector<64x128xf32>
    %c0_89 = arith.constant 0 : index
    %c0_90 = arith.constant 0 : index
    %c0_91 = arith.constant 0 : index
    %113 = vector.load %arg4[%c0_89, %c0_90, %c0_91] : memref<2x128x128xf32, #tpu.memory_space<vmem>>, vector<1x128x128xf32>
    %114 = vector.shape_cast %113 : vector<1x128x128xf32> to vector<128x128xf32>
    %cst_92 = arith.constant dense<0.000000e+00> : vector<64x128xf32>
    %115 = tpu.matmul %112, %114, %cst_92 {dimension_numbers = #tpu.dot_dimension_numbers<[1], [0], [0], [1], [0, 0, 1, 1], [], []>} : vector<64x128xf32>, vector<128x128xf32>, vector<64x128xf32> -> vector<64x128xf32>
    %c0_93 = arith.constant 0 : index
    %c448 = arith.constant 448 : index
    %c0_94 = arith.constant 0 : index
    %116 = vector.load %arg1[%c0_93, %c448, %c0_94] : memref<1x512x256xf32, #tpu.memory_space<vmem>>, vector<1x64x256xf32>
    %117 = vector.shape_cast %116 : vector<1x64x256xf32> to vector<64x256xf32>
    %c0_95 = arith.constant 0 : index
    %c0_96 = arith.constant 0 : index
    %118 = vector.load %arg2[%c0_95, %c0_96] : memref<256x128xf32, #tpu.memory_space<vmem>>, vector<256x128xf32>
    %cst_97 = arith.constant dense<0.000000e+00> : vector<64x128xf32>
    %119 = tpu.matmul %117, %118, %cst_97 {dimension_numbers = #tpu.dot_dimension_numbers<[1], [0], [0], [1], [0, 0, 1, 1], [], []>} : vector<64x256xf32>, vector<256x128xf32>, vector<64x128xf32> -> vector<64x128xf32>
    %c0_98 = arith.constant 0 : index
    %c0_99 = arith.constant 0 : index
    %120 = vector.load %arg3[%c0_98, %c0_99] : memref<1x128xf32, #tpu.memory_space<vmem>>, vector<1x128xf32>
    %121 = vector.broadcast %120 : vector<1x128xf32> to vector<64x128xf32>
    %122 = arith.addf %119, %121 : vector<64x128xf32>
    %cst_100 = arith.constant 0.000000e+00 : f32
    %123 = vector.broadcast %cst_100 : f32 to vector<64x128xf32>
    %124 = arith.cmpf oge, %122, %123 : vector<64x128xf32>
    %cst_101 = arith.constant 0.00999999977 : f32
    %125 = vector.broadcast %cst_101 : f32 to vector<64x128xf32>
    %126 = arith.mulf %125, %122 : vector<64x128xf32>
    %127 = arith.select %124, %122, %126 : vector<64x128xi1>, vector<64x128xf32>
    %c1_102 = arith.constant 1 : index
    %c0_103 = arith.constant 0 : index
    %c0_104 = arith.constant 0 : index
    %128 = vector.load %arg4[%c1_102, %c0_103, %c0_104] : memref<2x128x128xf32, #tpu.memory_space<vmem>>, vector<1x128x128xf32>
    %129 = vector.shape_cast %128 : vector<1x128x128xf32> to vector<128x128xf32>
    %cst_105 = arith.constant dense<0.000000e+00> : vector<64x128xf32>
    %130 = tpu.matmul %127, %129, %cst_105 {dimension_numbers = #tpu.dot_dimension_numbers<[1], [0], [0], [1], [0, 0, 1, 1], [], []>} : vector<64x128xf32>, vector<128x128xf32>, vector<64x128xf32> -> vector<64x128xf32>
    %131 = arith.addf %115, %130 : vector<64x128xf32>
    %132 = arith.maximumf %100, %131 : vector<64x128xf32>
    %133 = vector.extract_strided_slice %132 {offsets = [0, 0], sizes = [64, 64], strides = [1, 1]} : vector<64x128xf32> to vector<64x64xf32>
    %134 = vector.extract_strided_slice %132 {offsets = [0, 64], sizes = [64, 64], strides = [1, 1]} : vector<64x128xf32> to vector<64x64xf32>
    %135 = arith.maximumf %133, %134 : vector<64x64xf32>
    %c0_106 = arith.constant 0 : index
    %c0_107 = arith.constant 0 : index
    %136 = vector.load %arg5[%c0_106, %c0_107] : memref<1x64xf32, #tpu.memory_space<vmem>>, vector<1x64xf32>
    %137 = vector.broadcast %136 : vector<1x64xf32> to vector<64x64xf32>
    %138 = arith.addf %135, %137 : vector<64x64xf32>
    %c64_108 = arith.constant 64 : index
    %c0_109 = arith.constant 0 : index
    %139 = vector.load %arg17[%c64_108, %c0_109] : memref<128x64xf32, #tpu.memory_space<vmem>>, vector<64x64xf32>
    tpu.vector_store %arg17[%c64_108, %c0_109], %138 {strides = array<i32>} : memref<128x64xf32, #tpu.memory_space<vmem>>, vector<64x64xf32>,
    %c0_110 = arith.constant 0 : index
    %c0_111 = arith.constant 0 : index
    %140 = vector.load %arg17[%c0_110, %c0_111] : memref<128x64xf32, #tpu.memory_space<vmem>>, vector<24x64xf32>
    %c32 = arith.constant 32 : index
    %c0_112 = arith.constant 0 : index
    %141 = vector.load %arg17[%c32, %c0_112] : memref<128x64xf32, #tpu.memory_space<vmem>>, vector<24x64xf32>
    %c1_113 = arith.constant 1 : index
    %c0_114 = arith.constant 0 : index
    %142 = vector.load %arg17[%c1_113, %c0_114] : memref<128x64xf32, #tpu.memory_space<vmem>>, vector<24x64xf32>
    %c64_115 = arith.constant 64 : index
    %c0_116 = arith.constant 0 : index
    %143 = vector.load %arg17[%c64_115, %c0_116] : memref<128x64xf32, #tpu.memory_space<vmem>>, vector<24x64xf32>
    %c96 = arith.constant 96 : index
    %c0_117 = arith.constant 0 : index
    %144 = vector.load %arg17[%c96, %c0_117] : memref<128x64xf32, #tpu.memory_space<vmem>>, vector<24x64xf32>
    %c65 = arith.constant 65 : index
    %c0_118 = arith.constant 0 : index
    %145 = vector.load %arg17[%c65, %c0_118] : memref<128x64xf32, #tpu.memory_space<vmem>>, vector<24x64xf32>
    %c6 = arith.constant 6 : index
    %c0_119 = arith.constant 0 : index
    %146 = vector.load %arg17[%c6, %c0_119] : memref<128x64xf32, #tpu.memory_space<vmem>>, vector<24x64xf32>
    %c38 = arith.constant 38 : index
    %c0_120 = arith.constant 0 : index
    %147 = vector.load %arg17[%c38, %c0_120] : memref<128x64xf32, #tpu.memory_space<vmem>>, vector<24x64xf32>
    %c7 = arith.constant 7 : index
    %c0_121 = arith.constant 0 : index
    %148 = vector.load %arg17[%c7, %c0_121] : memref<128x64xf32, #tpu.memory_space<vmem>>, vector<24x64xf32>
    %149 = tpu.concatenate %140, %141, %143, %144 in 1 : vector<24x64xf32>, vector<24x64xf32>, vector<24x64xf32>, vector<24x64xf32> -> vector<24x256xf32>
    %c0_122 = arith.constant 0 : index
    %c0_123 = arith.constant 0 : index
    %150 = vector.load %arg6[%c0_122, %c0_123] : memref<256x64xf32, #tpu.memory_space<vmem>>, vector<256x64xf32>
    %cst_124 = arith.constant dense<0.000000e+00> : vector<24x64xf32>
    %151 = tpu.matmul %149, %150, %cst_124 {dimension_numbers = #tpu.dot_dimension_numbers<[1], [0], [0], [1], [0, 0, 1, 1], [], []>} : vector<24x256xf32>, vector<256x64xf32>, vector<24x64xf32> -> vector<24x64xf32>
    %152 = tpu.concatenate %141, %142, %144, %145 in 1 : vector<24x64xf32>, vector<24x64xf32>, vector<24x64xf32>, vector<24x64xf32> -> vector<24x256xf32>
    %c0_125 = arith.constant 0 : index
    %c0_126 = arith.constant 0 : index
    %153 = vector.load %arg6[%c0_125, %c0_126] : memref<256x64xf32, #tpu.memory_space<vmem>>, vector<256x64xf32>
    %cst_127 = arith.constant dense<0.000000e+00> : vector<24x64xf32>
    %154 = tpu.matmul %152, %153, %cst_127 {dimension_numbers = #tpu.dot_dimension_numbers<[1], [0], [0], [1], [0, 0, 1, 1], [], []>} : vector<24x256xf32>, vector<256x64xf32>, vector<24x64xf32> -> vector<24x64xf32>
    %155 = arith.maximumf %151, %154 : vector<24x64xf32>
    %156 = tpu.concatenate %143, %144, %146, %147 in 1 : vector<24x64xf32>, vector<24x64xf32>, vector<24x64xf32>, vector<24x64xf32> -> vector<24x256xf32>
    %c0_128 = arith.constant 0 : index
    %c0_129 = arith.constant 0 : index
    %157 = vector.load %arg6[%c0_128, %c0_129] : memref<256x64xf32, #tpu.memory_space<vmem>>, vector<256x64xf32>
    %cst_130 = arith.constant dense<0.000000e+00> : vector<24x64xf32>
    %158 = tpu.matmul %156, %157, %cst_130 {dimension_numbers = #tpu.dot_dimension_numbers<[1], [0], [0], [1], [0, 0, 1, 1], [], []>} : vector<24x256xf32>, vector<256x64xf32>, vector<24x64xf32> -> vector<24x64xf32>
    %159 = arith.maximumf %155, %158 : vector<24x64xf32>
    %160 = tpu.concatenate %144, %145, %147, %148 in 1 : vector<24x64xf32>, vector<24x64xf32>, vector<24x64xf32>, vector<24x64xf32> -> vector<24x256xf32>
    %c0_131 = arith.constant 0 : index
    %c0_132 = arith.constant 0 : index
    %161 = vector.load %arg6[%c0_131, %c0_132] : memref<256x64xf32, #tpu.memory_space<vmem>>, vector<256x64xf32>
    %cst_133 = arith.constant dense<0.000000e+00> : vector<24x64xf32>
    %162 = tpu.matmul %160, %161, %cst_133 {dimension_numbers = #tpu.dot_dimension_numbers<[1], [0], [0], [1], [0, 0, 1, 1], [], []>} : vector<24x256xf32>, vector<256x64xf32>, vector<24x64xf32> -> vector<24x64xf32>
    %163 = arith.maximumf %159, %162 : vector<24x64xf32>
    %c0_134 = arith.constant 0 : index
    %c0_135 = arith.constant 0 : index
    %164 = vector.load %arg7[%c0_134, %c0_135] : memref<1x64xf32, #tpu.memory_space<vmem>>, vector<1x64xf32>
    %165 = vector.broadcast %164 : vector<1x64xf32> to vector<24x64xf32>
    %166 = arith.addf %163, %165 : vector<24x64xf32>
    %167 = vector.extract_strided_slice %166 {offsets = [0, 0], sizes = [1, 64], strides = [1, 1]} : vector<24x64xf32> to vector<1x64xf32>
    %c0_136 = arith.constant 0 : index
    %c0_137 = arith.constant 0 : index
    %168 = vector.load %arg18[%c0_136, %c0_137] : memref<1x1280xf32, #tpu.memory_space<vmem>>, vector<1x64xf32>
    tpu.vector_store %arg18[%c0_136, %c0_137], %167 {strides = array<i32>} : memref<1x1280xf32, #tpu.memory_space<vmem>>, vector<1x64xf32>,
    %169 = vector.extract_strided_slice %166 {offsets = [1, 0], sizes = [1, 64], strides = [1, 1]} : vector<24x64xf32> to vector<1x64xf32>
    %c0_138 = arith.constant 0 : index
    %c64_139 = arith.constant 64 : index
    %170 = vector.load %arg18[%c0_138, %c64_139] : memref<1x1280xf32, #tpu.memory_space<vmem>>, vector<1x64xf32>
    tpu.vector_store %arg18[%c0_138, %c64_139], %169 {strides = array<i32>} : memref<1x1280xf32, #tpu.memory_space<vmem>>, vector<1x64xf32>,
    %171 = vector.extract_strided_slice %166 {offsets = [2, 0], sizes = [1, 64], strides = [1, 1]} : vector<24x64xf32> to vector<1x64xf32>
    %c0_140 = arith.constant 0 : index
    %c128_141 = arith.constant 128 : index
    %172 = vector.load %arg18[%c0_140, %c128_141] : memref<1x1280xf32, #tpu.memory_space<vmem>>, vector<1x64xf32>
    tpu.vector_store %arg18[%c0_140, %c128_141], %171 {strides = array<i32>} : memref<1x1280xf32, #tpu.memory_space<vmem>>, vector<1x64xf32>,
    %173 = vector.extract_strided_slice %166 {offsets = [3, 0], sizes = [1, 64], strides = [1, 1]} : vector<24x64xf32> to vector<1x64xf32>
    %c0_142 = arith.constant 0 : index
    %c192_143 = arith.constant 192 : index
    %174 = vector.load %arg18[%c0_142, %c192_143] : memref<1x1280xf32, #tpu.memory_space<vmem>>, vector<1x64xf32>
    tpu.vector_store %arg18[%c0_142, %c192_143], %173 {strides = array<i32>} : memref<1x1280xf32, #tpu.memory_space<vmem>>, vector<1x64xf32>,
    %175 = vector.extract_strided_slice %166 {offsets = [4, 0], sizes = [1, 64], strides = [1, 1]} : vector<24x64xf32> to vector<1x64xf32>
    %c0_144 = arith.constant 0 : index
    %c256_145 = arith.constant 256 : index
    %176 = vector.load %arg18[%c0_144, %c256_145] : memref<1x1280xf32, #tpu.memory_space<vmem>>, vector<1x64xf32>
    tpu.vector_store %arg18[%c0_144, %c256_145], %175 {strides = array<i32>} : memref<1x1280xf32, #tpu.memory_space<vmem>>, vector<1x64xf32>,
    %177 = vector.extract_strided_slice %166 {offsets = [6, 0], sizes = [1, 64], strides = [1, 1]} : vector<24x64xf32> to vector<1x64xf32>
    %c0_146 = arith.constant 0 : index
    %c320_147 = arith.constant 320 : index
    %178 = vector.load %arg18[%c0_146, %c320_147] : memref<1x1280xf32, #tpu.memory_space<vmem>>, vector<1x64xf32>
    tpu.vector_store %arg18[%c0_146, %c320_147], %177 {strides = array<i32>} : memref<1x1280xf32, #tpu.memory_space<vmem>>, vector<1x64xf32>,
    %179 = vector.extract_strided_slice %166 {offsets = [7, 0], sizes = [1, 64], strides = [1, 1]} : vector<24x64xf32> to vector<1x64xf32>
    %c0_148 = arith.constant 0 : index
    %c384_149 = arith.constant 384 : index
    %180 = vector.load %arg18[%c0_148, %c384_149] : memref<1x1280xf32, #tpu.memory_space<vmem>>, vector<1x64xf32>
    tpu.vector_store %arg18[%c0_148, %c384_149], %179 {strides = array<i32>} : memref<1x1280xf32, #tpu.memory_space<vmem>>, vector<1x64xf32>,
    %181 = vector.extract_strided_slice %166 {offsets = [8, 0], sizes = [1, 64], strides = [1, 1]} : vector<24x64xf32> to vector<1x64xf32>
    %c0_150 = arith.constant 0 : index
    %c448_151 = arith.constant 448 : index
    %182 = vector.load %arg18[%c0_150, %c448_151] : memref<1x1280xf32, #tpu.memory_space<vmem>>, vector<1x64xf32>
    tpu.vector_store %arg18[%c0_150, %c448_151], %181 {strides = array<i32>} : memref<1x1280xf32, #tpu.memory_space<vmem>>, vector<1x64xf32>,
    %183 = vector.extract_strided_slice %166 {offsets = [9, 0], sizes = [1, 64], strides = [1, 1]} : vector<24x64xf32> to vector<1x64xf32>
    %c0_152 = arith.constant 0 : index
    %c512 = arith.constant 512 : index
    %184 = vector.load %arg18[%c0_152, %c512] : memref<1x1280xf32, #tpu.memory_space<vmem>>, vector<1x64xf32>
    tpu.vector_store %arg18[%c0_152, %c512], %183 {strides = array<i32>} : memref<1x1280xf32, #tpu.memory_space<vmem>>, vector<1x64xf32>,
    %185 = vector.extract_strided_slice %166 {offsets = [10, 0], sizes = [1, 64], strides = [1, 1]} : vector<24x64xf32> to vector<1x64xf32>
    %c0_153 = arith.constant 0 : index
    %c576 = arith.constant 576 : index
    %186 = vector.load %arg18[%c0_153, %c576] : memref<1x1280xf32, #tpu.memory_space<vmem>>, vector<1x64xf32>
    tpu.vector_store %arg18[%c0_153, %c576], %185 {strides = array<i32>} : memref<1x1280xf32, #tpu.memory_space<vmem>>, vector<1x64xf32>,
    %187 = vector.extract_strided_slice %166 {offsets = [12, 0], sizes = [1, 64], strides = [1, 1]} : vector<24x64xf32> to vector<1x64xf32>
    %c0_154 = arith.constant 0 : index
    %c640 = arith.constant 640 : index
    %188 = vector.load %arg18[%c0_154, %c640] : memref<1x1280xf32, #tpu.memory_space<vmem>>, vector<1x64xf32>
    tpu.vector_store %arg18[%c0_154, %c640], %187 {strides = array<i32>} : memref<1x1280xf32, #tpu.memory_space<vmem>>, vector<1x64xf32>,
    %189 = vector.extract_strided_slice %166 {offsets = [13, 0], sizes = [1, 64], strides = [1, 1]} : vector<24x64xf32> to vector<1x64xf32>
    %c0_155 = arith.constant 0 : index
    %c704 = arith.constant 704 : index
    %190 = vector.load %arg18[%c0_155, %c704] : memref<1x1280xf32, #tpu.memory_space<vmem>>, vector<1x64xf32>
    tpu.vector_store %arg18[%c0_155, %c704], %189 {strides = array<i32>} : memref<1x1280xf32, #tpu.memory_space<vmem>>, vector<1x64xf32>,
    %191 = vector.extract_strided_slice %166 {offsets = [14, 0], sizes = [1, 64], strides = [1, 1]} : vector<24x64xf32> to vector<1x64xf32>
    %c0_156 = arith.constant 0 : index
    %c768 = arith.constant 768 : index
    %192 = vector.load %arg18[%c0_156, %c768] : memref<1x1280xf32, #tpu.memory_space<vmem>>, vector<1x64xf32>
    tpu.vector_store %arg18[%c0_156, %c768], %191 {strides = array<i32>} : memref<1x1280xf32, #tpu.memory_space<vmem>>, vector<1x64xf32>,
    %193 = vector.extract_strided_slice %166 {offsets = [15, 0], sizes = [1, 64], strides = [1, 1]} : vector<24x64xf32> to vector<1x64xf32>
    %c0_157 = arith.constant 0 : index
    %c832 = arith.constant 832 : index
    %194 = vector.load %arg18[%c0_157, %c832] : memref<1x1280xf32, #tpu.memory_space<vmem>>, vector<1x64xf32>
    tpu.vector_store %arg18[%c0_157, %c832], %193 {strides = array<i32>} : memref<1x1280xf32, #tpu.memory_space<vmem>>, vector<1x64xf32>,
    %195 = vector.extract_strided_slice %166 {offsets = [16, 0], sizes = [1, 64], strides = [1, 1]} : vector<24x64xf32> to vector<1x64xf32>
    %c0_158 = arith.constant 0 : index
    %c896 = arith.constant 896 : index
    %196 = vector.load %arg18[%c0_158, %c896] : memref<1x1280xf32, #tpu.memory_space<vmem>>, vector<1x64xf32>
    tpu.vector_store %arg18[%c0_158, %c896], %195 {strides = array<i32>} : memref<1x1280xf32, #tpu.memory_space<vmem>>, vector<1x64xf32>,
    %197 = vector.extract_strided_slice %166 {offsets = [18, 0], sizes = [1, 64], strides = [1, 1]} : vector<24x64xf32> to vector<1x64xf32>
    %c0_159 = arith.constant 0 : index
    %c960 = arith.constant 960 : index
    %198 = vector.load %arg18[%c0_159, %c960] : memref<1x1280xf32, #tpu.memory_space<vmem>>, vector<1x64xf32>
    tpu.vector_store %arg18[%c0_159, %c960], %197 {strides = array<i32>} : memref<1x1280xf32, #tpu.memory_space<vmem>>, vector<1x64xf32>,
    %199 = vector.extract_strided_slice %166 {offsets = [19, 0], sizes = [1, 64], strides = [1, 1]} : vector<24x64xf32> to vector<1x64xf32>
    %c0_160 = arith.constant 0 : index
    %c1024 = arith.constant 1024 : index
    %200 = vector.load %arg18[%c0_160, %c1024] : memref<1x1280xf32, #tpu.memory_space<vmem>>, vector<1x64xf32>
    tpu.vector_store %arg18[%c0_160, %c1024], %199 {strides = array<i32>} : memref<1x1280xf32, #tpu.memory_space<vmem>>, vector<1x64xf32>,
    %201 = vector.extract_strided_slice %166 {offsets = [20, 0], sizes = [1, 64], strides = [1, 1]} : vector<24x64xf32> to vector<1x64xf32>
    %c0_161 = arith.constant 0 : index
    %c1088 = arith.constant 1088 : index
    %202 = vector.load %arg18[%c0_161, %c1088] : memref<1x1280xf32, #tpu.memory_space<vmem>>, vector<1x64xf32>
    tpu.vector_store %arg18[%c0_161, %c1088], %201 {strides = array<i32>} : memref<1x1280xf32, #tpu.memory_space<vmem>>, vector<1x64xf32>,
    %203 = vector.extract_strided_slice %166 {offsets = [21, 0], sizes = [1, 64], strides = [1, 1]} : vector<24x64xf32> to vector<1x64xf32>
    %c0_162 = arith.constant 0 : index
    %c1152 = arith.constant 1152 : index
    %204 = vector.load %arg18[%c0_162, %c1152] : memref<1x1280xf32, #tpu.memory_space<vmem>>, vector<1x64xf32>
    tpu.vector_store %arg18[%c0_162, %c1152], %203 {strides = array<i32>} : memref<1x1280xf32, #tpu.memory_space<vmem>>, vector<1x64xf32>,
    %205 = vector.extract_strided_slice %166 {offsets = [22, 0], sizes = [1, 64], strides = [1, 1]} : vector<24x64xf32> to vector<1x64xf32>
    %c0_163 = arith.constant 0 : index
    %c1216 = arith.constant 1216 : index
    %206 = vector.load %arg18[%c0_163, %c1216] : memref<1x1280xf32, #tpu.memory_space<vmem>>, vector<1x64xf32>
    tpu.vector_store %arg18[%c0_163, %c1216], %205 {strides = array<i32>} : memref<1x1280xf32, #tpu.memory_space<vmem>>, vector<1x64xf32>,
    %c0_164 = arith.constant 0 : index
    %c0_165 = arith.constant 0 : index
    %207 = vector.load %arg18[%c0_164, %c0_165] : memref<1x1280xf32, #tpu.memory_space<vmem>>, vector<1x1280xf32>
    %c0_166 = arith.constant 0 : index
    %c0_167 = arith.constant 0 : index
    %208 = vector.load %arg8[%c0_166, %c0_167] : memref<1280x256xf32, #tpu.memory_space<vmem>>, vector<1280x256xf32>
    %cst_168 = arith.constant dense<0.000000e+00> : vector<1x256xf32>
    %209 = tpu.matmul %207, %208, %cst_168 {dimension_numbers = #tpu.dot_dimension_numbers<[1], [0], [0], [1], [0, 0, 1, 1], [], []>} : vector<1x1280xf32>, vector<1280x256xf32>, vector<1x256xf32> -> vector<1x256xf32>
    %c0_169 = arith.constant 0 : index
    %c0_170 = arith.constant 0 : index
    %210 = vector.load %arg9[%c0_169, %c0_170] : memref<1x256xf32, #tpu.memory_space<vmem>>, vector<1x256xf32>
    %211 = arith.addf %209, %210 : vector<1x256xf32>
    %cst_171 = arith.constant 0.000000e+00 : f32
    %212 = vector.broadcast %cst_171 : f32 to vector<1x256xf32>
    %213 = arith.cmpf oge, %211, %212 : vector<1x256xf32>
    %cst_172 = arith.constant 0.00999999977 : f32
    %214 = vector.broadcast %cst_172 : f32 to vector<1x256xf32>
    %215 = arith.mulf %214, %211 : vector<1x256xf32>
    %216 = arith.select %213, %211, %215 : vector<1x256xi1>, vector<1x256xf32>
    %c0_173 = arith.constant 0 : index
    %c0_174 = arith.constant 0 : index
    %217 = vector.load %arg10[%c0_173, %c0_174] : memref<256x32xf32, #tpu.memory_space<vmem>>, vector<256x32xf32>
    %cst_175 = arith.constant dense<0.000000e+00> : vector<1x32xf32>
    %218 = tpu.matmul %216, %217, %cst_175 {dimension_numbers = #tpu.dot_dimension_numbers<[1], [0], [0], [1], [0, 0, 1, 1], [], []>} : vector<1x256xf32>, vector<256x32xf32>, vector<1x32xf32> -> vector<1x32xf32>
    %c0_176 = arith.constant 0 : index
    %c0_177 = arith.constant 0 : index
    %219 = vector.load %arg11[%c0_176, %c0_177] : memref<1x32xf32, #tpu.memory_space<vmem>>, vector<1x32xf32>
    %220 = arith.addf %218, %219 : vector<1x32xf32>
    %cst_178 = arith.constant 0.000000e+00 : f32
    %221 = vector.broadcast %cst_178 : f32 to vector<1x32xf32>
    %222 = arith.maximumf %220, %221 : vector<1x32xf32>
    %c0_179 = arith.constant 0 : index
    %c0_180 = arith.constant 0 : index
    %223 = vector.load %arg12[%c0_179, %c0_180] : memref<32x32xf32, #tpu.memory_space<vmem>>, vector<32x32xf32>
    %cst_181 = arith.constant dense<0.000000e+00> : vector<1x32xf32>
    %224 = tpu.matmul %222, %223, %cst_181 {dimension_numbers = #tpu.dot_dimension_numbers<[1], [0], [0], [1], [0, 0, 1, 1], [], []>} : vector<1x32xf32>, vector<32x32xf32>, vector<1x32xf32> -> vector<1x32xf32>
    %c0_182 = arith.constant 0 : index
    %c0_183 = arith.constant 0 : index
    %225 = vector.load %arg13[%c0_182, %c0_183] : memref<1x32xf32, #tpu.memory_space<vmem>>, vector<1x32xf32>
    %226 = arith.addf %224, %225 : vector<1x32xf32>
    %cst_184 = arith.constant 0.000000e+00 : f32
    %227 = vector.broadcast %cst_184 : f32 to vector<1x32xf32>
    %228 = arith.maximumf %226, %227 : vector<1x32xf32>
    %c0_185 = arith.constant 0 : index
    %c0_186 = arith.constant 0 : index
    %229 = vector.load %arg14[%c0_185, %c0_186] : memref<32x6xf32, #tpu.memory_space<vmem>>, vector<32x6xf32>
    %cst_187 = arith.constant dense<0.000000e+00> : vector<1x6xf32>
    %230 = tpu.matmul %228, %229, %cst_187 {dimension_numbers = #tpu.dot_dimension_numbers<[1], [0], [0], [1], [0, 0, 1, 1], [], []>} : vector<1x32xf32>, vector<32x6xf32>, vector<1x6xf32> -> vector<1x6xf32>
    %c0_188 = arith.constant 0 : index
    %c0_189 = arith.constant 0 : index
    %231 = vector.load %arg15[%c0_188, %c0_189] : memref<1x6xf32, #tpu.memory_space<vmem>>, vector<1x6xf32>
    %232 = arith.addf %230, %231 : vector<1x6xf32>
    %233 = tpu.iota {dimensions = array<i32: 1>} : vector<1x6xi32>
    %c3_i32 = arith.constant 3 : i32
    %234 = vector.broadcast %c3_i32 : i32 to vector<1x6xi32>
    %235 = arith.cmpi sge, %233, %234 : vector<1x6xi32>
    %cst_190 = arith.constant -2.000000e+01 : f32
    %cst_191 = arith.constant 2.000000e+00 : f32
    %236 = vector.broadcast %cst_190 : f32 to vector<1x6xf32>
    %237 = arith.maximumf %236, %232 : vector<1x6xf32>
    %238 = vector.broadcast %cst_191 : f32 to vector<1x6xf32>
    %239 = arith.minimumf %238, %237 : vector<1x6xf32>
    %240 = arith.select %235, %239, %232 : vector<1x6xi1>, vector<1x6xf32>
    %c0_192 = arith.constant 0 : index
    %c0_193 = arith.constant 0 : index
    %c0_194 = arith.constant 0 : index
    %241 = vector.load %arg16[%c0_192, %c0_193, %c0_194] : memref<1x1x6xf32, #tpu.memory_space<vmem>>, vector<1x1x6xf32>
    %242 = vector.shape_cast %241 : vector<1x1x6xf32> to vector<1x6xf32>
    %243 = vector.shape_cast %240 : vector<1x6xf32> to vector<1x1x6xf32>
    tpu.vector_store %arg16[%c0_192, %c0_193, %c0_194], %243 {strides = array<i32>} : memref<1x1x6xf32, #tpu.memory_space<vmem>>, vector<1x1x6xf32>,
    return
  }
  func.func @transform_0(%arg0: i32) -> (i32, i32, i32) {
    %c0_i32 = arith.constant 0 : i32
    %c0_i32_0 = arith.constant 0 : i32
    %c0_i32_1 = arith.constant 0 : i32
    return %arg0, %c0_i32, %c0_i32_0 : i32, i32, i32
  }
  func.func @transform_1(%arg0: i32) -> (i32, i32) {
    %c0_i32 = arith.constant 0 : i32
    %c0_i32_0 = arith.constant 0 : i32
    %c0_i32_1 = arith.constant 0 : i32
    return %c0_i32, %c0_i32_0 : i32, i32
  }
  func.func @transform_2(%arg0: i32) -> (i32, i32) {
    %c0_i32 = arith.constant 0 : i32
    %c0_i32_0 = arith.constant 0 : i32
    %c0_i32_1 = arith.constant 0 : i32
    return %c0_i32, %c0_i32_0 : i32, i32
  }
  func.func @transform_3(%arg0: i32) -> (i32, i32, i32) {
    %c0_i32 = arith.constant 0 : i32
    %c0_i32_0 = arith.constant 0 : i32
    %c0_i32_1 = arith.constant 0 : i32
    %c0_i32_2 = arith.constant 0 : i32
    return %c0_i32, %c0_i32_0, %c0_i32_1 : i32, i32, i32
  }
  func.func @transform_4(%arg0: i32) -> (i32, i32) {
    %c0_i32 = arith.constant 0 : i32
    %c0_i32_0 = arith.constant 0 : i32
    %c0_i32_1 = arith.constant 0 : i32
    return %c0_i32, %c0_i32_0 : i32, i32
  }
  func.func @transform_5(%arg0: i32) -> (i32, i32) {
    %c0_i32 = arith.constant 0 : i32
    %c0_i32_0 = arith.constant 0 : i32
    %c0_i32_1 = arith.constant 0 : i32
    return %c0_i32, %c0_i32_0 : i32, i32
  }
  func.func @transform_6(%arg0: i32) -> (i32, i32) {
    %c0_i32 = arith.constant 0 : i32
    %c0_i32_0 = arith.constant 0 : i32
    %c0_i32_1 = arith.constant 0 : i32
    return %c0_i32, %c0_i32_0 : i32, i32
  }
  func.func @transform_7(%arg0: i32) -> (i32, i32) {
    %c0_i32 = arith.constant 0 : i32
    %c0_i32_0 = arith.constant 0 : i32
    %c0_i32_1 = arith.constant 0 : i32
    return %c0_i32, %c0_i32_0 : i32, i32
  }
  func.func @transform_8(%arg0: i32) -> (i32, i32) {
    %c0_i32 = arith.constant 0 : i32
    %c0_i32_0 = arith.constant 0 : i32
    %c0_i32_1 = arith.constant 0 : i32
    return %c0_i32, %c0_i32_0 : i32, i32
  }
  func.func @transform_9(%arg0: i32) -> (i32, i32) {
    %c0_i32 = arith.constant 0 : i32
    %c0_i32_0 = arith.constant 0 : i32
    %c0_i32_1 = arith.constant 0 : i32
    return %c0_i32, %c0_i32_0 : i32, i32
  }
  func.func @transform_10(%arg0: i32) -> (i32, i32) {
    %c0_i32 = arith.constant 0 : i32
    %c0_i32_0 = arith.constant 0 : i32
    %c0_i32_1 = arith.constant 0 : i32
    return %c0_i32, %c0_i32_0 : i32, i32
  }
  func.func @transform_11(%arg0: i32) -> (i32, i32) {
    %c0_i32 = arith.constant 0 : i32
    %c0_i32_0 = arith.constant 0 : i32
    %c0_i32_1 = arith.constant 0 : i32
    return %c0_i32, %c0_i32_0 : i32, i32
  }
  func.func @transform_12(%arg0: i32) -> (i32, i32) {
    %c0_i32 = arith.constant 0 : i32
    %c0_i32_0 = arith.constant 0 : i32
    %c0_i32_1 = arith.constant 0 : i32
    return %c0_i32, %c0_i32_0 : i32, i32
  }
  func.func @transform_13(%arg0: i32) -> (i32, i32) {
    %c0_i32 = arith.constant 0 : i32
    %c0_i32_0 = arith.constant 0 : i32
    %c0_i32_1 = arith.constant 0 : i32
    return %c0_i32, %c0_i32_0 : i32, i32
  }
  func.func @transform_14(%arg0: i32) -> (i32, i32) {
    %c0_i32 = arith.constant 0 : i32
    %c0_i32_0 = arith.constant 0 : i32
    %c0_i32_1 = arith.constant 0 : i32
    return %c0_i32, %c0_i32_0 : i32, i32
  }
  func.func @transform_15(%arg0: i32) -> (i32, i32, i32) {
    %c0_i32 = arith.constant 0 : i32
    %c0_i32_0 = arith.constant 0 : i32
    %c0_i32_1 = arith.constant 0 : i32
    return %arg0, %c0_i32, %c0_i32_0 : i32, i32, i32
  }
}

</mosaic_0001>

<bundles_post_ra>
// kernel: actor_forward.1
= control target key start
LH: loop header
LB: loop body
LE: loop exit
PB: predicated region body
PF: predicated region fallthrough
CT: control target
= control target key end

     0   :  { %s3683_s18 = smov 0   ;;  %s6518_s0 = inlined_call_operand.vmem [shape: f32[2,512,256], index: 0, kind: input, shape index: {}]   ;;  %s6519_s1 = inlined_call_operand.vmem [shape: f32[256,128], index: 1, kind: input, shape index: {}]   ;;  %s6520_s2 = inlined_call_operand.vmem [shape: f32[1,128], index: 2, kind: input, shape index: {}]   ;;  %s6521_s3 = inlined_call_operand.vmem [shape: f32[2,128,128], index: 3, kind: input, shape index: {}]   ;;  %s6522_s4 = inlined_call_operand.vmem [shape: f32[1,64], index: 4, kind: input, shape index: {}]   ;;  %s6523_s5 = inlined_call_operand.vmem [shape: f32[256,64], index: 5, kind: input, shape index: {}]   ;;  %s6524_s6 = inlined_call_operand.vmem [shape: f32[1,64], index: 6, kind: input, shape index: {}]   ;;  %s6525_s7 = inlined_call_operand.vmem [shape: f32[1280,256], index: 7, kind: input, shape index: {}]   ;;  %s6526_s8 = inlined_call_operand.vmem [shape: f32[1,256], index: 8, kind: input, shape index: {}]   ;;  %s6527_s9 = inlined_call_operand.vmem [shape: f32[256,32], index: 9, kind: input, shape index: {}]   ;;  %s6528_s10 = inlined_call_operand.vmem [shape: f32[1,32], index: 10, kind: input, shape index: {}]   ;;  %s6529_s11 = inlined_call_operand.vmem [shape: f32[32,32], index: 11, kind: input, shape index: {}]   ;;  %s6530_s12 = inlined_call_operand.vmem [shape: f32[1,32], index: 12, kind: input, shape index: {}]   ;;  %s6531_s13 = inlined_call_operand.vmem [shape: f32[32,6], index: 13, kind: input, shape index: {}]   ;;  %s6532_s14 = inlined_call_operand.vmem [shape: f32[1,6], index: 14, kind: input, shape index: {}]   ;;  %s6533_s15 = inlined_call_operand.vmem [shape: f32[2,1,6], index: 15, kind: output, shape index: {}]  }
   0x1 LB: > { %s3504_s19 = sadd.s32 4294967295, %s3600_s18   ;;  %p3508_p0 = scmp.ge.s32.totalorder %s3600_s18, 1  ;;  %s3600_s18 = sphi %s3683_s18, %s25_s18  }
   0x2   : > { %p437_p1 = scmp.lt.s32.totalorder %s3600_s18, 3 }
   0x4   : > { %p438_p2 = pnand %p3508_p0, %p437_p1 }
   0x5   : > { %p483_p3 = scmp.lt.s32.totalorder (!%p438_p2), %s3504_s19, 1  ;;  %s3602_s22 = smov (!%p438_p2), 64  }
   0x6   : > { %441 = sbr.rel (%p438_p2) target bundleno = 2233 (0x8b9), region = 80 }
   0xb   : > { %v3694_v0 = vld [vmem:[%s6519_s1 + $0x78] sm:$0xff]  ;;  %v3699_v1 = vld [vmem:[%s6519_s1 + $0x70] sm:$0xff]  ;;  %v3716_v4 = vld [vmem:[%s6519_s1 + $0x68] sm:$0xff]  ;;  %s6539_s19 = smov (!%p483_p3, %s3504_s19), 1 }
   0xc   : > { %v3704_v2 = vld [vmem:[%s6519_s1 + $0xf8] sm:$0xff]  ;;  %681 = vmatpush.msra.mxu2 %v3694_v0  ;;  %v3711_v3 = vld [vmem:[%s6519_s1 + $0xf0] sm:$0xff]  ;;  %543 = vmatpush.msra.mxu0 %v3694_v0  ;;  %v3722_v5 = vld [vmem:[%s6519_s1 + $0xe8] sm:$0xff]  ;;  %s3547_s20 = sshll.u32 %s6539_s19, 10  ;;  %s490_s24 = scalar_lea.vmem %s6533_s15, %s6539_s19 }
   0xd   : > { %722 = vmatpush.msra.mxu3 %v3704_v2  ;;  %584 = vmatpush.msra.mxu1 %v3704_v2  ;;  %v3730_v6 = vld [vmem:[%s6519_s1 + $0x60] sm:$0xff]  ;;  %v3744_v8 = vld [vmem:[%s6519_s1 + $0x58] sm:$0xff]  ;;  %v3758_v10 = vld [vmem:[%s6519_s1 + $0x50] sm:$0xff]  ;;  %s3902_s16 = scalar_lea.vmem %s6518_s0, %s3547_s20 }
   0xe   : > { %682 = vmatpush.msra.mxu2 %v3699_v1  ;;  %544 = vmatpush.msra.mxu0 %v3699_v1  ;;  %v3736_v7 = vld [vmem:[%s6519_s1 + $0xe0] sm:$0xff]  ;;  %v3750_v9 = vld [vmem:[%s6519_s1 + $0xd8] sm:$0xff]  ;;  %v3764_v11 = vld [vmem:[%s6519_s1 + $0xd0] sm:$0xff] }
   0xf   : > { %723 = vmatpush.msra.mxu3 %v3711_v3  ;;  %585 = vmatpush.msra.mxu1 %v3711_v3  ;;  %v3772_v12 = vld [vmem:[%s6519_s1 + $0x48] sm:$0xff]  ;;  %v3786_v14 = vld [vmem:[%s6519_s1 + $0x40] sm:$0xff]  ;;  %v3800_v16 = vld [vmem:[%s6519_s1 + $0x38] sm:$0xff] }
  0x10   : > { %683 = vmatpush.msra.mxu2 %v3716_v4  ;;  %545 = vmatpush.msra.mxu0 %v3716_v4  ;;  %v3778_v13 = vld [vmem:[%s6519_s1 + $0xc8] sm:$0xff]  ;;  %v3792_v15 = vld [vmem:[%s6519_s1 + $0xc0] sm:$0xff]  ;;  %v3805_v17 = vld [vmem:[%s6519_s1 + $0xb8] sm:$0xff] }
  0x11   : > { %724 = vmatpush.msra.mxu3 %v3722_v5  ;;  %586 = vmatpush.msra.mxu1 %v3722_v5  ;;  %v3816_v18 = vld [vmem:[%s6519_s1 + $0x30] sm:$0xff]  ;;  %v3830_v20 = vld [vmem:[%s6519_s1 + $0x28] sm:$0xff]  ;;  %v3848_v22 = vld [vmem:[%s6519_s1 + $0x20] sm:$0xff] }
  0x12   : > { %684 = vmatpush.msra.mxu2 %v3730_v6  ;;  %546 = vmatpush.msra.mxu0 %v3730_v6  ;;  %v3822_v19 = vld [vmem:[%s6519_s1 + $0xb0] sm:$0xff]  ;;  %v3836_v21 = vld [vmem:[%s6519_s1 + $0xa8] sm:$0xff]  ;;  %v3854_v23 = vld [vmem:[%s6519_s1 + $0xa0] sm:$0xff] }
  0x13   : > { %725 = vmatpush.msra.mxu3 %v3736_v7  ;;  %587 = vmatpush.msra.mxu1 %v3736_v7  ;;  %v3862_v24 = vld [vmem:[%s6519_s1 + $0x18] sm:$0xff]  ;;  %v3877_v26 = vld [vmem:[%s6519_s1 + $0x10] sm:$0xff]  ;;  %v3891_v28 = vld [vmem:[%s6519_s1 + $0x8] sm:$0xff] }
  0x14   : > { %685 = vmatpush.msra.mxu2 %v3744_v8  ;;  %547 = vmatpush.msra.mxu0 %v3744_v8  ;;  %v3868_v25 = vld [vmem:[%s6519_s1 + $0x98] sm:$0xff]  ;;  %v3883_v27 = vld [vmem:[%s6519_s1 + $0x90] sm:$0xff]  ;;  %v3897_v29 = vld [vmem:[%s6519_s1 + $0x88] sm:$0xff] }
  0x15   : > { %726 = vmatpush.msra.mxu3 %v3750_v9  ;;  %588 = vmatpush.msra.mxu1 %v3750_v9  ;;  %v3910_v30 = vld [vmem:[%s6519_s1] sm:$0xff]  ;;  %v666_v33 = vld [vmem:[%s3902_s16 + $0x108] sm:$0xff]  ;;  %v667_v36 = vld [vmem:[%s3902_s16 + $0x110] sm:$0xff] }
  0x16   : > { %686 = vmatpush.msra.mxu2 %v3758_v10  ;;  %548 = vmatpush.msra.mxu0 %v3758_v10  ;;  %v3916_v31 = vld [vmem:[%s6519_s1 + $0x80] sm:$0xff]  ;;  %v492_v35 = vld [vmem:[%s3902_s16 + $0x8] sm:$0xff]  ;;  %v668_v37 = vld [vmem:[%s3902_s16 + $0x118] sm:$0xff] }
  0x17   : > { %727 = vmatpush.msra.mxu3 %v3764_v11  ;;  %589 = vmatpush.msra.mxu1 %v3764_v11  ;;  %v665_v32 = vld [vmem:[%s3902_s16 + $0x100] sm:$0xff]  ;;  %v493_v38 = vld [vmem:[%s3902_s16 + $0x10] sm:$0xff]  ;;  %v494_v39 = vld [vmem:[%s3902_s16 + $0x18] sm:$0xff] }
  0x18   : > { %687 = vmatpush.msra.mxu2 %v3772_v12  ;;  %549 = vmatpush.msra.mxu0 %v3772_v12  ;;  %v491_v34 = vld [vmem:[%s3902_s16] sm:$0xff]  ;;  %v670_v41 = vld [vmem:[%s3902_s16 + $0x128] sm:$0xff]  ;;  %v671_v44 = vld [vmem:[%s3902_s16 + $0x130] sm:$0xff] }
  0x19   : > { %728 = vmatpush.msra.mxu3 %v3778_v13  ;;  %590 = vmatpush.msra.mxu1 %v3778_v13  ;;  %v669_v40 = vld [vmem:[%s3902_s16 + $0x120] sm:$0xff]  ;;  %v496_v43 = vld [vmem:[%s3902_s16 + $0x28] sm:$0xff]  ;;  %v672_v45 = vld [vmem:[%s3902_s16 + $0x138] sm:$0xff] }
  0x1a   : > { %688 = vmatpush.msra.mxu2 %v3786_v14  ;;  %550 = vmatpush.msra.mxu0 %v3786_v14  ;;  %v495_v42 = vld [vmem:[%s3902_s16 + $0x20] sm:$0xff]  ;;  %v497_v46 = vld [vmem:[%s3902_s16 + $0x30] sm:$0xff]  ;;  %v498_v47 = vld [vmem:[%s3902_s16 + $0x38] sm:$0xff] }
  0x1b   : > { %729 = vmatpush.msra.mxu3 %v3792_v15  ;;  %591 = vmatpush.msra.mxu1 %v3792_v15  ;;  %v3970_v48 = vld [vmem:[%s6521_s3 + $0xf8] sm:$0xff]  ;;  %v3982_v50 = vld [vmem:[%s6521_s3 + $0xf0] sm:$0xff]  ;;  %v3992_v52 = vld [vmem:[%s6521_s3 + $0xe8] sm:$0xff] }
  0x1c   : > { %689 = vmatpush.msra.mxu2 %v3800_v16  ;;  %551 = vmatpush.msra.mxu0 %v3800_v16  ;;  %v3975_v49 = vld [vmem:[%s6521_s3 + $0x78] sm:$0xff]  ;;  %v3987_v51 = vld [vmem:[%s6521_s3 + $0x70] sm:$0xff]  ;;  %v3997_v53 = vld [vmem:[%s6521_s3 + $0x68] sm:$0xff] }
  0x1d   : > { %730 = vmatpush.msra.mxu3 %v3805_v17  ;;  %592 = vmatpush.msra.mxu1 %v3805_v17  ;;  %v673_v54 = vld [vmem:[%s3902_s16 + $0x140] sm:$0xff]  ;;  %v674_v55 = vld [vmem:[%s3902_s16 + $0x148] sm:$0xff]  ;;  %v4024_v60 = vld [vmem:[%s6521_s3 + $0xd8] sm:$0xff] }
  0x1e   : > { %690 = vmatpush.msra.mxu2 %v3816_v18  ;;  %552 = vmatpush.msra.mxu0 %v3816_v18  ;;  %v4008_v56 = vld [vmem:[%s6521_s3 + $0xe0] sm:$0xff]  ;;  %v500_v59 = vld [vmem:[%s3902_s16 + $0x48] sm:$0xff]  ;;  %v4029_v61 = vld [vmem:[%s6521_s3 + $0x58] sm:$0xff] }
  0x1f   : > { %731 = vmatpush.msra.mxu3 %v3822_v19  ;;  %593 = vmatpush.msra.mxu1 %v3822_v19  ;;  %v4013_v57 = vld [vmem:[%s6521_s3 + $0x60] sm:$0xff]  ;;  %v4036_v62 = vld [vmem:[%s6521_s3 + $0xd0] sm:$0xff] }
  0x20   : > { %691 = vmatpush.msra.mxu2 %v3830_v20  ;;  %553 = vmatpush.msra.mxu0 %v3830_v20  ;;  %v499_v58 = vld [vmem:[%s3902_s16 + $0x40] sm:$0xff]  ;;  %v4041_v63 = vld [vmem:[%s6521_s3 + $0x50] sm:$0xff] }
  0x21   : > { %732 = vmatpush.msra.mxu3 %v3836_v21  ;;  %594 = vmatpush.msra.mxu1 %v3836_v21 }
  0x22   : > { %692 = vmatpush.msra.mxu2 %v3848_v22  ;;  %554 = vmatpush.msra.mxu0 %v3848_v22 }
  0x23   : > { %733 = vmatpush.msra.mxu3 %v3854_v23  ;;  %595 = vmatpush.msra.mxu1 %v3854_v23 }
  0x24   : > { %693 = vmatpush.msra.mxu2 %v3862_v24  ;;  %555 = vmatpush.msra.mxu0 %v3862_v24 }
  0x25   : > { %734 = vmatpush.msra.mxu3 %v3868_v25  ;;  %596 = vmatpush.msra.mxu1 %v3868_v25 }
  0x26   : > { %694 = vmatpush.msra.mxu2 %v3877_v26  ;;  %556 = vmatpush.msra.mxu0 %v3877_v26 }
  0x27   : > { %735 = vmatpush.msra.mxu3 %v3883_v27  ;;  %597 = vmatpush.msra.mxu1 %v3883_v27 }
  0x28   : > { %695 = vmatpush.msra.mxu2 %v3891_v28  ;;  %557 = vmatpush.msra.mxu0 %v3891_v28 }
  0x29   : > { %736 = vmatpush.msra.mxu3 %v3897_v29  ;;  %598 = vmatpush.msra.mxu1 %v3897_v29 }
  0x2a   : > { %696 = vmatpush.msra.mxu2 %v3910_v30  ;;  %558 = vmatpush.msra.mxu0 %v3910_v30 }
  0x2b   : > { %737 = vmatpush.msra.mxu3 %v3916_v31  ;;  %697 = vmatmul.f32.vlgmr.msra.gmra.mxu2 %v665_v32  ;;  %v4048_v32 = vld [vmem:[%s6521_s3 + $0xc8] sm:$0xff] }
  0x2c   : > { %738 = vmatmul.f32.vlgmr.msra.gmra.mxu3 %v666_v33  ;;  %599 = vmatpush.msra.mxu1 %v3916_v31  ;;  %v4053_v33 = vld [vmem:[%s6521_s3 + $0x48] sm:$0xff] }
  0x2d   : > { %559 = vmatmul.f32.vlgmr.msra.gmra.mxu0 %v491_v34  ;;  %600 = vmatmul.f32.vlgmr.msra.gmra.mxu1 %v492_v35  ;;  %v675_v34 = vld [vmem:[%s3902_s16 + $0x150] sm:$0xff]  ;;  %v676_v35 = vld [vmem:[%s3902_s16 + $0x158] sm:$0xff] }
  0x2e   : > { %902 = vmatpush.msrb.mxu2 %v3694_v0  ;;  %943 = vmatpush.msrb.mxu3 %v3704_v2 }
  0x2f   : > { %804 = vmatpush.msrb.mxu0 %v3970_v48  ;;  %845 = vmatpush.msrb.mxu1 %v3975_v49 }
  0x30   : > { %903 = vmatpush.msrb.mxu2 %v3699_v1  ;;  %944 = vmatpush.msrb.mxu3 %v3711_v3 }
  0x31   : > { %805 = vmatpush.msrb.mxu0 %v3982_v50  ;;  %846 = vmatpush.msrb.mxu1 %v3987_v51 }
  0x32   : > { %904 = vmatpush.msrb.mxu2 %v3716_v4  ;;  %945 = vmatpush.msrb.mxu3 %v3722_v5 }
  0x33   : > { %700 = vmatmul.f32.gmra.mxu2 %v667_v36  ;;  %806 = vmatpush.msrb.mxu0 %v3992_v52  ;;  %v3519_v36 = vld [vmem:[%s6521_s3 + $0xc0] sm:$0xff] }
  0x34   : > { %741 = vmatmul.f32.gmra.mxu3 %v668_v37  ;;  %905 = vmatpush.msrb.mxu2 %v3730_v6  ;;  %v657_v37 = vld [vmem:[%s6521_s3 + $0x40] sm:$0xff] }
  0x35   : > { %946 = vmatpush.msrb.mxu3 %v3736_v7  ;;  %562 = vmatmul.f32.gmra.mxu0 %v493_v38  ;;  %v501_v38 = vld [vmem:[%s3902_s16 + $0x50] sm:$0xff] }
  0x36   : > { %603 = vmatmul.f32.gmra.mxu1 %v494_v39  ;;  %906 = vmatpush.msrb.mxu2 %v3744_v8  ;;  %v502_v39 = vld [vmem:[%s3902_s16 + $0x58] sm:$0xff] }
  0x37   : > { %947 = vmatpush.msrb.mxu3 %v3750_v9  ;;  %847 = vmatpush.msrb.mxu1 %v3997_v53 }
  0x38   : > { %907 = vmatpush.msrb.mxu2 %v3758_v10  ;;  %807 = vmatpush.msrb.mxu0 %v4008_v56 }
  0x39   : > { %948 = vmatpush.msrb.mxu3 %v3764_v11  ;;  %848 = vmatpush.msrb.mxu1 %v4013_v57 }
  0x3a   : > { %908 = vmatpush.msrb.mxu2 %v3772_v12  ;;  %808 = vmatpush.msrb.mxu0 %v4024_v60 }
  0x3b   : > { %949 = vmatpush.msrb.mxu3 %v3778_v13  ;;  %703 = vmatmul.f32.gmra.mxu2 %v669_v40  ;;  %v3518_v40 = vld [vmem:[%s6521_s3 + $0xb8] sm:$0xff] }
  0x3c   : > { %744 = vmatmul.f32.gmra.mxu3 %v670_v41  ;;  %909 = vmatpush.msrb.mxu2 %v3786_v14  ;;  %v656_v41 = vld [vmem:[%s6521_s3 + $0x38] sm:$0xff] }
  0x3d   : > { %950 = vmatpush.msrb.mxu3 %v3792_v15  ;;  %565 = vmatmul.f32.gmra.mxu0 %v495_v42  ;;  %v3517_v42 = vld [vmem:[%s6521_s3 + $0xb0] sm:$0xff] }
  0x3e   : > { %606 = vmatmul.f32.gmra.mxu1 %v496_v43  ;;  %910 = vmatpush.msrb.mxu2 %v3800_v16  ;;  %v655_v43 = vld [vmem:[%s6521_s3 + $0x30] sm:$0xff] }
  0x3f   : > { %951 = vmatpush.msrb.mxu3 %v3805_v17  ;;  %849 = vmatpush.msrb.mxu1 %v4029_v61 }
  0x40   : > { %911 = vmatpush.msrb.mxu2 %v3816_v18  ;;  %809 = vmatpush.msrb.mxu0 %v4036_v62 }
  0x41   : > { %952 = vmatpush.msrb.mxu3 %v3822_v19  ;;  %850 = vmatpush.msrb.mxu1 %v4041_v63 }
  0x42   : > { %912 = vmatpush.msrb.mxu2 %v3830_v20  ;;  %810 = vmatpush.msrb.mxu0 %v4048_v32 }
  0x43   : > { %953 = vmatpush.msrb.mxu3 %v3836_v21  ;;  %706 = vmatmul.f32.gmra.mxu2 %v671_v44  ;;  %v3516_v44 = vld [vmem:[%s6521_s3 + $0xa8] sm:$0xff] }
  0x44   : > { %747 = vmatmul.f32.gmra.mxu3 %v672_v45  ;;  %913 = vmatpush.msrb.mxu2 %v3848_v22  ;;  %v654_v45 = vld [vmem:[%s6521_s3 + $0x28] sm:$0xff] }
  0x45   : > { %954 = vmatpush.msrb.mxu3 %v3854_v23  ;;  %568 = vmatmul.f32.gmra.mxu0 %v497_v46  ;;  %v677_v46 = vld [vmem:[%s3902_s16 + $0x160] sm:$0xff] }
  0x46   : > { %609 = vmatmul.f32.gmra.mxu1 %v498_v47  ;;  %914 = vmatpush.msrb.mxu2 %v3862_v24  ;;  %v678_v47 = vld [vmem:[%s3902_s16 + $0x168] sm:$0xff] }
  0x47   : > { %955 = vmatpush.msrb.mxu3 %v3868_v25  ;;  %851 = vmatpush.msrb.mxu1 %v4053_v33 }
  0x48   : > { %915 = vmatpush.msrb.mxu2 %v3877_v26  ;;  %811 = vmatpush.msrb.mxu0 %v3519_v36 }
  0x49   : > { %956 = vmatpush.msrb.mxu3 %v3883_v27  ;;  %852 = vmatpush.msrb.mxu1 %v657_v37 }
  0x4a   : > { %916 = vmatpush.msrb.mxu2 %v3891_v28  ;;  %812 = vmatpush.msrb.mxu0 %v3518_v40 }
  0x4b   : > { %709 = vmatmul.f32.gmra.mxu2 %v673_v54  ;;  %957 = vmatpush.msrb.mxu3 %v3897_v29  ;;  %v3515_v54 = vld [vmem:[%s6521_s3 + $0xa0] sm:$0xff] }
  0x4c   : > { %750 = vmatmul.f32.gmra.mxu3 %v674_v55  ;;  %917 = vmatpush.msrb.mxu2 %v3910_v30  ;;  %v653_v55 = vld [vmem:[%s6521_s3 + $0x20] sm:$0xff] }
  0x4d   : > { %571 = vmatmul.f32.gmra.mxu0 %v499_v58  ;;  %958 = vmatpush.msrb.mxu3 %v3916_v31  ;;  %v679_v58 = vld [vmem:[%s3902_s16 + $0x170] sm:$0xff] }
  0x4e   : > { %612 = vmatmul.f32.gmra.mxu1 %v500_v59  ;;  %1130 = vmatpush.msra.mxu2 %v3970_v48  ;;  %v503_v48 = vld [vmem:[%s3902_s16 + $0x60] sm:$0xff]  ;;  %v506_v59 = vld [vmem:[%s3902_s16 + $0x78] sm:$0xff] }
  0x4f   : > { %853 = vmatpush.msrb.mxu1 %v656_v41  ;;  %1171 = vmatpush.msra.mxu3 %v3975_v49  ;;  %v504_v49 = vld [vmem:[%s3902_s16 + $0x68] sm:$0xff] }
  0x50   : > { %813 = vmatpush.msrb.mxu0 %v3517_v42  ;;  %1131 = vmatpush.msra.mxu2 %v3982_v50  ;;  %v680_v50 = vld [vmem:[%s3902_s16 + $0x178] sm:$0xff] }
  0x51   : > { %854 = vmatpush.msrb.mxu1 %v655_v43  ;;  %1172 = vmatpush.msra.mxu3 %v3987_v51  ;;  %v505_v51 = vld [vmem:[%s3902_s16 + $0x70] sm:$0xff] }
  0x52   : > { %814 = vmatpush.msrb.mxu0 %v3516_v44  ;;  %1132 = vmatpush.msra.mxu2 %v3992_v52  ;;  %v3514_v52 = vld [vmem:[%s6521_s3 + $0x98] sm:$0xff] }
  0x53   : > { %712 = vmatmul.f32.gmra.mxu2 %v675_v34  ;;  %855 = vmatpush.msrb.mxu1 %v654_v45 }
  0x54   : > { %753 = vmatmul.f32.gmra.mxu3 %v676_v35  ;;  %815 = vmatpush.msrb.mxu0 %v3515_v54 }
  0x55   : > { %574 = vmatmul.f32.gmra.mxu0 %v501_v38  ;;  %856 = vmatpush.msrb.mxu1 %v653_v55 }
  0x56   : > { %615 = vmatmul.f32.gmra.mxu1 %v502_v39  ;;  %1173 = vmatpush.msra.mxu3 %v3997_v53  ;;  %v652_v53 = vld [vmem:[%s6521_s3 + $0x18] sm:$0xff] }
  0x57   : > { %1133 = vmatpush.msra.mxu2 %v4008_v56  ;;  %816 = vmatpush.msrb.mxu0 %v3514_v52  ;;  %v3513_v56 = vld [vmem:[%s6521_s3 + $0x90] sm:$0xff] }
  0x58   : > { %1174 = vmatpush.msra.mxu3 %v4013_v57  ;;  %857 = vmatpush.msrb.mxu1 %v652_v53  ;;  %v651_v57 = vld [vmem:[%s6521_s3 + $0x10] sm:$0xff] }
  0x59   : > { %1134 = vmatpush.msra.mxu2 %v4024_v60  ;;  %817 = vmatpush.msrb.mxu0 %v3513_v56  ;;  %v3512_v60 = vld [vmem:[%s6521_s3 + $0x88] sm:$0xff] }
  0x5a   : > { %1175 = vmatpush.msra.mxu3 %v4029_v61  ;;  %858 = vmatpush.msrb.mxu1 %v651_v57  ;;  %v650_v61 = vld [vmem:[%s6521_s3 + $0x8] sm:$0xff] }
  0x5b   : > { %715 = vmatmul.f32.gmra.mxu2 %v677_v46  ;;  %818 = vmatpush.msrb.mxu0 %v3512_v60 }
  0x5c   : > { %756 = vmatmul.f32.gmra.mxu3 %v678_v47  ;;  %1135 = vmatpush.msra.mxu2 %v4036_v62  ;;  %v3511_v62 = vld [vmem:[%s6521_s3 + $0x80] sm:$0xff] }
  0x5d   : > { %577 = vmatmul.f32.gmra.mxu0 %v503_v48  ;;  %1176 = vmatpush.msra.mxu3 %v4041_v63  ;;  %v649_v63 = vld [vmem:[%s6521_s3] sm:$0xff] }
  0x5e   : > { %618 = vmatmul.f32.gmra.mxu1 %v504_v49  ;;  %1136 = vmatpush.msra.mxu2 %v4048_v32 }
  0x5f   : > { %1177 = vmatpush.msra.mxu3 %v4053_v33  ;;  %859 = vmatpush.msrb.mxu1 %v650_v61 }
  0x60   : > { %1137 = vmatpush.msra.mxu2 %v3519_v36  ;;  %819 = vmatpush.msrb.mxu0 %v3511_v62 }
  0x61   : > { %1178 = vmatpush.msra.mxu3 %v657_v37  ;;  %860 = vmatpush.msrb.mxu1 %v649_v63 }
  0x62   : > { %1138 = vmatpush.msra.mxu2 %v3518_v40  ;;  %1024 = vmatpush.msra.mxu0 %v3694_v0  ;;  %v4164_v0 = vld [vmem:[%s6520_s2] ss:$0 sm:$0xff] }
  0x63   : > { %718 = vmatmul.f32.gmra.mxu2 %v679_v58  ;;  %1179 = vmatpush.msra.mxu3 %v656_v41 }
  0x64   : > { %759 = vmatmul.f32.gmra.mxu3 %v680_v50  ;;  %1139 = vmatpush.msra.mxu2 %v3517_v42 }
  0x65   : > { %580 = vmatmul.f32.gmra.mxu0 %v505_v51  ;;  %1180 = vmatpush.msra.mxu3 %v655_v43 }
  0x66   : > { %621 = vmatmul.f32.gmra.mxu1 %v506_v59  ;;  %1140 = vmatpush.msra.mxu2 %v3516_v44  ;;  %v886_v59 = vld [vmem:[%s3902_s16 + $0x200] sm:$0xff] }
  0x67   : > { %1181 = vmatpush.msra.mxu3 %v654_v45  ;;  %1065 = vmatpush.msra.mxu1 %v3704_v2 }
  0x68   : > { %1141 = vmatpush.msra.mxu2 %v3515_v54  ;;  %1025 = vmatpush.msra.mxu0 %v3699_v1 }
  0x69   : > { %1182 = vmatpush.msra.mxu3 %v653_v55  ;;  %1066 = vmatpush.msra.mxu1 %v3711_v3 }
  0x6a   : > { %1142 = vmatpush.msra.mxu2 %v3514_v52  ;;  %1026 = vmatpush.msra.mxu0 %v3716_v4  ;;  %v887_v52 = vld [vmem:[%s3902_s16 + $0x208] sm:$0xff] }
  0x6b   : > { %1183 = vmatpush.msra.mxu3 %v652_v53  ;;  %1067 = vmatpush.msra.mxu1 %v3722_v5 }
  0x6c   : > { %1143 = vmatpush.msra.mxu2 %v3513_v56  ;;  %1027 = vmatpush.msra.mxu0 %v3730_v6 }
  0x6d   : > { %1184 = vmatpush.msra.mxu3 %v651_v57  ;;  %1068 = vmatpush.msra.mxu1 %v3736_v7 }
  0x6e   : > { %1144 = vmatpush.msra.mxu2 %v3512_v60  ;;  %1028 = vmatpush.msra.mxu0 %v3744_v8 }
  0x6f   : > { %1185 = vmatpush.msra.mxu3 %v650_v61  ;;  %1069 = vmatpush.msra.mxu1 %v3750_v9 }
  0x70   : > { %1145 = vmatpush.msra.mxu2 %v3511_v62  ;;  %1029 = vmatpush.msra.mxu0 %v3758_v10 }
  0x71   : > { %1186 = vmatpush.msra.mxu3 %v649_v63  ;;  %1070 = vmatpush.msra.mxu1 %v3764_v11 }
  0x72   : > { %1030 = vmatpush.msra.mxu0 %v3772_v12  ;;  %918 = vmatmul.f32.vlgmr.msrb.gmra.mxu2 %v886_v59  ;;  %v901_v59 = vld [vmem:[%s3902_s16 + $0x278] sm:$0xff] }
  0x73   : > { %1071 = vmatpush.msra.mxu1 %v3778_v13  ;;  %959 = vmatmul.f32.vlgmr.msrb.gmra.mxu3 %v887_v52  ;;  %v1015_v52 = vld [vmem:[%s3902_s16 + $0x338] sm:$0xff] }
  0x74   : > { %1031 = vmatpush.msra.mxu0 %v3786_v14 }
  0x75   : > { %1072 = vmatpush.msra.mxu1 %v3792_v15 }
  0x76   : > { %1032 = vmatpush.msra.mxu0 %v3800_v16 }
  0x77   : > { %1073 = vmatpush.msra.mxu1 %v3805_v17 }
  0x78   : > { %1033 = vmatpush.msra.mxu0 %v3816_v18 }
  0x79   : > { %1074 = vmatpush.msra.mxu1 %v3822_v19 }
  0x7a   : > { %1034 = vmatpush.msra.mxu0 %v3830_v20 }
  0x7b   : > { %1075 = vmatpush.msra.mxu1 %v3836_v21 }
  0x7c   : > { %1035 = vmatpush.msra.mxu0 %v3848_v22 }
  0x7d   : > { %1076 = vmatpush.msra.mxu1 %v3854_v23 }
  0x7e   : > { %1036 = vmatpush.msra.mxu0 %v3862_v24 }
  0x7f   : > { %1077 = vmatpush.msra.mxu1 %v3868_v25 }
  0x80   : > { %1037 = vmatpush.msra.mxu0 %v3877_v26 }
  0x81   : > { %1078 = vmatpush.msra.mxu1 %v3883_v27 }
  0x82   : > { %1038 = vmatpush.msra.mxu0 %v3891_v28 }
  0x83   : > { %1079 = vmatpush.msra.mxu1 %v3897_v29 }
  0x84   : > { %1039 = vmatpush.msra.mxu0 %v3910_v30 }
  0x85   : > { %1080 = vmatpush.msra.mxu1 %v3916_v31 }
  0xaa   : > { %v560_v1 = vpop.f32.mrf.mxu0  ;;  %v601_v2 = vpop.f32.mrf.mxu1 }
  0xab   : > { %v561_v3 = vadd.f32 %v4164_v0, %v560_v1 }
  0xad   : > { %v602_v4 = vadd.f32 %v601_v2, %v561_v3 }
  0xae   : > { %v698_v5 = vpop.f32.mrf.mxu2 }
  0xaf   : > { %v739_v6 = vpop.f32.mrf.mxu3  ;;  %v699_v7 = vadd.f32 %v4164_v0, %v698_v5  ;;  %vm625_vm0 = vcmp.ge.f32.partialorder %v602_v4, 0.0  ;;  %v633_v8 = vmul.f32 0.01, %v602_v4 }
  0xb1   : > { %v740_v9 = vadd.f32 %v739_v6, %v699_v7  ;;  %v641_v10 = vsel %vm625_vm0, %v602_v4, %v633_v8  ;;  %v888_v6 = vld [vmem:[%s3902_s16 + $0x210] sm:$0xff]  ;;  %v889_v7 = vld [vmem:[%s3902_s16 + $0x218] sm:$0xff] }
  0xb2   : > { %v563_v11 = vpop.f32.mrf.mxu0  ;;  %861 = vmatmul.f32.vlgmr.msrb.gmra.mxu1 %v641_v10  ;;  %921 = vmatmul.f32.gmra.mxu2 %v888_v6 }
  0xb3   : > { %v604_v12 = vpop.f32.mrf.mxu1  ;;  %v564_v13 = vadd.f32 %v4164_v0, %v563_v11  ;;  %vm763_vm1 = vcmp.ge.f32.partialorder %v740_v9, 0.0  ;;  %v771_v14 = vmul.f32 0.01, %v740_v9  ;;  %962 = vmatmul.f32.gmra.mxu3 %v889_v7 }
  0xb5   : > { %v779_v15 = vsel %vm763_vm1, %v740_v9, %v771_v14  ;;  %v605_v16 = vadd.f32 %v604_v12, %v564_v13 }
  0xb6   : > { %v701_v17 = vpop.f32.mrf.mxu2  ;;  %820 = vmatmul.f32.vlgmr.msrb.gmra.mxu0 %v779_v15 }
  0xb7   : > { %v742_v18 = vpop.f32.mrf.mxu3  ;;  %v702_v19 = vadd.f32 %v4164_v0, %v701_v17  ;;  %vm626_vm2 = vcmp.ge.f32.partialorder %v605_v16, 0.0  ;;  %v634_v20 = vmul.f32 0.01, %v605_v16 }
  0xb9   : > { %v743_v21 = vadd.f32 %v742_v18, %v702_v19  ;;  %v642_v22 = vsel %vm626_vm2, %v605_v16, %v634_v20  ;;  %v890_v20 = vld [vmem:[%s3902_s16 + $0x220] sm:$0xff] }
  0xba   : > { %v566_v23 = vpop.f32.mrf.mxu0  ;;  %864 = vmatmul.f32.gmra.mxu1 %v642_v22  ;;  %924 = vmatmul.f32.gmra.mxu2 %v890_v20 }
  0xbb   : > { %v607_v24 = vpop.f32.mrf.mxu1  ;;  %v567_v25 = vadd.f32 %v4164_v0, %v566_v23  ;;  %vm764_vm3 = vcmp.ge.f32.partialorder %v743_v21, 0.0  ;;  %v772_v26 = vmul.f32 0.01, %v743_v21 }
  0xbd   : > { %v780_v27 = vsel %vm764_vm3, %v743_v21, %v772_v26  ;;  %v608_v28 = vadd.f32 %v607_v24, %v567_v25  ;;  %v891_v21 = vld [vmem:[%s3902_s16 + $0x228] sm:$0xff] }
  0xbe   : > { %v704_v29 = vpop.f32.mrf.mxu2  ;;  %823 = vmatmul.f32.gmra.mxu0 %v780_v27  ;;  %965 = vmatmul.f32.gmra.mxu3 %v891_v21 }
  0xbf   : > { %v745_v30 = vpop.f32.mrf.mxu3  ;;  %v705_v31 = vadd.f32 %v4164_v0, %v704_v29  ;;  %vm627_vm4 = vcmp.ge.f32.partialorder %v608_v28, 0.0  ;;  %v635_v32 = vmul.f32 0.01, %v608_v28 }
  0xc1   : > { %v746_v33 = vadd.f32 %v745_v30, %v705_v31  ;;  %v643_v34 = vsel %vm627_vm4, %v608_v28, %v635_v32 }
  0xc2   : > { %v569_v35 = vpop.f32.mrf.mxu0  ;;  %867 = vmatmul.f32.gmra.mxu1 %v643_v34  ;;  %v892_v34 = vld [vmem:[%s3902_s16 + $0x230] sm:$0xff] }
  0xc3   : > { %v610_v36 = vpop.f32.mrf.mxu1  ;;  %v570_v37 = vadd.f32 %v4164_v0, %v569_v35  ;;  %vm765_vm5 = vcmp.ge.f32.partialorder %v746_v33, 0.0  ;;  %v773_v38 = vmul.f32 0.01, %v746_v33  ;;  %v893_v35 = vld [vmem:[%s3902_s16 + $0x238] sm:$0xff]  ;;  %927 = vmatmul.f32.gmra.mxu2 %v892_v34 }
  0xc5   : > { %v781_v39 = vsel %vm765_vm5, %v746_v33, %v773_v38  ;;  %v611_v40 = vadd.f32 %v610_v36, %v570_v37 }
  0xc6   : > { %v707_v41 = vpop.f32.mrf.mxu2  ;;  %826 = vmatmul.f32.gmra.mxu0 %v781_v39  ;;  %968 = vmatmul.f32.gmra.mxu3 %v893_v35 }
  0xc7   : > { %v748_v42 = vpop.f32.mrf.mxu3  ;;  %v708_v43 = vadd.f32 %v4164_v0, %v707_v41  ;;  %vm628_vm6 = vcmp.ge.f32.partialorder %v611_v40, 0.0  ;;  %v636_v44 = vmul.f32 0.01, %v611_v40 }
  0xc9   : > { %v749_v45 = vadd.f32 %v748_v42, %v708_v43  ;;  %v644_v46 = vsel %vm628_vm6, %v611_v40, %v636_v44  ;;  %v894_v42 = vld [vmem:[%s3902_s16 + $0x240] sm:$0xff]  ;;  %v895_v43 = vld [vmem:[%s3902_s16 + $0x248] sm:$0xff] }
  0xca   : > { %v572_v47 = vpop.f32.mrf.mxu0  ;;  %870 = vmatmul.f32.gmra.mxu1 %v644_v46  ;;  %v1009_v44 = vld [vmem:[%s3902_s16 + $0x308] sm:$0xff]  ;;  %v896_v46 = vld [vmem:[%s3902_s16 + $0x250] sm:$0xff] }
  0xcb   : > { %v613_v54 = vpop.f32.mrf.mxu1  ;;  %v573_v55 = vadd.f32 %v4164_v0, %v572_v47  ;;  %vm766_vm7 = vcmp.ge.f32.partialorder %v749_v45, 0.0  ;;  %v774_v48 = vmul.f32 0.01, %v749_v45  ;;  %930 = vmatmul.f32.gmra.mxu2 %v894_v42  ;;  %v897_v47 = vld [vmem:[%s3902_s16 + $0x258] sm:$0xff] }
  0xcd   : > { %v782_v49 = vsel %vm766_vm7, %v749_v45, %v774_v48  ;;  %v614_v58 = vadd.f32 %v613_v54, %v573_v55  ;;  %v1008_v45 = vld [vmem:[%s3902_s16 + $0x300] sm:$0xff]  ;;  %v1011_v54 = vld [vmem:[%s3902_s16 + $0x318] sm:$0xff]  ;;  %v1010_v55 = vld [vmem:[%s3902_s16 + $0x310] sm:$0xff] }
  0xce   : > { %v710_v50 = vpop.f32.mrf.mxu2  ;;  %829 = vmatmul.f32.gmra.mxu0 %v782_v49  ;;  %971 = vmatmul.f32.gmra.mxu3 %v895_v43  ;;  %v898_v48 = vld [vmem:[%s3902_s16 + $0x260] sm:$0xff]  ;;  %v899_v49 = vld [vmem:[%s3902_s16 + $0x268] sm:$0xff] }
  0xcf   : > { %v751_v51 = vpop.f32.mrf.mxu3  ;;  %v711_v53 = vadd.f32 %v4164_v0, %v710_v50  ;;  %vm629_vm8 = vcmp.ge.f32.partialorder %v614_v58, 0.0  ;;  %v637_v56 = vmul.f32 0.01, %v614_v58  ;;  %v1012_v50 = vld [vmem:[%s3902_s16 + $0x320] sm:$0xff] }
  0xd1   : > { %v752_v57 = vadd.f32 %v751_v51, %v711_v53  ;;  %v645_v60 = vsel %vm629_vm8, %v614_v58, %v637_v56  ;;  %v1013_v58 = vld [vmem:[%s3902_s16 + $0x328] sm:$0xff]  ;;  %v900_v51 = vld [vmem:[%s3902_s16 + $0x270] sm:$0xff] }
  0xd2   : > { %v575_v61 = vpop.f32.mrf.mxu0  ;;  %873 = vmatmul.f32.gmra.mxu1 %v645_v60  ;;  %v1014_v53 = vld [vmem:[%s3902_s16 + $0x330] sm:$0xff]  ;;  %v1017_v56 = vld [vmem:[%s3902_s16 + $0x348] sm:$0xff]  ;;  %v1019_v60 = vld [vmem:[%s3902_s16 + $0x358] sm:$0xff] }
  0xd3   : > { %v616_v62 = vpop.f32.mrf.mxu1  ;;  %v576_v63 = vadd.f32 %v4164_v0, %v575_v61  ;;  %vm767_vm9 = vcmp.ge.f32.partialorder %v752_v57, 0.0  ;;  %v775_v1 = vmul.f32 0.01, %v752_v57  ;;  %933 = vmatmul.f32.gmra.mxu2 %v896_v46  ;;  %v1018_v61 = vld [vmem:[%s3902_s16 + $0x350] sm:$0xff] }
  0xd5   : > { %v783_v2 = vsel %vm767_vm9, %v752_v57, %v775_v1  ;;  %v617_v3 = vadd.f32 %v616_v62, %v576_v63  ;;  %v1016_v57 = vld [vmem:[%s3902_s16 + $0x340] sm:$0xff]  ;;  %v1021_v62 = vld [vmem:[%s3902_s16 + $0x368] sm:$0xff]  ;;  %v1023_v1 = vld [vmem:[%s3902_s16 + $0x378] sm:$0xff] }
  0xd6   : > { %v713_v4 = vpop.f32.mrf.mxu2  ;;  %832 = vmatmul.f32.gmra.mxu0 %v783_v2  ;;  %974 = vmatmul.f32.gmra.mxu3 %v897_v47  ;;  %v1020_v63 = vld [vmem:[%s3902_s16 + $0x360] sm:$0xff]  ;;  %v1022_v2 = vld [vmem:[%s3902_s16 + $0x370] sm:$0xff] }
  0xd7   : > { %v754_v5 = vpop.f32.mrf.mxu3  ;;  %v714_v8 = vadd.f32 %v4164_v0, %v713_v4  ;;  %vm630_vm10 = vcmp.ge.f32.partialorder %v617_v3, 0.0  ;;  %v638_v9 = vmul.f32 0.01, %v617_v3 }
  0xd9   : > { %v755_v10 = vadd.f32 %v754_v5, %v714_v8  ;;  %v646_v11 = vsel %vm630_vm10, %v617_v3, %v638_v9 }
  0xda   : > { %v578_v12 = vpop.f32.mrf.mxu0  ;;  %876 = vmatmul.f32.gmra.mxu1 %v646_v11 }
  0xdb   : > { %v619_v13 = vpop.f32.mrf.mxu1  ;;  %v579_v14 = vadd.f32 %v4164_v0, %v578_v12  ;;  %vm768_vm11 = vcmp.ge.f32.partialorder %v755_v10, 0.0  ;;  %v776_v15 = vmul.f32 0.01, %v755_v10  ;;  %936 = vmatmul.f32.gmra.mxu2 %v898_v48 }
  0xdd   : > { %v784_v16 = vsel %vm768_vm11, %v755_v10, %v776_v15  ;;  %v620_v17 = vadd.f32 %v619_v13, %v579_v14 }
  0xde   : > { %v716_v18 = vpop.f32.mrf.mxu2  ;;  %835 = vmatmul.f32.gmra.mxu0 %v784_v16  ;;  %977 = vmatmul.f32.gmra.mxu3 %v899_v49  ;;  %v4269_v49 = vld [vmem:[%s6519_s1 + $0x78] sm:$0xff] }
  0xdf   : > { %v757_v19 = vpop.f32.mrf.mxu3  ;;  %v717_v22 = vadd.f32 %v4164_v0, %v716_v18  ;;  %vm631_vm12 = vcmp.ge.f32.partialorder %v620_v17, 0.0  ;;  %v639_v23 = vmul.f32 0.01, %v620_v17  ;;  %1471 = vmatpush.msrb.mxu2 %v4269_v49  ;;  %1333 = vmatpush.msrb.mxu0 %v4269_v49 }
  0xe1   : > { %v758_v24 = vadd.f32 %v757_v19, %v717_v22  ;;  %v647_v25 = vsel %vm631_vm12, %v620_v17, %v639_v23 }
  0xe2   : > { %v581_v26 = vpop.f32.mrf.mxu0  ;;  %879 = vmatmul.f32.gmra.mxu1 %v647_v25 }
  0xe3   : > { %v622_v27 = vpop.f32.mrf.mxu1  ;;  %v582_v28 = vadd.f32 %v4164_v0, %v581_v26  ;;  %vm769_vm13 = vcmp.ge.f32.partialorder %v758_v24, 0.0  ;;  %v777_v29 = vmul.f32 0.01, %v758_v24  ;;  %939 = vmatmul.f32.gmra.mxu2 %v900_v51 }
  0xe5   : > { %v785_v30 = vsel %vm769_vm13, %v758_v24, %v777_v29  ;;  %v623_v31 = vadd.f32 %v622_v27, %v582_v28 }
  0xe6   : > { %v719_v32 = vpop.f32.mrf.mxu2  ;;  %838 = vmatmul.f32.gmra.mxu0 %v785_v30  ;;  %980 = vmatmul.f32.gmra.mxu3 %v901_v59 }
  0xe7   : > { %v760_v33 = vpop.f32.mrf.mxu3  ;;  %v720_v36 = vadd.f32 %v4164_v0, %v719_v32  ;;  %vm632_vm14 = vcmp.ge.f32.partialorder %v623_v31, 0.0  ;;  %v640_v37 = vmul.f32 0.01, %v623_v31 }
  0xe9   : > { %v761_v38 = vadd.f32 %v760_v33, %v720_v36  ;;  %v648_v39 = vsel %vm632_vm14, %v623_v31, %v640_v37 }
  0xea   : > { %882 = vmatmul.f32.gmra.mxu1 %v648_v39 }
  0xeb   : > { %vm770_vm15 = vcmp.ge.f32.partialorder %v761_v38, 0.0  ;;  %v778_v40 = vmul.f32 0.01, %v761_v38 }
  0xed   : > { %v786_v41 = vsel %vm770_vm15, %v761_v38, %v778_v40 }
  0xee   : > { %841 = vmatmul.f32.gmra.mxu0 %v786_v41 }
  0xf2   : > { %1081 = vmatmul.f32.vlgmr.msra.gmra.mxu1 %v1009_v44 }
  0xf5   : > { %v919_v12 = vpop.f32.mrf.mxu2 }
  0xf6   : > { %1040 = vmatmul.f32.vlgmr.msra.gmra.mxu0 %v1008_v45  ;;  %v920_v14 = vadd.f32 %v4164_v0, %v919_v12  ;;  %v960_v15 = vpop.f32.mrf.mxu3  ;;  %v4291_v12 = vld [vmem:[%s6519_s1 + $0xf0] sm:$0xff] }
  0xf8   : > { %v961_v16 = vadd.f32 %v960_v15, %v920_v14  ;;  %v4296_v14 = vld [vmem:[%s6519_s1 + $0x68] sm:$0xff] }
  0xfa   : > { %1084 = vmatmul.f32.gmra.mxu1 %v1011_v54  ;;  %v992_v18 = vmul.f32 0.01, %v961_v16  ;;  %vm984_vm0 = vcmp.ge.f32.partialorder %v961_v16, 0.0 }
  0xfc   : > { %v1000_v20 = vsel %vm984_vm0, %v961_v16, %v992_v18  ;;  %v4303_v16 = vld [vmem:[%s6519_s1 + $0x60] sm:$0xff]  ;;  %v4308_v18 = vld [vmem:[%s6519_s1 + $0xe8] sm:$0xff] }
  0xfd   : > { %1187 = vmatmul.f32.vlgmr.msra.gmra.mxu3 %v1000_v20 }
  0xfe   : > { %1043 = vmatmul.f32.gmra.mxu0 %v1010_v55 }
 0x102   : > { %1087 = vmatmul.f32.gmra.mxu1 %v1013_v58 }
 0x106   : > { %1046 = vmatmul.f32.gmra.mxu0 %v1012_v50 }
 0x10a   : > { %1090 = vmatmul.f32.gmra.mxu1 %v1015_v52 }
 0x10e   : > { %1049 = vmatmul.f32.gmra.mxu0 %v1014_v53 }
 0x112   : > { %1093 = vmatmul.f32.gmra.mxu1 %v1017_v56 }
 0x116   : > { %1052 = vmatmul.f32.gmra.mxu0 %v1016_v57 }
 0x11a   : > { %1096 = vmatmul.f32.gmra.mxu1 %v1019_v60 }
 0x11e   : > { %1055 = vmatmul.f32.gmra.mxu0 %v1018_v61  ;;  %v4278_v61 = vld [vmem:[%s6519_s1 + $0xf8] sm:$0xff] }
 0x11f   : > { %1512 = vmatpush.msrb.mxu3 %v4278_v61  ;;  %1374 = vmatpush.msrb.mxu1 %v4278_v61 }
 0x121   : > { %1513 = vmatpush.msrb.mxu3 %v4291_v12  ;;  %1375 = vmatpush.msrb.mxu1 %v4291_v12 }
 0x122   : > { %1099 = vmatmul.f32.gmra.mxu1 %v1021_v62 }
 0x123   : > { %1514 = vmatpush.msrb.mxu3 %v4308_v18  ;;  %1376 = vmatpush.msrb.mxu1 %v4308_v18 }
 0x126   : > { %1058 = vmatmul.f32.gmra.mxu0 %v1020_v63 }
 0x12a   : > { %1102 = vmatmul.f32.gmra.mxu1 %v1023_v1  ;;  %v4284_v1 = vld [vmem:[%s6519_s1 + $0x70] sm:$0xff] }
 0x12b   : > { %1472 = vmatpush.msrb.mxu2 %v4284_v1  ;;  %1334 = vmatpush.msrb.mxu0 %v4284_v1 }
 0x12d   : > { %1473 = vmatpush.msrb.mxu2 %v4296_v14  ;;  %1335 = vmatpush.msrb.mxu0 %v4296_v14 }
 0x12e   : > { %1061 = vmatmul.f32.gmra.mxu0 %v1022_v2 }
 0x12f   : > { %v4228_v3 = vpop.f32.mrf.mxu1  ;;  %1474 = vmatpush.msrb.mxu2 %v4303_v16  ;;  %1336 = vmatpush.msrb.mxu0 %v4303_v16 }
 0x133   : > { %v4230_v4 = vpop.f32.mrf.mxu0 }
 0x135   : > { %v922_v19 = vpop.f32.mrf.mxu2 }
 0x136   : > { %v923_v22 = vadd.f32 %v4164_v0, %v922_v19  ;;  %v963_v23 = vpop.f32.mrf.mxu3 }
 0x137   : > { %v4232_v5 = vpop.f32.mrf.mxu1 }
 0x138   : > { %v964_v24 = vadd.f32 %v963_v23, %v923_v22 }
 0x13a   : > { %v993_v26 = vmul.f32 0.01, %v964_v24  ;;  %vm985_vm1 = vcmp.ge.f32.partialorder %v964_v24, 0.0 }
 0x13b   : > { %v4234_v6 = vpop.f32.mrf.mxu0 }
 0x13c   : > { %v1001_v28 = vsel %vm985_vm1, %v964_v24, %v993_v26 }
 0x13d   : > { %v925_v27 = vpop.f32.mrf.mxu2  ;;  %1190 = vmatmul.f32.gmra.mxu3 %v1001_v28  ;;  %v4321_v28 = vld [vmem:[%s6519_s1 + $0x58] sm:$0xff] }
 0x13e   : > { %v926_v30 = vadd.f32 %v4164_v0, %v925_v27  ;;  %1475 = vmatpush.msrb.mxu2 %v4321_v28  ;;  %1337 = vmatpush.msrb.mxu0 %v4321_v28 }
 0x13f   : > { %v4236_v7 = vpop.f32.mrf.mxu1 }
 0x141   : > { %v966_v31 = vpop.f32.mrf.mxu3 }
 0x142   : > { %v967_v32 = vadd.f32 %v966_v31, %v926_v30  ;;  %v4326_v30 = vld [vmem:[%s6519_s1 + $0xe0] sm:$0xff] }
 0x143   : > { %v4238_v8 = vpop.f32.mrf.mxu0  ;;  %1515 = vmatpush.msrb.mxu3 %v4326_v30  ;;  %1377 = vmatpush.msrb.mxu1 %v4326_v30 }
 0x144   : > { %v994_v34 = vmul.f32 0.01, %v967_v32  ;;  %vm986_vm2 = vcmp.ge.f32.partialorder %v967_v32, 0.0 }
 0x146   : > { %v928_v35 = vpop.f32.mrf.mxu2  ;;  %v1002_v36 = vsel %vm986_vm2, %v967_v32, %v994_v34 }
 0x147   : > { %v4240_v9 = vpop.f32.mrf.mxu1  ;;  %v929_v38 = vadd.f32 %v4164_v0, %v928_v35  ;;  %1193 = vmatmul.f32.gmra.mxu3 %v1002_v36  ;;  %v4334_v35 = vld [vmem:[%s6519_s1 + $0x50] sm:$0xff]  ;;  %v4339_v36 = vld [vmem:[%s6519_s1 + $0xd8] sm:$0xff] }
 0x148   : > { %1476 = vmatpush.msrb.mxu2 %v4334_v35  ;;  %1516 = vmatpush.msrb.mxu3 %v4339_v36 }
 0x149   : > { %v969_v39 = vpop.f32.mrf.mxu3  ;;  %1338 = vmatpush.msrb.mxu0 %v4334_v35  ;;  %1378 = vmatpush.msrb.mxu1 %v4339_v36 }
 0x14a   : > { %v970_v40 = vadd.f32 %v969_v39, %v929_v38  ;;  %v4348_v39 = vld [vmem:[%s6519_s1 + $0x48] sm:$0xff] }
 0x14b   : > { %v4242_v10 = vpop.f32.mrf.mxu0  ;;  %1477 = vmatpush.msrb.mxu2 %v4348_v39  ;;  %1339 = vmatpush.msrb.mxu0 %v4348_v39 }
 0x14c   : > { %v995_v42 = vmul.f32 0.01, %v970_v40  ;;  %vm987_vm3 = vcmp.ge.f32.partialorder %v970_v40, 0.0 }
 0x14e   : > { %v931_v43 = vpop.f32.mrf.mxu2  ;;  %v1003_v44 = vsel %vm987_vm3, %v970_v40, %v995_v42  ;;  %v4353_v40 = vld [vmem:[%s6519_s1 + $0xd0] sm:$0xff]  ;;  %v4358_v42 = vld [vmem:[%s6519_s1 + $0x40] sm:$0xff] }
 0x14f   : > { %v4244_v11 = vpop.f32.mrf.mxu1  ;;  %v932_v46 = vadd.f32 %v4164_v0, %v931_v43  ;;  %1196 = vmatmul.f32.gmra.mxu3 %v1003_v44  ;;  %v4363_v43 = vld [vmem:[%s6519_s1 + $0xc8] sm:$0xff]  ;;  %1379 = vmatpush.msrb.mxu1 %v4353_v40 }
 0x150   : > { %1517 = vmatpush.msrb.mxu3 %v4353_v40  ;;  %1478 = vmatpush.msrb.mxu2 %v4358_v42 }
 0x151   : > { %v972_v54 = vpop.f32.mrf.mxu3  ;;  %1340 = vmatpush.msrb.mxu0 %v4358_v42  ;;  %1380 = vmatpush.msrb.mxu1 %v4363_v43 }
 0x152   : > { %v973_v55 = vadd.f32 %v972_v54, %v932_v46  ;;  %1518 = vmatpush.msrb.mxu3 %v4363_v43 }
 0x153   : > { %v4246_v13 = vpop.f32.mrf.mxu0 }
 0x154   : > { %v996_v51 = vmul.f32 0.01, %v973_v55  ;;  %vm988_vm5 = vcmp.ge.f32.partialorder %v973_v55, 0.0 }
 0x156   : > { %v934_v52 = vpop.f32.mrf.mxu2  ;;  %v1004_v53 = vsel %vm988_vm5, %v973_v55, %v996_v51 }
 0x157   : > { %v4249_v17 = vpop.f32.mrf.mxu1  ;;  %v935_v57 = vadd.f32 %v4164_v0, %v934_v52  ;;  %1199 = vmatmul.f32.gmra.mxu3 %v1004_v53  ;;  %v4390_v53 = vld [vmem:[%s6519_s1 + $0x30] sm:$0xff] }
 0x159   : > { %v975_v62 = vpop.f32.mrf.mxu3 }
 0x15a   : > { %v976_v63 = vadd.f32 %v975_v62, %v935_v57  ;;  %v4409_v62 = vld [vmem:[%s6519_s1 + $0xb0] sm:$0xff] }
 0x15b   : > { %v4251_v21 = vpop.f32.mrf.mxu0 }
 0x15c   : > { %v997_v20 = vmul.f32 0.01, %v976_v63  ;;  %vm989_vm7 = vcmp.ge.f32.partialorder %v976_v63, 0.0 }
 0x15e   : > { %v937_v23 = vpop.f32.mrf.mxu2  ;;  %v1005_v24 = vsel %vm989_vm7, %v976_v63, %v997_v20 }
 0x15f   : > { %v4254_v25 = vpop.f32.mrf.mxu1  ;;  %v938_v27 = vadd.f32 %v4164_v0, %v937_v23  ;;  %1202 = vmatmul.f32.gmra.mxu3 %v1005_v24 }
 0x161   : > { %v978_v32 = vpop.f32.mrf.mxu3 }
 0x162   : > { %v979_v34 = vadd.f32 %v978_v32, %v938_v27  ;;  %v4437_v27 = vld [vmem:[%s6519_s1 + $0xa0] sm:$0xff] }
 0x163   : > { %v4256_v29 = vpop.f32.mrf.mxu0 }
 0x164   : > { %vm990_vm9 = vcmp.ge.f32.partialorder %v979_v34, 0.0 }
 0x167   : > { %v4259_v33 = vpop.f32.mrf.mxu1 }
 0x16b   : > { %v4261_v37 = vpop.f32.mrf.mxu0 }
 0x16f   : > { %v1082_v41 = vpop.f32.mrf.mxu1 }
 0x173   : > { %v1041_v45 = vpop.f32.mrf.mxu0 }
 0x174   : > { %v1042_v47 = vadd.f32 %v4164_v0, %v1041_v45  ;;  %v998_v45 = vmul.f32 0.01, %v979_v34 }
 0x176   : > { %v1083_v48 = vadd.f32 %v1082_v41, %v1042_v47  ;;  %v940_v47 = vpop.f32.mrf.mxu2  ;;  %v1006_v54 = vsel %vm990_vm9, %v979_v34, %v998_v45  ;;  %v4450_v34 = vld [vmem:[%s6519_s1 + $0x98] sm:$0xff] }
 0x177   : > { %v1085_v58 = vpop.f32.mrf.mxu1  ;;  %1205 = vmatmul.f32.gmra.mxu3 %v1006_v54 }
 0x178   : > { %v1114_v50 = vmul.f32 0.01, %v1083_v48  ;;  %vm1106_vm4 = vcmp.ge.f32.partialorder %v1083_v48, 0.0 }
 0x17a   : > { %v1122_v59 = vsel %vm1106_vm4, %v1083_v48, %v1114_v50  ;;  %v941_v48 = vadd.f32 %v4164_v0, %v940_v47  ;;  %v4382_v50 = vld [vmem:[%s6519_s1 + $0xc0] sm:$0xff]  ;;  %v4476_v47 = vld [vmem:[%s6519_s1 + $0x88] sm:$0xff] }
 0x17b   : > { %v1044_v56 = vpop.f32.mrf.mxu0  ;;  %1146 = vmatmul.f32.vlgmr.msra.gmra.mxu2 %v1122_v59  ;;  %1519 = vmatpush.msrb.mxu3 %v4382_v50  ;;  %v981_v59 = vpop.f32.mrf.mxu3 }
 0x17c   : > { %v1045_v60 = vadd.f32 %v4164_v0, %v1044_v56  ;;  %v982_v52 = vadd.f32 %v981_v59, %v941_v48  ;;  %v4395_v56 = vld [vmem:[%s6519_s1 + $0xb8] sm:$0xff]  ;;  %1381 = vmatpush.msrb.mxu1 %v4382_v50  ;;  %v1456_v59 = vld [vmem:[%s3902_s16 + $0x188] sm:$0xff] }
 0x17d   : > { %1520 = vmatpush.msrb.mxu3 %v4395_v56 }
 0x17e   : > { %v1086_v2 = vadd.f32 %v1085_v58, %v1045_v60  ;;  %v4377_v58 = vld [vmem:[%s6519_s1 + $0x38] sm:$0xff]  ;;  %v4404_v60 = vld [vmem:[%s6519_s1 + $0x28] sm:$0xff]  ;;  %v999_v20 = vmul.f32 0.01, %v982_v52  ;;  %vm991_vm11 = vcmp.ge.f32.partialorder %v982_v52, 0.0  ;;  %1382 = vmatpush.msrb.mxu1 %v4395_v56 }
 0x17f   : > { %v1088_v15 = vpop.f32.mrf.mxu1  ;;  %1479 = vmatpush.msrb.mxu2 %v4377_v58  ;;  %1341 = vmatpush.msrb.mxu0 %v4377_v58 }
 0x180   : > { %vm1107_vm6 = vcmp.ge.f32.partialorder %v1086_v2, 0.0  ;;  %v1115_v19 = vmul.f32 0.01, %v1086_v2  ;;  %1521 = vmatpush.msrb.mxu3 %v4409_v62  ;;  %v1007_v23 = vsel %vm991_vm11, %v982_v52, %v999_v20  ;;  %1383 = vmatpush.msrb.mxu1 %v4409_v62  ;;  %v1282_v20 = vld [vmem:[%s3902_s16 + $0x88] sm:$0xff] }
 0x181   : > { %1480 = vmatpush.msrb.mxu2 %v4390_v53  ;;  %1342 = vmatpush.msrb.mxu0 %v4390_v53 }
 0x182   : > { %v1123_v22 = vsel %vm1107_vm6, %v1086_v2, %v1115_v19  ;;  %v4416_v2 = vld [vmem:[%s6519_s1 + $0x20] sm:$0xff]  ;;  %1208 = vmatmul.f32.gmra.mxu3 %v1007_v23 }
 0x183   : > { %v1047_v26 = vpop.f32.mrf.mxu0  ;;  %1149 = vmatmul.f32.gmra.mxu2 %v1123_v22  ;;  %1343 = vmatpush.msrb.mxu0 %v4404_v60 }
 0x184   : > { %v1048_v31 = vadd.f32 %v4164_v0, %v1047_v26  ;;  %1481 = vmatpush.msrb.mxu2 %v4404_v60  ;;  %v4432_v26 = vld [vmem:[%s6519_s1 + $0x18] sm:$0xff] }
 0x185   : > { %1344 = vmatpush.msrb.mxu0 %v4416_v2 }
 0x186   : > { %v1089_v38 = vadd.f32 %v1088_v15, %v1048_v31  ;;  %v4421_v15 = vld [vmem:[%s6519_s1 + $0xa8] sm:$0xff]  ;;  %1482 = vmatpush.msrb.mxu2 %v4416_v2  ;;  %v4442_v31 = vld [vmem:[%s6519_s1 + $0x10] sm:$0xff] }
 0x187   : > { %v1091_v41 = vpop.f32.mrf.mxu1  ;;  %1522 = vmatpush.msrb.mxu3 %v4421_v15  ;;  %1384 = vmatpush.msrb.mxu1 %v4421_v15 }
 0x188   : > { %vm1108_vm8 = vcmp.ge.f32.partialorder %v1089_v38, 0.0  ;;  %v1116_v44 = vmul.f32 0.01, %v1089_v38  ;;  %1483 = vmatpush.msrb.mxu2 %v4432_v26  ;;  %1345 = vmatpush.msrb.mxu0 %v4432_v26 }
 0x189   : > { %1523 = vmatpush.msrb.mxu3 %v4437_v27  ;;  %1385 = vmatpush.msrb.mxu1 %v4437_v27 }
 0x18a   : > { %v1124_v46 = vsel %vm1108_vm8, %v1089_v38, %v1116_v44  ;;  %v4457_v38 = vld [vmem:[%s6519_s1 + $0x8] sm:$0xff]  ;;  %1484 = vmatpush.msrb.mxu2 %v4442_v31  ;;  %1346 = vmatpush.msrb.mxu0 %v4442_v31 }
 0x18b   : > { %v1050_v55 = vpop.f32.mrf.mxu0  ;;  %1152 = vmatmul.f32.gmra.mxu2 %v1124_v46  ;;  %1524 = vmatpush.msrb.mxu3 %v4450_v34  ;;  %v4471_v46 = vld [vmem:[%s6519_s1] sm:$0xff] }
 0x18c   : > { %v1051_v51 = vadd.f32 %v4164_v0, %v1050_v55  ;;  %1485 = vmatpush.msrb.mxu2 %v4457_v38  ;;  %1386 = vmatpush.msrb.mxu1 %v4450_v34 }
 0x18d   : > { %1347 = vmatpush.msrb.mxu0 %v4457_v38 }
 0x18e   : > { %v1092_v57 = vadd.f32 %v1091_v41, %v1051_v51  ;;  %v4462_v41 = vld [vmem:[%s6519_s1 + $0x90] sm:$0xff]  ;;  %1486 = vmatpush.msrb.mxu2 %v4471_v46  ;;  %v4488_v51 = vld [vmem:[%s6519_s1 + $0x80] sm:$0xff] }
 0x18f   : > { %v1094_v63 = vpop.f32.mrf.mxu1  ;;  %1525 = vmatpush.msrb.mxu3 %v4462_v41  ;;  %1387 = vmatpush.msrb.mxu1 %v4462_v41 }
 0x190   : > { %vm1109_vm10 = vcmp.ge.f32.partialorder %v1092_v57, 0.0  ;;  %v1117_v19 = vmul.f32 0.01, %v1092_v57  ;;  %1691 = vmatpush.msra.mxu2 %v4269_v49  ;;  %1348 = vmatpush.msrb.mxu0 %v4471_v46 }
 0x191   : > { %1526 = vmatpush.msrb.mxu3 %v4476_v47  ;;  %1388 = vmatpush.msrb.mxu1 %v4476_v47 }
 0x192   : > { %v1125_v22 = vsel %vm1109_vm10, %v1092_v57, %v1117_v19  ;;  %v1281_v57 = vld [vmem:[%s3902_s16 + $0x80] sm:$0xff]  ;;  %1692 = vmatpush.msra.mxu2 %v4284_v1 }
 0x193   : > { %v1053_v24 = vpop.f32.mrf.mxu0  ;;  %1155 = vmatmul.f32.gmra.mxu2 %v1125_v22  ;;  %1527 = vmatpush.msrb.mxu3 %v4488_v51 }
 0x194   : > { %v1054_v32 = vadd.f32 %v4164_v0, %v1053_v24  ;;  %1528 = vmatmul.f32.vlgmr.msrb.gmra.mxu3 %v1456_v59  ;;  %1349 = vmatmul.f32.vlgmr.msrb.gmra.mxu0 %v1281_v57 }
 0x195   : > { %1732 = vmatpush.msra.mxu3 %v4278_v61  ;;  %1389 = vmatpush.msrb.mxu1 %v4488_v51 }
 0x196   : > { %v1095_v44 = vadd.f32 %v1094_v63, %v1054_v32  ;;  %1390 = vmatmul.f32.vlgmr.msrb.gmra.mxu1 %v1282_v20  ;;  %v1458_v32 = vld [vmem:[%s3902_s16 + $0x198] sm:$0xff]  ;;  %1693 = vmatpush.msra.mxu2 %v4296_v14  ;;  %v1285_v20 = vld [vmem:[%s3902_s16 + $0xa0] sm:$0xff] }
 0x197   : > { %v1097_v45 = vpop.f32.mrf.mxu1  ;;  %1733 = vmatpush.msra.mxu3 %v4291_v12 }
 0x198   : > { %vm1110_vm12 = vcmp.ge.f32.partialorder %v1095_v44, 0.0  ;;  %v1118_v54 = vmul.f32 0.01, %v1095_v44  ;;  %1694 = vmatpush.msra.mxu2 %v4303_v16 }
 0x199   : > { %1734 = vmatpush.msra.mxu3 %v4308_v18 }
 0x19a   : > { %v1126_v55 = vsel %vm1110_vm12, %v1095_v44, %v1118_v54  ;;  %1695 = vmatpush.msra.mxu2 %v4321_v28 }
 0x19b   : > { %v1056_v48 = vpop.f32.mrf.mxu0  ;;  %1158 = vmatmul.f32.gmra.mxu2 %v1126_v55  ;;  %1735 = vmatpush.msra.mxu3 %v4326_v30 }
 0x19c   : > { %v1057_v52 = vadd.f32 %v4164_v0, %v1056_v48  ;;  %1531 = vmatmul.f32.gmra.mxu3 %v1458_v32  ;;  %v1284_v48 = vld [vmem:[%s3902_s16 + $0x98] sm:$0xff]  ;;  %1696 = vmatpush.msra.mxu2 %v4334_v35 }
 0x19d   : > { %1736 = vmatpush.msra.mxu3 %v4339_v36  ;;  %v1462_v32 = vld [vmem:[%s3902_s16 + $0x1b8] sm:$0xff] }
 0x19e   : > { %v1098_v63 = vadd.f32 %v1097_v45, %v1057_v52  ;;  %v1283_v45 = vld [vmem:[%s3902_s16 + $0x90] sm:$0xff]  ;;  %1393 = vmatmul.f32.gmra.mxu1 %v1284_v48  ;;  %1697 = vmatpush.msra.mxu2 %v4348_v39  ;;  %v1289_v48 = vld [vmem:[%s3902_s16 + $0xc0] sm:$0xff] }
 0x19f   : > { %v1100_v22 = vpop.f32.mrf.mxu1  ;;  %1352 = vmatmul.f32.gmra.mxu0 %v1283_v45  ;;  %1737 = vmatpush.msra.mxu3 %v4353_v40  ;;  %v1455_v45 = vld [vmem:[%s3902_s16 + $0x180] sm:$0xff] }
 0x1a0   : > { %vm1111_vm13 = vcmp.ge.f32.partialorder %v1098_v63, 0.0  ;;  %v1119_v19 = vmul.f32 0.01, %v1098_v63  ;;  %1698 = vmatpush.msra.mxu2 %v4358_v42 }
 0x1a1   : > { %1738 = vmatpush.msra.mxu3 %v4363_v43 }
 0x1a2   : > { %v1127_v23 = vsel %vm1111_vm13, %v1098_v63, %v1119_v19  ;;  %v1460_v63 = vld [vmem:[%s3902_s16 + $0x1a8] sm:$0xff]  ;;  %1699 = vmatpush.msra.mxu2 %v4377_v58 }
 0x1a3   : > { %v1059_v24 = vpop.f32.mrf.mxu0  ;;  %1161 = vmatmul.f32.gmra.mxu2 %v1127_v23  ;;  %1739 = vmatpush.msra.mxu3 %v4382_v50 }
 0x1a4   : > { %v1060_v44 = vadd.f32 %v4164_v0, %v1059_v24  ;;  %1534 = vmatmul.f32.gmra.mxu3 %v1460_v63  ;;  %v1286_v24 = vld [vmem:[%s3902_s16 + $0xa8] sm:$0xff]  ;;  %1700 = vmatpush.msra.mxu2 %v4390_v53  ;;  %v1291_v63 = vld [vmem:[%s3902_s16 + $0xd0] sm:$0xff] }
 0x1a5   : > { %1740 = vmatpush.msra.mxu3 %v4395_v56 }
 0x1a6   : > { %v1101_v54 = vadd.f32 %v1100_v22, %v1060_v44  ;;  %1396 = vmatmul.f32.gmra.mxu1 %v1286_v24  ;;  %1701 = vmatpush.msra.mxu2 %v4404_v60  ;;  %v1287_v44 = vld [vmem:[%s3902_s16 + $0xb0] sm:$0xff] }
 0x1a7   : > { %v1103_v57 = vpop.f32.mrf.mxu1  ;;  %1355 = vmatmul.f32.gmra.mxu0 %v1285_v20  ;;  %1741 = vmatpush.msra.mxu3 %v4409_v62  ;;  %v1292_v20 = vld [vmem:[%s3902_s16 + $0xd8] sm:$0xff]  ;;  %v1461_v24 = vld [vmem:[%s3902_s16 + $0x1b0] sm:$0xff] }
 0x1a8   : > { %vm1112_vm14 = vcmp.ge.f32.partialorder %v1101_v54, 0.0  ;;  %v1120_v55 = vmul.f32 0.01, %v1101_v54  ;;  %1702 = vmatpush.msra.mxu2 %v4416_v2 }
 0x1a9   : > { %1742 = vmatpush.msra.mxu3 %v4421_v15 }
 0x1aa   : > { %v1128_v59 = vsel %vm1112_vm14, %v1101_v54, %v1120_v55  ;;  %v1288_v54 = vld [vmem:[%s3902_s16 + $0xb8] sm:$0xff]  ;;  %1703 = vmatpush.msra.mxu2 %v4432_v26  ;;  %v1464_v55 = vld [vmem:[%s3902_s16 + $0x1c8] sm:$0xff] }
 0x1ab   : > { %v1062_v52 = vpop.f32.mrf.mxu0  ;;  %1164 = vmatmul.f32.gmra.mxu2 %v1128_v59  ;;  %1743 = vmatpush.msra.mxu3 %v4437_v27  ;;  %v1457_v59 = vld [vmem:[%s3902_s16 + $0x190] sm:$0xff] }
 0x1ac   : > { %v1063_v19 = vadd.f32 %v4164_v0, %v1062_v52  ;;  %1537 = vmatmul.f32.gmra.mxu3 %v1462_v32  ;;  %1704 = vmatpush.msra.mxu2 %v4442_v31  ;;  %v1290_v52 = vld [vmem:[%s3902_s16 + $0xc8] sm:$0xff]  ;;  %v1470_v32 = vld [vmem:[%s3902_s16 + $0x1f8] sm:$0xff] }
 0x1ad   : > { %1744 = vmatpush.msra.mxu3 %v4450_v34 }
 0x1ae   : > { %v1104_v22 = vadd.f32 %v1103_v57, %v1063_v19  ;;  %1399 = vmatmul.f32.gmra.mxu1 %v1288_v54  ;;  %1705 = vmatpush.msra.mxu2 %v4457_v38  ;;  %v1466_v57 = vld [vmem:[%s3902_s16 + $0x1d8] sm:$0xff]  ;;  %v1459_v19 = vld [vmem:[%s3902_s16 + $0x1a0] sm:$0xff] }
 0x1af   : > { %1358 = vmatmul.f32.gmra.mxu0 %v1287_v44  ;;  %1745 = vmatpush.msra.mxu3 %v4462_v41  ;;  %v1295_v44 = vld [vmem:[%s3902_s16 + $0xf0] sm:$0xff]  ;;  %v1296_v54 = vld [vmem:[%s3902_s16 + $0xf8] sm:$0xff] }
 0x1b0   : > { %vm1113_vm15 = vcmp.ge.f32.partialorder %v1104_v22, 0.0  ;;  %v1121_v23 = vmul.f32 0.01, %v1104_v22  ;;  %1706 = vmatpush.msra.mxu2 %v4471_v46 }
 0x1b1   : > { %1746 = vmatpush.msra.mxu3 %v4476_v47 }
 0x1b2   : > { %v1129_v0 = vsel %vm1113_vm15, %v1104_v22, %v1121_v23  ;;  %v1468_v22 = vld [vmem:[%s3902_s16 + $0x1e8] sm:$0xff]  ;;  %v1293_v23 = vld [vmem:[%s3902_s16 + $0xe0] sm:$0xff]  ;;  %vm1272_vm15 = vcmask 523264  }
 0x1b3   : > { %1167 = vmatmul.f32.gmra.mxu2 %v1129_v0  ;;  %1747 = vmatpush.msra.mxu3 %v4488_v51  ;;  %v1294_v0 = vld [vmem:[%s3902_s16 + $0xe8] sm:$0xff] }
 0x1b4   : > { %1540 = vmatmul.f32.gmra.mxu3 %v1464_v55  ;;  %v1465_v55 = vld [vmem:[%s3902_s16 + $0x1d0] sm:$0xff] }
 0x1b6   : > { %1402 = vmatmul.f32.gmra.mxu1 %v1290_v52 }
 0x1b7   : > { %1361 = vmatmul.f32.gmra.mxu0 %v1289_v48  ;;  %v1188_v48 = vpop.f32.mrf.mxu3 }
 0x1bb   : > { %1487 = vmatmul.f32.vlgmr.msrb.gmra.mxu2 %v1455_v45  ;;  %v1463_v45 = vld [vmem:[%s3902_s16 + $0x1c0] sm:$0xff] }
 0x1bc   : > { %1543 = vmatmul.f32.gmra.mxu3 %v1466_v57  ;;  %v1469_v57 = vld [vmem:[%s3902_s16 + $0x1f0] sm:$0xff] }
 0x1be   : > { %1405 = vmatmul.f32.gmra.mxu1 %v1292_v20  ;;  %v863_v20 = vadd.f32 %v4228_v3, %v4230_v4  ;;  %v1454_v3 = vld [vmem:[%s6521_s3 + $0x78] sm:$0xff]  ;;  %v866_v4 = vadd.f32 %v4232_v5, %v4234_v6  ;;  %v1452_v5 = vld [vmem:[%s6521_s3 + $0x68] sm:$0xff] }
 0x1bf   : > { %1364 = vmatmul.f32.gmra.mxu0 %v1291_v63  ;;  %1634 = vmatpush.msra.mxu1 %v1454_v3 }
 0x1c0   : > { %v1191_v52 = vpop.f32.mrf.mxu3  ;;  %1960 = vmatpush.msrb.mxu3 %v1454_v3  ;;  %v1449_v3 = vld [vmem:[%s6521_s3 + $0x50] sm:$0xff] }
 0x1c3   : > { %1490 = vmatmul.f32.gmra.mxu2 %v1457_v59  ;;  %v1467_v59 = vld [vmem:[%s3902_s16 + $0x1e0] sm:$0xff] }
 0x1c4   : > { %1546 = vmatmul.f32.gmra.mxu3 %v1468_v22 }
 0x1c6   : > { %1408 = vmatmul.f32.gmra.mxu1 %v1294_v0  ;;  %v3542_v0 = vld [vmem:[%s6521_s3 + $0xf8] sm:$0xff] }
 0x1c7   : > { %1367 = vmatmul.f32.gmra.mxu0 %v1293_v23  ;;  %1919 = vmatpush.msrb.mxu2 %v3542_v0 }
 0x1c8   : > { %1593 = vmatpush.msra.mxu0 %v3542_v0 }
 0x1ca   : > { %v1194_v63 = vpop.f32.mrf.mxu3 }
 0x1cb   : > { %1493 = vmatmul.f32.gmra.mxu2 %v1459_v19 }
 0x1cc   : > { %1549 = vmatmul.f32.gmra.mxu3 %v1470_v32 }
 0x1ce   : > { %1411 = vmatmul.f32.gmra.mxu1 %v1296_v54  ;;  %v1453_v54 = vld [vmem:[%s6521_s3 + $0x70] sm:$0xff] }
 0x1cf   : > { %1370 = vmatmul.f32.gmra.mxu0 %v1295_v44  ;;  %1635 = vmatpush.msra.mxu1 %v1453_v54 }
 0x1d0   : > { %1961 = vmatpush.msrb.mxu3 %v1453_v54 }
 0x1d1   : > { %1636 = vmatpush.msra.mxu1 %v1452_v5 }
 0x1d2   : > { %v4566_v23 = vpop.f32.mrf.mxu3  ;;  %1962 = vmatpush.msrb.mxu3 %v1452_v5  ;;  %v1446_v5 = vld [vmem:[%s6521_s3 + $0x38] sm:$0xff] }
 0x1d3   : > { %1496 = vmatmul.f32.gmra.mxu2 %v1461_v24 }
 0x1da   : > { %v4594_v6 = vpop.f32.mrf.mxu3 }
 0x1db   : > { %1499 = vmatmul.f32.gmra.mxu2 %v1463_v45  ;;  %v3541_v45 = vld [vmem:[%s6521_s3 + $0xf0] sm:$0xff] }
 0x1dc   : > { %1594 = vmatpush.msra.mxu0 %v3541_v45  ;;  %1920 = vmatpush.msrb.mxu2 %v3541_v45 }
 0x1e2   : > { %v4634_v45 = vpop.f32.mrf.mxu3 }
 0x1e3   : > { %1502 = vmatmul.f32.gmra.mxu2 %v1465_v55 }
 0x1eb   : > { %1505 = vmatmul.f32.gmra.mxu2 %v1467_v59  ;;  %v3539_v59 = vld [vmem:[%s6521_s3 + $0xe0] sm:$0xff] }
 0x1f3   : > { %1508 = vmatmul.f32.gmra.mxu2 %v1469_v57 }
 0x1fe   : > { %v1147_v19 = vpop.f32.mrf.mxu2 }
 0x1ff   : > { %v1189_v22 = vadd.f32 %v1188_v48, %v1147_v19  ;;  %v3540_v48 = vld [vmem:[%s6521_s3 + $0xe8] sm:$0xff]  ;;  %v3538_v19 = vld [vmem:[%s6521_s3 + $0xd8] sm:$0xff] }
 0x200   : > { %1595 = vmatpush.msra.mxu0 %v3540_v48  ;;  %1921 = vmatpush.msrb.mxu2 %v3540_v48  ;;  %v3534_v48 = vld [vmem:[%s6521_s3 + $0xb8] sm:$0xff] }
 0x201   : > { %v4568_v24 = vmax.f32 %v863_v20, %v1189_v22  ;;  %v1450_v20 = vld [vmem:[%s6521_s3 + $0x58] sm:$0xff]  ;;  %v869_v22 = vadd.f32 %v4236_v7, %v4238_v8  ;;  %v3536_v7 = vld [vmem:[%s6521_s3 + $0xc8] sm:$0xff] }
 0x202   : > { %1596 = vmatpush.msra.mxu0 %v3539_v59  ;;  %1922 = vmatpush.msrb.mxu2 %v3539_v59  ;;  %v1448_v8 = vld [vmem:[%s6521_s3 + $0x48] sm:$0xff]  ;;  %v3533_v59 = vld [vmem:[%s6521_s3 + $0xb0] sm:$0xff] }
 0x203   : > { %1228 = vrot.lane.b32.xlu0 %v4568_v24, %s3602_s22 }
 0x204   : > { %1597 = vmatpush.msra.mxu0 %v3538_v19  ;;  %1923 = vmatpush.msrb.mxu2 %v3538_v19  ;;  %v1444_v19 = vld [vmem:[%s6521_s3 + $0x28] sm:$0xff] }
 0x206   : > { %v1150_v32 = vpop.f32.mrf.mxu2 }
 0x207   : > { %v1192_v44 = vadd.f32 %v1191_v52, %v1150_v32  ;;  %v1451_v52 = vld [vmem:[%s6521_s3 + $0x60] sm:$0xff]  ;;  %v3537_v32 = vld [vmem:[%s6521_s3 + $0xd0] sm:$0xff] }
 0x208   : > { %1637 = vmatpush.msra.mxu1 %v1451_v52  ;;  %1963 = vmatpush.msrb.mxu3 %v1451_v52  ;;  %v1445_v52 = vld [vmem:[%s6521_s3 + $0x30] sm:$0xff] }
 0x209   : > { %v4586_v55 = vmax.f32 %v866_v4, %v1192_v44  ;;  %1598 = vmatpush.msra.mxu0 %v3537_v32  ;;  %v1447_v44 = vld [vmem:[%s6521_s3 + $0x40] sm:$0xff]  ;;  %1924 = vmatpush.msrb.mxu2 %v3537_v32 }
 0x20a   : > { %1638 = vmatpush.msra.mxu1 %v1450_v20  ;;  %1964 = vmatpush.msrb.mxu3 %v1450_v20  ;;  %v3531_v20 = vld [vmem:[%s6521_s3 + $0xa0] sm:$0xff] }
 0x20b   : > { %1230 = vrot.lane.b32.xlu0 %v4586_v55, %s3602_s22  ;;  %1599 = vmatpush.msra.mxu0 %v3536_v7 }
 0x20c   : > { %1639 = vmatpush.msra.mxu1 %v1449_v3  ;;  %1965 = vmatpush.msrb.mxu3 %v1449_v3 }
 0x20d   : > { %1925 = vmatpush.msrb.mxu2 %v3536_v7  ;;  %v4667_v7 = vpop.f32.mrf.mxu3 }
 0x20e   : > { %v1153_v57 = vpop.f32.mrf.mxu2  ;;  %1640 = vmatpush.msra.mxu1 %v1448_v8  ;;  %1966 = vmatpush.msrb.mxu3 %v1448_v8 }
 0x20f   : > { %v1195_v0 = vadd.f32 %v1194_v63, %v1153_v57  ;;  %v3535_v63 = vld [vmem:[%s6521_s3 + $0xc0] sm:$0xff]  ;;  %v3532_v57 = vld [vmem:[%s6521_s3 + $0xa8] sm:$0xff] }
 0x210   : > { %1600 = vmatpush.msra.mxu0 %v3535_v63  ;;  %1641 = vmatpush.msra.mxu1 %v1447_v44 }
 0x211   : > { %v4618_v4 = vmax.f32 %v869_v22, %v1195_v0  ;;  %1967 = vmatpush.msrb.mxu3 %v1447_v44  ;;  %1926 = vmatpush.msrb.mxu2 %v3535_v63  ;;  %v4662_v22 = vld [vmem:[%s6520_s2] ss:$0 sm:$0xff]  ;;  %v1350_v32 = vpop.f32.mrf.mxu0  ;;  %v3530_v63 = vld [vmem:[%s6521_s3 + $0x98] sm:$0xff] }
 0x212   : > { %1601 = vmatpush.msra.mxu0 %v3534_v48  ;;  %1642 = vmatpush.msra.mxu1 %v1446_v5  ;;  %v1443_v0 = vld [vmem:[%s6521_s3 + $0x20] sm:$0xff]  ;;  %v1351_v8 = vadd.f32 %v4662_v22, %v1350_v32  ;;  %v1442_v44 = vld [vmem:[%s6521_s3 + $0x18] sm:$0xff] }
 0x213   : > { %1232 = vrot.lane.b32.xlu0 %v4618_v4, %s3602_s22  ;;  %1968 = vmatpush.msrb.mxu3 %v1446_v5 }
 0x214   : > { %1602 = vmatpush.msra.mxu0 %v3533_v59  ;;  %1643 = vmatpush.msra.mxu1 %v1445_v52 }
 0x215   : > { %1927 = vmatpush.msrb.mxu2 %v3534_v48  ;;  %1969 = vmatpush.msrb.mxu3 %v1445_v52  ;;  %v875_v48 = vadd.f32 %v4244_v11, %v4246_v13  ;;  %v3529_v52 = vld [vmem:[%s6521_s3 + $0x90] sm:$0xff]  ;;  %v3528_v11 = vld [vmem:[%s6521_s3 + $0x88] sm:$0xff] }
 0x216   : > { %v4636_v54 = vpop.f32.mrf.mxu2  ;;  %1603 = vmatpush.msra.mxu0 %v3532_v57  ;;  %1644 = vmatpush.msra.mxu1 %v1444_v19  ;;  %v1440_v13 = vld [vmem:[%s6521_s3 + $0x8] sm:$0xff] }
 0x217   : > { %1928 = vmatpush.msrb.mxu2 %v3533_v59  ;;  %1970 = vmatpush.msrb.mxu3 %v1444_v19  ;;  %v1391_v59 = vpop.f32.mrf.mxu1  ;;  %v1441_v19 = vld [vmem:[%s6521_s3 + $0x10] sm:$0xff] }
 0x218   : > { %1604 = vmatpush.msra.mxu0 %v3531_v20  ;;  %1645 = vmatpush.msra.mxu1 %v1443_v0 }
 0x219   : > { %1929 = vmatpush.msrb.mxu2 %v3532_v57  ;;  %1971 = vmatpush.msrb.mxu3 %v1443_v0  ;;  %v1392_v57 = vadd.f32 %v1391_v59, %v1351_v8  ;;  %v1439_v0 = vld [vmem:[%s6521_s3] sm:$0xff] }
 0x21a   : > { %1605 = vmatpush.msra.mxu0 %v3530_v63  ;;  %1646 = vmatpush.msra.mxu1 %v1442_v44 }
 0x21b   : > { %1930 = vmatpush.msrb.mxu2 %v3531_v20  ;;  %1972 = vmatpush.msrb.mxu3 %v1442_v44  ;;  %vm1415_vm0 = vcmp.ge.f32.partialorder %v1392_v57, 0.0  ;;  %v3527_v20 = vld [vmem:[%s6521_s3 + $0x80] sm:$0xff] }
 0x21c   : > { %1606 = vmatpush.msra.mxu0 %v3529_v52  ;;  %1647 = vmatpush.msra.mxu1 %v1441_v19 }
 0x21d   : > { %1931 = vmatpush.msrb.mxu2 %v3530_v63  ;;  %1973 = vmatpush.msrb.mxu3 %v1441_v19 }
 0x21e   : > { %v1159_v3 = vpop.f32.mrf.mxu2  ;;  %1607 = vmatpush.msra.mxu0 %v3528_v11  ;;  %1648 = vmatpush.msra.mxu1 %v1440_v13 }
 0x21f   : > { %v1201_v5 = vadd.f32 %v4594_v6, %v1159_v3  ;;  %v1423_v6 = vmul.f32 0.01, %v1392_v57  ;;  %v1353_v3 = vpop.f32.mrf.mxu0  ;;  %1932 = vmatpush.msrb.mxu2 %v3529_v52  ;;  %1974 = vmatpush.msrb.mxu3 %v1440_v13 }
 0x220   : > { %1608 = vmatpush.msra.mxu0 %v3527_v20  ;;  %1649 = vmatpush.msra.mxu1 %v1439_v0  ;;  %v1354_v44 = vadd.f32 %v4662_v22, %v1353_v3 }
 0x221   : > { %v4685_v32 = vmax.f32 %v875_v48, %v1201_v5  ;;  %v1431_v8 = vsel %vm1415_vm0, %v1392_v57, %v1423_v6  ;;  %v4705_v48 = vpop.f32.mrf.mxu3  ;;  %v1394_v5 = vpop.f32.mrf.mxu1  ;;  %1933 = vmatpush.msrb.mxu2 %v3528_v11  ;;  %1975 = vmatpush.msrb.mxu3 %v1439_v0 }
 0x222   : > { %1813 = vmatpush.msrb.mxu0 %v4269_v49  ;;  %1650 = vmatmul.f32.vlgmr.msra.gmra.mxu1 %v1431_v8  ;;  %v1395_v59 = vadd.f32 %v1394_v5, %v1354_v44 }
 0x223   : > { %1236 = vrot.lane.b32.xlu2 %v4685_v32, %s3602_s22  ;;  %1854 = vmatpush.msrb.mxu1 %v4278_v61 }
 0x224   : > { %1814 = vmatpush.msrb.mxu0 %v4284_v1  ;;  %v1424_v52 = vmul.f32 0.01, %v1395_v59  ;;  %1934 = vmatpush.msrb.mxu2 %v3527_v20  ;;  %vm1416_vm1 = vcmp.ge.f32.partialorder %v1395_v59, 0.0 }
 0x225   : > { %1855 = vmatpush.msrb.mxu1 %v4291_v12 }
 0x226   : > { %v4701_v63 = vpop.f32.mrf.mxu2  ;;  %1815 = vmatpush.msrb.mxu0 %v4296_v14  ;;  %v1432_v19 = vsel %vm1416_vm1, %v1395_v59, %v1424_v52 }
 0x227   : > { %1856 = vmatpush.msrb.mxu1 %v4308_v18  ;;  %v1356_v49 = vpop.f32.mrf.mxu0 }
 0x228   : > { %1816 = vmatpush.msrb.mxu0 %v4303_v16  ;;  %v1357_v61 = vadd.f32 %v4662_v22, %v1356_v49 }
 0x229   : > { %1857 = vmatpush.msrb.mxu1 %v4326_v30  ;;  %v1529_v1 = vpop.f32.mrf.mxu3  ;;  %v1397_v12 = vpop.f32.mrf.mxu1 }
 0x22a   : > { %1817 = vmatpush.msrb.mxu0 %v4321_v28  ;;  %1653 = vmatmul.f32.gmra.mxu1 %v1432_v19  ;;  %v1398_v14 = vadd.f32 %v1397_v12, %v1357_v61 }
 0x22b   : > { %1858 = vmatpush.msrb.mxu1 %v4339_v36 }
 0x22c   : > { %1818 = vmatpush.msrb.mxu0 %v4334_v35  ;;  %v1425_v16 = vmul.f32 0.01, %v1398_v14  ;;  %vm1417_vm2 = vcmp.ge.f32.partialorder %v1398_v14, 0.0 }
 0x22d   : > { %1859 = vmatpush.msrb.mxu1 %v4353_v40 }
 0x22e   : > { %v4713_v57 = vpop.f32.mrf.mxu2  ;;  %1819 = vmatpush.msrb.mxu0 %v4348_v39  ;;  %v1433_v28 = vsel %vm1417_vm2, %v1398_v14, %v1425_v16 }
 0x22f   : > { %1860 = vmatpush.msrb.mxu1 %v4363_v43  ;;  %v1359_v18 = vpop.f32.mrf.mxu0 }
 0x230   : > { %1820 = vmatpush.msrb.mxu0 %v4358_v42  ;;  %v1360_v11 = vadd.f32 %v4662_v22, %v1359_v18 }
 0x231   : > { %1861 = vmatpush.msrb.mxu1 %v4382_v50  ;;  %v1400_v35 = vpop.f32.mrf.mxu1  ;;  %v1532_v39 = vpop.f32.mrf.mxu3 }
 0x232   : > { %1821 = vmatpush.msrb.mxu0 %v4377_v58  ;;  %1656 = vmatmul.f32.gmra.mxu1 %v1433_v28  ;;  %v1401_v36 = vadd.f32 %v1400_v35, %v1360_v11 }
 0x233   : > { %1862 = vmatpush.msrb.mxu1 %v4395_v56 }
 0x234   : > { %1822 = vmatpush.msrb.mxu0 %v4390_v53  ;;  %v1426_v40 = vmul.f32 0.01, %v1401_v36  ;;  %vm1418_vm3 = vcmp.ge.f32.partialorder %v1401_v36, 0.0 }
 0x235   : > { %1863 = vmatpush.msrb.mxu1 %v4409_v62 }
 0x236   : > { %v4724_v30 = vpop.f32.mrf.mxu2  ;;  %1823 = vmatpush.msrb.mxu0 %v4404_v60  ;;  %v1434_v43 = vsel %vm1418_vm3, %v1401_v36, %v1426_v40 }
 0x237   : > { %1864 = vmatpush.msrb.mxu1 %v4421_v15  ;;  %v1362_v42 = vpop.f32.mrf.mxu0 }
 0x238   : > { %1824 = vmatpush.msrb.mxu0 %v4416_v2  ;;  %v1363_v50 = vadd.f32 %v4662_v22, %v1362_v42 }
 0x239   : > { %1865 = vmatpush.msrb.mxu1 %v4437_v27  ;;  %v1403_v56 = vpop.f32.mrf.mxu1 }
 0x23a   : > { %1825 = vmatpush.msrb.mxu0 %v4432_v26  ;;  %1659 = vmatmul.f32.gmra.mxu1 %v1434_v43  ;;  %v1404_v62 = vadd.f32 %v1403_v56, %v1363_v50  ;;  %v1535_v26 = vpop.f32.mrf.mxu3 }
 0x23b   : > { %1866 = vmatpush.msrb.mxu1 %v4450_v34 }
 0x23c   : > { %1826 = vmatpush.msrb.mxu0 %v4442_v31  ;;  %v1427_v15 = vmul.f32 0.01, %v1404_v62  ;;  %vm1419_vm5 = vcmp.ge.f32.partialorder %v1404_v62, 0.0 }
 0x23d   : > { %1867 = vmatpush.msrb.mxu1 %v4462_v41 }
 0x23e   : > { %v1488_v58 = vpop.f32.mrf.mxu2  ;;  %1827 = vmatpush.msrb.mxu0 %v4457_v38  ;;  %v1435_v31 = vsel %vm1419_vm5, %v1404_v62, %v1427_v15 }
 0x23f   : > { %v1489_v53 = vadd.f32 %v4662_v22, %v1488_v58  ;;  %1868 = vmatpush.msrb.mxu1 %v4476_v47  ;;  %v1365_v13 = vpop.f32.mrf.mxu0 }
 0x240   : > { %1828 = vmatpush.msrb.mxu0 %v4471_v46  ;;  %v1366_v34 = vadd.f32 %v4662_v22, %v1365_v13 }
 0x241   : > { %v1530_v60 = vadd.f32 %v1529_v1, %v1489_v53  ;;  %1869 = vmatpush.msrb.mxu1 %v4488_v51  ;;  %v1406_v41 = vpop.f32.mrf.mxu1 }
 0x242   : > { %1662 = vmatmul.f32.gmra.mxu1 %v1435_v31  ;;  %v1407_v0 = vadd.f32 %v1406_v41, %v1366_v34  ;;  %v1538_v59 = vpop.f32.mrf.mxu3  ;;  %v1798_v41 = vld [vmem:[%s3902_s16 + $0x388] sm:$0xff] }
 0x243   : > { %vm1553_vm4 = vcmp.ge.f32.partialorder %v1530_v60, 0.0  ;;  %v1561_v2 = vmul.f32 0.01, %v1530_v60 }
 0x244   : > { %v1428_v46 = vmul.f32 0.01, %v1407_v0  ;;  %vm1420_vm7 = vcmp.ge.f32.partialorder %v1407_v0, 0.0 }
 0x245   : > { %v1569_v27 = vsel %vm1553_vm4, %v1530_v60, %v1561_v2  ;;  %v1675_v60 = vld [vmem:[%s3902_s16 + $0x280] sm:$0xff]  ;;  %v1676_v2 = vld [vmem:[%s3902_s16 + $0x288] sm:$0xff] }
 0x246   : > { %v1491_v6 = vpop.f32.mrf.mxu2  ;;  %1609 = vmatmul.f32.vlgmr.msra.gmra.mxu0 %v1569_v27  ;;  %v1436_v44 = vsel %vm1420_vm7, %v1407_v0, %v1428_v46  ;;  %1707 = vmatmul.f32.vlgmr.msra.gmra.mxu2 %v1675_v60  ;;  %v1679_v46 = vld [vmem:[%s3902_s16 + $0x2a0] sm:$0xff] }
 0x247   : > { %v1492_v38 = vadd.f32 %v4662_v22, %v1491_v6  ;;  %v1368_v8 = vpop.f32.mrf.mxu0  ;;  %1748 = vmatmul.f32.vlgmr.msra.gmra.mxu3 %v1676_v2  ;;  %v1677_v6 = vld [vmem:[%s3902_s16 + $0x290] sm:$0xff] }
 0x248   : > { %v1369_v52 = vadd.f32 %v4662_v22, %v1368_v8 }
 0x249   : > { %v1533_v20 = vadd.f32 %v1532_v39, %v1492_v38  ;;  %v1409_v49 = vpop.f32.mrf.mxu1  ;;  %v1678_v38 = vld [vmem:[%s3902_s16 + $0x298] sm:$0xff] }
 0x24a   : > { %1665 = vmatmul.f32.gmra.mxu1 %v1436_v44  ;;  %v1410_v61 = vadd.f32 %v1409_v49, %v1369_v52  ;;  %v1541_v36 = vpop.f32.mrf.mxu3  ;;  %v1680_v44 = vld [vmem:[%s3902_s16 + $0x2a8] sm:$0xff]  ;;  %v4766_v49 = vld [vmem:[%s6522_s4] ss:$0 sm:$0xff] }
 0x24b   : > { %vm1554_vm6 = vcmp.ge.f32.partialorder %v1533_v20, 0.0  ;;  %v1562_v3 = vmul.f32 0.01, %v1533_v20 }
 0x24c   : > { %v1429_v12 = vmul.f32 0.01, %v1410_v61  ;;  %vm1421_vm9 = vcmp.ge.f32.partialorder %v1410_v61, 0.0 }
 0x24d   : > { %v1570_v47 = vsel %vm1554_vm6, %v1533_v20, %v1562_v3 }
 0x24e   : > { %v1494_v5 = vpop.f32.mrf.mxu2  ;;  %1612 = vmatmul.f32.gmra.mxu0 %v1570_v47  ;;  %v1437_v16 = vsel %vm1421_vm9, %v1410_v61, %v1429_v12  ;;  %1710 = vmatmul.f32.gmra.mxu2 %v1677_v6  ;;  %v1687_v6 = vld [vmem:[%s3902_s16 + $0x2e0] sm:$0xff] }
 0x24f   : > { %v1495_v51 = vadd.f32 %v4662_v22, %v1494_v5  ;;  %v1371_v28 = vpop.f32.mrf.mxu0  ;;  %1751 = vmatmul.f32.gmra.mxu3 %v1678_v38  ;;  %v1800_v5 = vld [vmem:[%s3902_s16 + $0x398] sm:$0xff]  ;;  %v1801_v38 = vld [vmem:[%s3902_s16 + $0x3a0] sm:$0xff] }
 0x250   : > { %v1372_v35 = vadd.f32 %v4662_v22, %v1371_v28  ;;  %v1802_v28 = vld [vmem:[%s3902_s16 + $0x3a8] sm:$0xff] }
 0x251   : > { %v1536_v19 = vadd.f32 %v1535_v26, %v1495_v51  ;;  %v1412_v39 = vpop.f32.mrf.mxu1 }
 0x252   : > { %1668 = vmatmul.f32.gmra.mxu1 %v1437_v16  ;;  %v1413_v42 = vadd.f32 %v1412_v39, %v1372_v35  ;;  %v1544_v26 = vpop.f32.mrf.mxu3  ;;  %v1683_v39 = vld [vmem:[%s3902_s16 + $0x2c0] sm:$0xff] }
 0x253   : > { %vm1555_vm8 = vcmp.ge.f32.partialorder %v1536_v19, 0.0  ;;  %v1563_v1 = vmul.f32 0.01, %v1536_v19 }
 0x254   : > { %v1430_v58 = vmul.f32 0.01, %v1413_v42  ;;  %vm1422_vm11 = vcmp.ge.f32.partialorder %v1413_v42, 0.0 }
 0x255   : > { %v1571_v14 = vsel %vm1555_vm8, %v1536_v19, %v1563_v1  ;;  %v1681_v19 = vld [vmem:[%s3902_s16 + $0x2b0] sm:$0xff] }
 0x256   : > { %v1497_v18 = vpop.f32.mrf.mxu2  ;;  %1615 = vmatmul.f32.gmra.mxu0 %v1571_v14  ;;  %v1438_v56 = vsel %vm1422_vm11, %v1413_v42, %v1430_v58  ;;  %1713 = vmatmul.f32.gmra.mxu2 %v1679_v46  ;;  %v1812_v46 = vld [vmem:[%s3902_s16 + $0x3f8] sm:$0xff] }
 0x257   : > { %v1498_v11 = vadd.f32 %v4662_v22, %v1497_v18  ;;  %1754 = vmatmul.f32.gmra.mxu3 %v1680_v44  ;;  %v1682_v18 = vld [vmem:[%s3902_s16 + $0x2b8] sm:$0xff]  ;;  %v1807_v44 = vld [vmem:[%s3902_s16 + $0x3d0] sm:$0xff] }
 0x259   : > { %v1539_v40 = vadd.f32 %v1538_v59, %v1498_v11 }
 0x25a   : > { %1671 = vmatmul.f32.gmra.mxu1 %v1438_v56  ;;  %v1547_v3 = vpop.f32.mrf.mxu3  ;;  %v1804_v56 = vld [vmem:[%s3902_s16 + $0x3b8] sm:$0xff] }
 0x25b   : > { %vm1556_vm10 = vcmp.ge.f32.partialorder %v1539_v40, 0.0  ;;  %v1564_v43 = vmul.f32 0.01, %v1539_v40 }
 0x25d   : > { %v1572_v50 = vsel %vm1556_vm10, %v1539_v40, %v1564_v43 }
 0x25e   : > { %v1500_v53 = vpop.f32.mrf.mxu2  ;;  %1618 = vmatmul.f32.gmra.mxu0 %v1572_v50  ;;  %1716 = vmatmul.f32.gmra.mxu2 %v1681_v19 }
 0x25f   : > { %v1501_v62 = vadd.f32 %v4662_v22, %v1500_v53  ;;  %1757 = vmatmul.f32.gmra.mxu3 %v1682_v18  ;;  %v1684_v53 = vld [vmem:[%s3902_s16 + $0x2c8] sm:$0xff] }
 0x261   : > { %v1542_v15 = vadd.f32 %v1541_v36, %v1501_v62 }
 0x262   : > { %1870 = vmatmul.f32.vlgmr.msrb.gmra.mxu1 %v1798_v41  ;;  %v1550_v16 = vpop.f32.mrf.mxu3  ;;  %v1689_v41 = vld [vmem:[%s3902_s16 + $0x2f0] sm:$0xff] }
 0x263   : > { %vm1557_vm12 = vcmp.ge.f32.partialorder %v1542_v15, 0.0  ;;  %v1565_v27 = vmul.f32 0.01, %v1542_v15 }
 0x265   : > { %v1573_v13 = vsel %vm1557_vm12, %v1542_v15, %v1565_v27  ;;  %v1806_v27 = vld [vmem:[%s3902_s16 + $0x3c8] sm:$0xff] }
 0x266   : > { %v1503_v31 = vpop.f32.mrf.mxu2  ;;  %1621 = vmatmul.f32.gmra.mxu0 %v1573_v13  ;;  %1719 = vmatmul.f32.gmra.mxu2 %v1683_v39 }
 0x267   : > { %v1504_v34 = vadd.f32 %v4662_v22, %v1503_v31  ;;  %1760 = vmatmul.f32.gmra.mxu3 %v1684_v53  ;;  %v1799_v31 = vld [vmem:[%s3902_s16 + $0x390] sm:$0xff] }
 0x269   : > { %v1545_v20 = vadd.f32 %v1544_v26, %v1504_v34  ;;  %v1686_v26 = vld [vmem:[%s3902_s16 + $0x2d8] sm:$0xff] }
 0x26a   : > { %1873 = vmatmul.f32.gmra.mxu1 %v1800_v5  ;;  %v1808_v34 = vld [vmem:[%s3902_s16 + $0x3d8] sm:$0xff] }
 0x26b   : > { %vm1558_vm13 = vcmp.ge.f32.partialorder %v1545_v20, 0.0  ;;  %v1566_v0 = vmul.f32 0.01, %v1545_v20 }
 0x26d   : > { %v1574_v47 = vsel %vm1558_vm13, %v1545_v20, %v1566_v0  ;;  %v1810_v20 = vld [vmem:[%s3902_s16 + $0x3e8] sm:$0xff]  ;;  %v1690_v0 = vld [vmem:[%s3902_s16 + $0x2f8] sm:$0xff] }
 0x26e   : > { %v1506_v8 = vpop.f32.mrf.mxu2  ;;  %1624 = vmatmul.f32.gmra.mxu0 %v1574_v47  ;;  %v1805_v47 = vld [vmem:[%s3902_s16 + $0x3c0] sm:$0xff] }
 0x26f   : > { %v1507_v59 = vadd.f32 %v4662_v22, %v1506_v8  ;;  %1763 = vmatmul.f32.gmra.mxu3 %v1686_v26 }
 0x271   : > { %v1548_v52 = vadd.f32 %v1547_v3, %v1507_v59  ;;  %v1803_v3 = vld [vmem:[%s3902_s16 + $0x3b0] sm:$0xff]  ;;  %v1809_v59 = vld [vmem:[%s3902_s16 + $0x3e0] sm:$0xff] }
 0x272   : > { %1876 = vmatmul.f32.gmra.mxu1 %v1802_v28 }
 0x273   : > { %vm1559_vm14 = vcmp.ge.f32.partialorder %v1548_v52, 0.0  ;;  %v1567_v51 = vmul.f32 0.01, %v1548_v52 }
 0x275   : > { %v1229_v61 = vpop.permute.xlu0 %1228  ;;  %v1575_v1 = vsel %vm1559_vm14, %v1548_v52, %v1567_v51  ;;  %v1811_v52 = vld [vmem:[%s3902_s16 + $0x3f0] sm:$0xff] }
 0x276   : > { %v1252_v12 = vmax.f32 %v4568_v24, %v1229_v61  ;;  %v1509_v14 = vpop.f32.mrf.mxu2  ;;  %1627 = vmatmul.f32.gmra.mxu0 %v1575_v1 }
 0x277   : > { %v1510_v11 = vadd.f32 %v4662_v22, %v1509_v14 }
 0x278   : > { %v1264_v35 = vadd.f32 %v4766_v49, %v1252_v12 }
 0x279   : > { %v1551_v36 = vadd.f32 %v1550_v16, %v1510_v11 }
 0x27a   : > { %1273 = vst.msk [vmem:[#allocation2] sm:$0xff] %vm1272_vm15, %v1264_v35  ;;  %1879 = vmatmul.f32.gmra.mxu1 %v1804_v56 }
 0x27b   : > { %vm1560_vm0 = vcmp.ge.f32.partialorder %v1551_v36, 0.0  ;;  %v1568_v24 = vmul.f32 0.01, %v1551_v36 }
 0x27d   : > { %v1237_v40 = vpop.permute.xlu2 %1236  ;;  %v1231_v42 = vpop.permute.xlu0 %1230  ;;  %v1576_v43 = vsel %vm1560_vm0, %v1551_v36, %v1568_v24 }
 0x27e   : > { %v1256_v58 = vmax.f32 %v4685_v32, %v1237_v40  ;;  %v1253_v50 = vmax.f32 %v4586_v55, %v1231_v42  ;;  %1630 = vmatmul.f32.gmra.mxu0 %v1576_v43  ;;  %v1797_v55 = vld [vmem:[%s3902_s16 + $0x380] sm:$0xff]  ;;  %v1685_v32 = vld [vmem:[%s3902_s16 + $0x2d0] sm:$0xff] }
 0x27f   : > { %1722 = vmatmul.f32.gmra.mxu2 %v1685_v32 }
 0x280   : > { %v1268_v60 = vadd.f32 %v4766_v49, %v1256_v58  ;;  %v1265_v62 = vadd.f32 %v4766_v49, %v1253_v50 }
 0x282   : > { %1277 = vst.msk [vmem:[#allocation2 + $0x20] sm:$0xff] %vm1272_vm15, %v1268_v60  ;;  %1882 = vmatmul.f32.gmra.mxu1 %v1806_v27 }
 0x283   : > { %1274 = vst.msk [vmem:[#allocation2 + $0x8] sm:$0xff] %vm1272_vm15, %v1265_v62 }
 0x285   : > { %v1233_v2 = vpop.permute.xlu0 %1232 }
 0x286   : > { %v1254_v15 = vmax.f32 %v4618_v4, %v1233_v2  ;;  %1829 = vmatmul.f32.vlgmr.msrb.gmra.mxu0 %v1797_v55  ;;  %v1688_v4 = vld [vmem:[%s3902_s16 + $0x2e8] sm:$0xff] }
 0x287   : > { %1725 = vmatmul.f32.gmra.mxu2 %v1687_v6  ;;  %1766 = vmatmul.f32.gmra.mxu3 %v1688_v4 }
 0x288   : > { %v1266_v13 = vadd.f32 %v4766_v49, %v1254_v15 }
 0x28a   : > { %1275 = vst.msk [vmem:[#allocation2 + $0x10] sm:$0xff] %vm1272_vm15, %v1266_v13  ;;  %1885 = vmatmul.f32.gmra.mxu1 %v1808_v34 }
 0x28e   : > { %1832 = vmatmul.f32.gmra.mxu0 %v1799_v31 }
 0x28f   : > { %1728 = vmatmul.f32.gmra.mxu2 %v1689_v41  ;;  %1769 = vmatmul.f32.gmra.mxu3 %v1690_v0 }
 0x292   : > { %1888 = vmatmul.f32.gmra.mxu1 %v1810_v20 }
 0x296   : > { %1835 = vmatmul.f32.gmra.mxu0 %v1801_v38 }
 0x29a   : > { %1891 = vmatmul.f32.gmra.mxu1 %v1812_v46 }
 0x29e   : > { %1838 = vmatmul.f32.gmra.mxu0 %v1803_v3 }
 0x29f   : > { %v4802_v8 = vpop.f32.mrf.mxu1 }
 0x2a6   : > { %1841 = vmatmul.f32.gmra.mxu0 %v1805_v47 }
 0x2a7   : > { %v4805_v5 = vpop.f32.mrf.mxu1 }
 0x2ae   : > { %1844 = vmatmul.f32.gmra.mxu0 %v1807_v44 }
 0x2af   : > { %v4809_v51 = vpop.f32.mrf.mxu1 }
 0x2b6   : > { %1847 = vmatmul.f32.gmra.mxu0 %v1809_v59 }
 0x2b7   : > { %v4813_v61 = vpop.f32.mrf.mxu1 }
 0x2be   : > { %1850 = vmatmul.f32.gmra.mxu0 %v1811_v52 }
 0x2bf   : > { %v1663_v12 = vpop.f32.mrf.mxu1 }
 0x2c3   : > { %v4811_v19 = vpop.f32.mrf.mxu0 }
 0x2c7   : > { %v1666_v16 = vpop.f32.mrf.mxu1 }
 0x2c9   : > { %v1708_v28 = vpop.f32.mrf.mxu2 }
 0x2ca   : > { %v1709_v36 = vadd.f32 %v4662_v22, %v1708_v28  ;;  %v1749_v39 = vpop.f32.mrf.mxu3 }
 0x2cb   : > { %v4815_v1 = vpop.f32.mrf.mxu0 }
 0x2cc   : > { %v1750_v40 = vadd.f32 %v1749_v39, %v1709_v36 }
 0x2ce   : > { %vm1773_vm1 = vcmp.ge.f32.partialorder %v1750_v40, 0.0  ;;  %v1781_v42 = vmul.f32 0.01, %v1750_v40 }
 0x2cf   : > { %v1669_v35 = vpop.f32.mrf.mxu1 }
 0x2d0   : > { %v1789_v43 = vsel %vm1773_vm1, %v1750_v40, %v1781_v42 }
 0x2d1   : > { %v1711_v58 = vpop.f32.mrf.mxu2  ;;  %1976 = vmatmul.f32.vlgmr.msrb.gmra.mxu3 %v1789_v43 }
 0x2d2   : > { %v1712_v53 = vadd.f32 %v4662_v22, %v1711_v58  ;;  %v1752_v60 = vpop.f32.mrf.mxu3 }
 0x2d3   : > { %v4817_v14 = vpop.f32.mrf.mxu0 }
 0x2d4   : > { %v1753_v55 = vadd.f32 %v1752_v60, %v1712_v53 }
 0x2d6   : > { %v1782_v32 = vmul.f32 0.01, %v1753_v55  ;;  %vm1774_vm2 = vcmp.ge.f32.partialorder %v1753_v55, 0.0 }
 0x2d7   : > { %v1672_v62 = vpop.f32.mrf.mxu1 }
 0x2d8   : > { %v1790_v2 = vsel %vm1774_vm2, %v1753_v55, %v1782_v32 }
 0x2d9   : > { %v1714_v15 = vpop.f32.mrf.mxu2  ;;  %1979 = vmatmul.f32.gmra.mxu3 %v1790_v2 }
 0x2da   : > { %v1715_v27 = vadd.f32 %v4662_v22, %v1714_v15  ;;  %v1755_v31 = vpop.f32.mrf.mxu3 }
 0x2db   : > { %v4819_v18 = vpop.f32.mrf.mxu0 }
 0x2dc   : > { %v1756_v4 = vadd.f32 %v1755_v31, %v1715_v27 }
 0x2de   : > { %v1783_v34 = vmul.f32 0.01, %v1756_v4  ;;  %vm1775_vm3 = vcmp.ge.f32.partialorder %v1756_v4, 0.0 }
 0x2df   : > { %v1871_v6 = vpop.f32.mrf.mxu1 }
 0x2e0   : > { %v1791_v38 = vsel %vm1775_vm3, %v1756_v4, %v1783_v34 }
 0x2e1   : > { %v1717_v41 = vpop.f32.mrf.mxu2  ;;  %1982 = vmatmul.f32.gmra.mxu3 %v1791_v38 }
 0x2e2   : > { %v1718_v0 = vadd.f32 %v4662_v22, %v1717_v41  ;;  %v1758_v46 = vpop.f32.mrf.mxu3 }
 0x2e3   : > { %v1622_v11 = vpop.f32.mrf.mxu0 }
 0x2e4   : > { %v4822_v24 = vadd.f32 %v1663_v12, %v1622_v11  ;;  %v1759_v47 = vadd.f32 %v1758_v46, %v1718_v0 }
 0x2e6   : > { %v1784_v59 = vmul.f32 0.01, %v1759_v47  ;;  %vm1776_vm4 = vcmp.ge.f32.partialorder %v1759_v47, 0.0 }
 0x2e7   : > { %v1874_v44 = vpop.f32.mrf.mxu1 }
 0x2e8   : > { %v1792_v52 = vsel %vm1776_vm4, %v1759_v47, %v1784_v59 }
 0x2e9   : > { %v1720_v12 = vpop.f32.mrf.mxu2  ;;  %1985 = vmatmul.f32.gmra.mxu3 %v1792_v52 }
 0x2ea   : > { %v1721_v28 = vadd.f32 %v4662_v22, %v1720_v12 }
 0x2eb   : > { %v1625_v50 = vpop.f32.mrf.mxu0 }
 0x2ec   : > { %v4825_v56 = vadd.f32 %v1666_v16, %v1625_v50 }
 0x2ef   : > { %v1877_v43 = vpop.f32.mrf.mxu1 }
 0x2f3   : > { %v1628_v26 = vpop.f32.mrf.mxu0 }
 0x2f4   : > { %v4828_v13 = vadd.f32 %v1669_v35, %v1628_v26  ;;  %v1761_v35 = vpop.f32.mrf.mxu3 }
 0x2f5   : > { %v1762_v36 = vadd.f32 %v1761_v35, %v1721_v28 }
 0x2f7   : > { %v1785_v40 = vmul.f32 0.01, %v1762_v36  ;;  %vm1777_vm6 = vcmp.ge.f32.partialorder %v1762_v36, 0.0  ;;  %v1880_v38 = vpop.f32.mrf.mxu1 }
 0x2f9   : > { %v1793_v58 = vsel %vm1777_vm6, %v1762_v36, %v1785_v40 }
 0x2fa   : > { %1988 = vmatmul.f32.gmra.mxu3 %v1793_v58 }
 0x2fb   : > { %v1631_v20 = vpop.f32.mrf.mxu0 }
 0x2fc   : > { %v4831_v3 = vadd.f32 %v1672_v62, %v1631_v20  ;;  %v1764_v32 = vpop.f32.mrf.mxu3 }
 0x302   : > { %v1723_v53 = vpop.f32.mrf.mxu2 }
 0x303   : > { %v1830_v16 = vpop.f32.mrf.mxu0  ;;  %v1724_v62 = vadd.f32 %v4662_v22, %v1723_v53 }
 0x304   : > { %v1831_v11 = vadd.f32 %v4662_v22, %v1830_v16 }
 0x305   : > { %v1765_v2 = vadd.f32 %v1764_v32, %v1724_v62 }
 0x306   : > { %v1872_v39 = vadd.f32 %v1871_v6, %v1831_v11 }
 0x307   : > { %v1786_v26 = vmul.f32 0.01, %v1765_v2  ;;  %vm1778_vm8 = vcmp.ge.f32.partialorder %v1765_v2, 0.0 }
 0x308   : > { %vm1895_vm5 = vcmp.ge.f32.partialorder %v1872_v39, 0.0  ;;  %v1903_v42 = vmul.f32 0.01, %v1872_v39 }
 0x309   : > { %v1794_v31 = vsel %vm1778_vm8, %v1765_v2, %v1786_v26 }
 0x30a   : > { %v1911_v50 = vsel %vm1895_vm5, %v1872_v39, %v1903_v42  ;;  %v1726_v4 = vpop.f32.mrf.mxu2  ;;  %1991 = vmatmul.f32.gmra.mxu3 %v1794_v31  ;;  %v1767_v0 = vpop.f32.mrf.mxu3 }
 0x30b   : > { %v1833_v60 = vpop.f32.mrf.mxu0  ;;  %1935 = vmatmul.f32.vlgmr.msrb.gmra.mxu2 %v1911_v50  ;;  %v1727_v41 = vadd.f32 %v4662_v22, %v1726_v4  ;;  %v1883_v39 = vpop.f32.mrf.mxu1 }
 0x30c   : > { %v1834_v55 = vadd.f32 %v4662_v22, %v1833_v60 }
 0x30d   : > { %v1768_v46 = vadd.f32 %v1767_v0, %v1727_v41 }
 0x30e   : > { %v1875_v15 = vadd.f32 %v1874_v44, %v1834_v55 }
 0x30f   : > { %v1787_v59 = vmul.f32 0.01, %v1768_v46  ;;  %vm1779_vm10 = vcmp.ge.f32.partialorder %v1768_v46, 0.0 }
 0x310   : > { %v1904_v27 = vmul.f32 0.01, %v1875_v15  ;;  %vm1896_vm7 = vcmp.ge.f32.partialorder %v1875_v15, 0.0 }
 0x311   : > { %v1795_v52 = vsel %vm1779_vm10, %v1768_v46, %v1787_v59 }
 0x312   : > { %v1912_v6 = vsel %vm1896_vm7, %v1875_v15, %v1904_v27  ;;  %1994 = vmatmul.f32.gmra.mxu3 %v1795_v52  ;;  %v1729_v16 = vpop.f32.mrf.mxu2  ;;  %v1770_v36 = vpop.f32.mrf.mxu3  ;;  %vm3396_vm7 = vcmask 261120  }
 0x313   : > { %v1836_v34 = vpop.f32.mrf.mxu0  ;;  %1938 = vmatmul.f32.gmra.mxu2 %v1912_v6  ;;  %v1730_v11 = vadd.f32 %v4662_v22, %v1729_v16  ;;  %v1886_v32 = vpop.f32.mrf.mxu1 }
 0x314   : > { %v1837_v20 = vadd.f32 %v4662_v22, %v1836_v34 }
 0x315   : > { %v1771_v40 = vadd.f32 %v1770_v36, %v1730_v11  ;;  %v1652_v36 = vadd.f32 %v4802_v8, %v4811_v19  ;;  %v1198_v19 = vadd.f32 %v4566_v23, %v4636_v54  ;;  %v1204_v23 = vadd.f32 %v4634_v45, %v4701_v63 }
 0x316   : > { %v1878_v47 = vadd.f32 %v1877_v43, %v1837_v20  ;;  %v1661_v63 = vadd.f32 %v4813_v61, %v4819_v18 }
 0x317   : > { %v1788_v58 = vmul.f32 0.01, %v1771_v40  ;;  %vm1780_vm12 = vcmp.ge.f32.partialorder %v1771_v40, 0.0 }
 0x318   : > { %v1905_v44 = vmul.f32 0.01, %v1878_v47  ;;  %vm1897_vm9 = vcmp.ge.f32.partialorder %v1878_v47, 0.0 }
 0x319   : > { %v1796_v60 = vsel %vm1780_vm12, %v1771_v40, %v1788_v58 }
 0x31a   : > { %v1913_v12 = vsel %vm1897_vm9, %v1878_v47, %v1905_v44  ;;  %1997 = vmatmul.f32.gmra.mxu3 %v1796_v60  ;;  %v1658_v60 = vadd.f32 %v4809_v51, %v4817_v14  ;;  %vm3455_vm9 = vcmask 40960  }
 0x31b   : > { %v1839_v28 = vpop.f32.mrf.mxu0  ;;  %1941 = vmatmul.f32.gmra.mxu2 %v1913_v12  ;;  %v1889_v4 = vpop.f32.mrf.mxu1 }
 0x31c   : > { %v1840_v35 = vadd.f32 %v4662_v22, %v1839_v28 }
 0x31e   : > { %v1881_v42 = vadd.f32 %v1880_v38, %v1840_v35 }
 0x320   : > { %v1906_v43 = vmul.f32 0.01, %v1881_v42  ;;  %vm1898_vm11 = vcmp.ge.f32.partialorder %v1881_v42, 0.0 }
 0x322   : > { %v1914_v50 = vsel %vm1898_vm11, %v1881_v42, %v1906_v43 }
 0x323   : > { %v1842_v53 = vpop.f32.mrf.mxu0  ;;  %1944 = vmatmul.f32.gmra.mxu2 %v1914_v50  ;;  %v1892_v59 = vpop.f32.mrf.mxu1 }
 0x324   : > { %v1843_v62 = vadd.f32 %v4662_v22, %v1842_v53 }
 0x326   : > { %v1884_v55 = vadd.f32 %v1883_v39, %v1843_v62 }
 0x328   : > { %v1907_v2 = vmul.f32 0.01, %v1884_v55  ;;  %vm1899_vm13 = vcmp.ge.f32.partialorder %v1884_v55, 0.0 }
 0x32a   : > { %v1915_v15 = vsel %vm1899_vm13, %v1884_v55, %v1907_v2 }
 0x32b   : > { %v1845_v26 = vpop.f32.mrf.mxu0  ;;  %1947 = vmatmul.f32.gmra.mxu2 %v1915_v15 }
 0x32c   : > { %v1846_v27 = vadd.f32 %v4662_v22, %v1845_v26 }
 0x32e   : > { %v1887_v31 = vadd.f32 %v1886_v32, %v1846_v27 }
 0x330   : > { %v1908_v6 = vmul.f32 0.01, %v1887_v31  ;;  %vm1900_vm14 = vcmp.ge.f32.partialorder %v1887_v31, 0.0 }
 0x332   : > { %v1916_v34 = vsel %vm1900_vm14, %v1887_v31, %v1908_v6  ;;  %v1207_v6 = vadd.f32 %v4667_v7, %v4713_v57  ;;  %v4893_v7 = vld [vmem:[%s6522_s4] ss:$0 sm:$0xff] }
 0x333   : > { %v1848_v38 = vpop.f32.mrf.mxu0  ;;  %1950 = vmatmul.f32.gmra.mxu2 %v1916_v34 }
 0x334   : > { %v1849_v41 = vadd.f32 %v4662_v22, %v1848_v38 }
 0x336   : > { %v1890_v20 = vadd.f32 %v1889_v4, %v1849_v41 }
 0x338   : > { %v1909_v0 = vmul.f32 0.01, %v1890_v20  ;;  %vm1901_vm0 = vcmp.ge.f32.partialorder %v1890_v20, 0.0 }
 0x33a   : > { %v1917_v46 = vsel %vm1901_vm0, %v1890_v20, %v1909_v0 }
 0x33b   : > { %v1851_v47 = vpop.f32.mrf.mxu0  ;;  %1953 = vmatmul.f32.gmra.mxu2 %v1917_v46 }
 0x33c   : > { %v1852_v44 = vadd.f32 %v4662_v22, %v1851_v47  ;;  %v1655_v22 = vadd.f32 %v4805_v5, %v4815_v1  ;;  %v872_v5 = vadd.f32 %v4240_v9, %v4242_v10  ;;  %v878_v9 = vadd.f32 %v4249_v17, %v4251_v21 }
 0x33d   : > { %v881_v21 = vadd.f32 %v4254_v25, %v4256_v29 }
 0x33e   : > { %v1893_v52 = vadd.f32 %v1892_v59, %v1852_v44  ;;  %v4858_v1 = vmax.f32 %v872_v5, %v1198_v19  ;;  %v1217_v27 = vmax.f32 %v878_v9, %v1204_v23  ;;  %v4948_v9 = vld [vmem:[%s6523_s5 + $0xf0] sm:$0xff] }
 0x33f   : > { %v4883_v38 = vmax.f32 %v881_v21, %v1207_v6  ;;  %v4992_v21 = vld [vmem:[%s6523_s5 + $0x58] sm:$0xff] }
 0x340   : > { %v1910_v12 = vmul.f32 0.01, %v1893_v52  ;;  %vm1902_vm1 = vcmp.ge.f32.partialorder %v1893_v52, 0.0 }
 0x342   : > { %v1918_v16 = vsel %vm1902_vm1, %v1893_v52, %v1910_v12 }
 0x343   : > { %1956 = vmatmul.f32.gmra.mxu2 %v1918_v16  ;;  %v2075_v16 = vld [vmem:[#allocation2 + $0x1] sm:$0xff] }
 0x354   : > { %v1977_v28 = vpop.f32.mrf.mxu3 }
 0x35c   : > { %v1980_v11 = vpop.f32.mrf.mxu3 }
 0x364   : > { %v1983_v58 = vpop.f32.mrf.mxu3 }
 0x36c   : > { %v1986_v55 = vpop.f32.mrf.mxu3 }
 0x37d   : > { %v1989_v2 = vpop.f32.mrf.mxu3 }
 0x38d   : > { %v1992_v26 = vpop.f32.mrf.mxu3 }
 0x38e   : > { %v1936_v35 = vpop.f32.mrf.mxu2 }
 0x38f   : > { %v1978_v39 = vadd.f32 %v1977_v28, %v1936_v35 }
 0x391   : > { %v2001_v40 = vmax.f32 %v1652_v36, %v1978_v39 }
 0x393   : > { %2017 = vrot.lane.b32.xlu1 %v2001_v40, %s3602_s22 }
 0x395   : > { %v1995_v4 = vpop.f32.mrf.mxu3 }
 0x396   : > { %v1939_v42 = vpop.f32.mrf.mxu2 }
 0x397   : > { %v1981_v43 = vadd.f32 %v1980_v11, %v1939_v42  ;;  %v4904_v11 = vld [vmem:[#allocation2 + $0x20] sm:$0xff] }
 0x399   : > { %v2002_v50 = vmax.f32 %v1655_v22, %v1981_v43 }
 0x39b   : > { %2019 = vrot.lane.b32.xlu1 %v2002_v50, %s3602_s22 }
 0x39e   : > { %v1942_v53 = vpop.f32.mrf.mxu2 }
 0x39f   : > { %v1984_v62 = vadd.f32 %v1983_v58, %v1942_v53  ;;  %v2076_v53 = vld [vmem:[#allocation2 + $0x9] sm:$0xff] }
 0x3a1   : > { %v2003_v8 = vmax.f32 %v1658_v60, %v1984_v62 }
 0x3a3   : > { %2021 = vrot.lane.b32.xlu1 %v2003_v8, %s3602_s22 }
 0x3a6   : > { %v1945_v32 = vpop.f32.mrf.mxu2 }
 0x3ab   : > { %1234 = vrot.lane.b32.xlu1 %v4858_v1, %s3602_s22 }
 0x3ae   : > { %v1948_v15 = vpop.f32.mrf.mxu2 }
 0x3af   : > { %v1990_v51 = vadd.f32 %v1989_v2, %v1948_v15 }
 0x3b1   : > { %v2005_v14 = vmax.f32 %v4822_v24, %v1990_v51  ;;  %v1987_v24 = vadd.f32 %v1986_v55, %v1945_v32  ;;  %v4930_v51 = vld [vmem:[%s6523_s5 + $0x78] sm:$0xff] }
 0x3b2   : > { %2240 = vmatpush.msra.mxu2 %v4930_v51  ;;  %2158 = vmatpush.msra.mxu0 %v4930_v51 }
 0x3b3   : > { %2025 = vrot.lane.b32.xlu2 %v2005_v14, %s3602_s22 }
 0x3b6   : > { %v1951_v54 = vpop.f32.mrf.mxu2 }
 0x3b7   : > { %v1993_v10 = vadd.f32 %v1992_v26, %v1951_v54  ;;  %v4940_v26 = vld [vmem:[%s6523_s5 + $0x70] sm:$0xff] }
 0x3b8   : > { %2241 = vmatpush.msra.mxu2 %v4940_v26  ;;  %2159 = vmatpush.msra.mxu0 %v4940_v26 }
 0x3b9   : > { %v4869_v31 = vmax.f32 %v4825_v56, %v1993_v10  ;;  %v2004_v56 = vmax.f32 %v1661_v63, %v1987_v24  ;;  %v4974_v63 = vld [vmem:[%s6523_s5 + $0x60] sm:$0xff] }
 0x3bb   : > { %1238 = vrot.lane.b32.xlu2 %v1217_v27, %s3602_s22  ;;  %2027 = vrot.lane.b32.xlu0 %v4869_v31, %s3602_s22 }
 0x3be   : > { %v1954_v45 = vpop.f32.mrf.mxu2 }
 0x3bf   : > { %v1996_v17 = vadd.f32 %v1995_v4, %v1954_v45 }
 0x3c1   : > { %v4881_v34 = vmax.f32 %v4828_v13, %v1996_v17 }
 0x3c3   : > { %2023 = vrot.lane.b32.xlu2 %v2004_v56, %s3602_s22  ;;  %2029 = vrot.lane.b32.xlu1 %v4881_v34, %s3602_s22 }
 0x3c4   : > { %1240 = vrot.lane.b32.xlu0 %v4883_v38, %s3602_s22 }
 0x405   : > { %v2018_v25 = vpop.permute.xlu1 %2017 }
 0x406   : > { %v2041_v29 = vmax.f32 %v2001_v40, %v2018_v25  ;;  %v5028_v25 = vld [vmem:[%s6523_s5 + $0xc8] sm:$0xff] }
 0x408   : > { %v2053_v57 = vadd.f32 %v4893_v7, %v2041_v29 }
 0x40a   : > { %2061 = vst.msk [vmem:[#allocation2 + $0x40] sm:$0xff] %vm1272_vm15, %v2053_v57  ;;  %v5037_v57 = vld [vmem:[%s6523_s5 + $0x40] sm:$0xff] }
 0x40d   : > { %v2020_v61 = vpop.permute.xlu1 %2019  ;;  %v2026_v18 = vpop.permute.xlu2 %2025 }
 0x40e   : > { %v2042_v13 = vmax.f32 %v2002_v50, %v2020_v61  ;;  %v2045_v41 = vmax.f32 %v2005_v14, %v2026_v18  ;;  %v4935_v14 = vld [vmem:[%s6523_s5 + $0xf8] sm:$0xff] }
 0x40f   : > { %2266 = vmatpush.msra.mxu3 %v4935_v14  ;;  %2184 = vmatpush.msra.mxu1 %v4935_v14 }
 0x410   : > { %v2054_v20 = vadd.f32 %v4893_v7, %v2042_v13  ;;  %v2057_v0 = vadd.f32 %v4893_v7, %v2045_v41  ;;  %v5048_v13 = vld [vmem:[%s6523_s5 + $0xc0] sm:$0xff]  ;;  %v2093_v41 = vld [vmem:[#allocation2 + $0x7] sm:$0xff] }
 0x411   : > { %2267 = vmatpush.msra.mxu3 %v4948_v9  ;;  %2185 = vmatpush.msra.mxu1 %v4948_v9 }
 0x412   : > { %2062 = vst.msk [vmem:[#allocation2 + $0x48] sm:$0xff] %vm1272_vm15, %v2054_v20 }
 0x413   : > { %2065 = vst.msk [vmem:[#allocation2 + $0x60] sm:$0xff] %vm1272_vm15, %v2057_v0  ;;  %v5059_v0 = vld [vmem:[%s6523_s5 + $0x38] sm:$0xff] }
 0x415   : > { %v2022_v46 = vpop.permute.xlu1 %2021  ;;  %v1239_v47 = vpop.permute.xlu2 %1238 }
 0x416   : > { %v2043_v59 = vmax.f32 %v2003_v8, %v2022_v46  ;;  %v1257_v44 = vmax.f32 %v1217_v27, %v1239_v47  ;;  %v4954_v27 = vld [vmem:[%s6523_s5 + $0x68] sm:$0xff]  ;;  %v5066_v46 = vld [vmem:[%s6523_s5 + $0xb8] sm:$0xff]  ;;  %v5073_v47 = vld [vmem:[%s6523_s5 + $0x30] sm:$0xff] }
 0x417   : > { %2242 = vmatpush.msra.mxu2 %v4954_v27  ;;  %2160 = vmatpush.msra.mxu0 %v4954_v27 }
 0x418   : > { %v2055_v52 = vadd.f32 %v4893_v7, %v2043_v59  ;;  %v1269_v12 = vadd.f32 %v4766_v49, %v1257_v44  ;;  %v1210_v59 = vadd.f32 %v4705_v48, %v4724_v30  ;;  %v5081_v44 = vld [vmem:[%s6523_s5 + $0xb0] sm:$0xff]  ;;  %v884_v48 = vadd.f32 %v4259_v33, %v4261_v37  ;;  %v5097_v30 = vld [vmem:[%s6523_s5 + $0xa8] sm:$0xff]  ;;  %v5113_v33 = vld [vmem:[%s6523_s5 + $0xa0] sm:$0xff] }
 0x419   : > { %v2084_v28 = vld [vmem:[#allocation2 + $0x41] sm:$0xff]  ;;  %2243 = vmatpush.msra.mxu2 %v4974_v63  ;;  %2161 = vmatpush.msra.mxu0 %v4974_v63  ;;  %v5120_v37 = vld [vmem:[%s6523_s5 + $0x18] sm:$0xff] }
 0x41a   : > { %2063 = vst.msk [vmem:[#allocation2 + $0x50] sm:$0xff] %vm1272_vm15, %v2055_v52  ;;  %v4906_v35 = vld [vmem:[#allocation2 + $0x60] sm:$0xff]  ;;  %v3557_v36 = vpack.i.bf16 %v2084_v28, %v2075_v16  ;;  %v5107_v16 = vmax.f32 %v884_v48, %v1210_v59  ;;  %v2094_v28 = vld [vmem:[#allocation2 + $0xf] sm:$0xff] }
 0x41b   : > { %1278 = vst.msk [vmem:[#allocation2 + $0x28] sm:$0xff] %vm1272_vm15, %v1269_v12  ;;  %v3562_v39 = vpack.i.bf16 %v4906_v35, %v4904_v11  ;;  %2244 = vmatpush.msra.mxu2 %v4992_v21  ;;  %2162 = vmatpush.msra.mxu0 %v4992_v21  ;;  %v5088_v52 = vld [vmem:[%s6523_s5 + $0x28] sm:$0xff]  ;;  %v5104_v12 = vld [vmem:[%s6523_s5 + $0x20] sm:$0xff] }
 0x41c   : > { %3558 = vrot.lane.b32.xlu2 %v3557_v36, %s3602_s22  ;;  %v5129_v36 = vld [vmem:[%s6523_s5 + $0x98] sm:$0xff] }
 0x41d   : > { %3563 = vrot.lane.b32.xlu0 %v3562_v39, %s3602_s22  ;;  %v2024_v40 = vpop.permute.xlu2 %2023  ;;  %v1235_v42 = vpop.permute.xlu1 %1234  ;;  %v5136_v39 = vld [vmem:[%s6523_s5 + $0x10] sm:$0xff] }
 0x41e   : > { %v2044_v58 = vmax.f32 %v2004_v56, %v2024_v40  ;;  %v1255_v22 = vmax.f32 %v4858_v1, %v1235_v42  ;;  %v5001_v56 = vld [vmem:[%s6523_s5 + $0xd8] sm:$0xff]  ;;  %v5142_v40 = vld [vmem:[%s6523_s5 + $0x90] sm:$0xff] }
 0x420   : > { %v2056_v43 = vadd.f32 %v4893_v7, %v2044_v58  ;;  %v1267_v50 = vadd.f32 %v4766_v49, %v1255_v22  ;;  %v5160_v58 = vld [vmem:[%s6523_s5 + $0x8] sm:$0xff] }
 0x421   : > { %v2085_v60 = vld [vmem:[#allocation2 + $0x49] sm:$0xff]  ;;  %v5165_v22 = vld [vmem:[%s6523_s5 + $0x88] sm:$0xff] }
 0x422   : > { %2064 = vst.msk [vmem:[#allocation2 + $0x58] sm:$0xff] %vm1272_vm15, %v2056_v43  ;;  %v3567_v62 = vpack.i.bf16 %v2085_v60, %v2076_v53  ;;  %v4923_v2 = vld [vmem:[#allocation2 + $0x26] sm:$0xff]  ;;  %v5170_v43 = vld [vmem:[%s6523_s5] sm:$0xff] }
 0x423   : > { %1276 = vst.msk [vmem:[#allocation2 + $0x18] sm:$0xff] %vm1272_vm15, %v1267_v50  ;;  %v4967_v4 = vld [vmem:[#allocation2 + $0x28] sm:$0xff]  ;;  %v5178_v50 = vld [vmem:[%s6523_s5 + $0x80] sm:$0xff] }
 0x424   : > { %3568 = vrot.lane.b32.xlu1 %v3567_v62, %s3602_s22 }
 0x429   : > { %v2086_v55 = vld [vmem:[#allocation2 + $0x51] sm:$0xff] }
 0x42a   : > { %v2077_v8 = vld [vmem:[#allocation2 + $0x11] sm:$0xff] }
 0x42b   : > { %v3577_v19 = vpack.i.bf16 %v2086_v55, %v2077_v8  ;;  %v2095_v42 = vld [vmem:[#allocation2 + $0x17] sm:$0xff] }
 0x42d   : > { %3578 = vrot.lane.b32.xlu0 %v3577_v19, %s3602_s22  ;;  %v2028_v32 = vpop.permute.xlu0 %2027 }
 0x42e   : > { %v2046_v5 = vmax.f32 %v4869_v31, %v2028_v32  ;;  %v4959_v31 = vld [vmem:[%s6523_s5 + $0xe8] sm:$0xff] }
 0x42f   : > { %2268 = vmatpush.msra.mxu3 %v4959_v31  ;;  %2186 = vmatpush.msra.mxu1 %v4959_v31 }
 0x430   : > { %v2058_v1 = vadd.f32 %v4893_v7, %v2046_v5  ;;  %v2069_v5 = vld [vmem:[#allocation2] sm:$0xff] }
 0x432   : > { %2066 = vst.msk [vmem:[#allocation2 + $0x68] sm:$0xff] %vm1272_vm15, %v2058_v1  ;;  %v2078_v1 = vld [vmem:[#allocation2 + $0x40] sm:$0xff] }
 0x435   : > { %2298 = vrot.lane.b32.xlu0 %v4923_v2, %s3602_s22  ;;  %v2030_v15 = vpop.permute.xlu1 %2029 }
 0x436   : > { %v2047_v23 = vmax.f32 %v4881_v34, %v2030_v15  ;;  %v1241_v54 = vpop.permute.xlu0 %1240  ;;  %v5007_v34 = vld [vmem:[%s6523_s5 + $0x50] sm:$0xff] }
 0x437   : > { %v1258_v10 = vmax.f32 %v4883_v38, %v1241_v54  ;;  %v5014_v38 = vld [vmem:[%s6523_s5 + $0xd0] sm:$0xff]  ;;  %2245 = vmatpush.msra.mxu2 %v5007_v34  ;;  %2163 = vmatpush.msra.mxu0 %v5007_v34 }
 0x438   : > { %v2059_v24 = vadd.f32 %v4893_v7, %v2047_v23  ;;  %v5021_v7 = vld [vmem:[%s6523_s5 + $0x48] sm:$0xff] }
 0x439   : > { %v1270_v6 = vadd.f32 %v4766_v49, %v1258_v10  ;;  %v4969_v45 = vld [vmem:[#allocation2 + $0x68] sm:$0xff]  ;;  %v4986_v49 = vld [vmem:[%s6523_s5 + $0xe0] sm:$0xff]  ;;  %2246 = vmatpush.msra.mxu2 %v5021_v7  ;;  %2164 = vmatpush.msra.mxu0 %v5021_v7 }
 0x43a   : > { %2067 = vst.msk [vmem:[#allocation2 + $0x70] sm:$0xff] %vm1272_vm15, %v2059_v24  ;;  %v3572_v17 = vpack.i.bf16 %v4969_v45, %v4967_v4  ;;  %2269 = vmatpush.msra.mxu3 %v4986_v49  ;;  %2187 = vmatpush.msra.mxu1 %v4986_v49  ;;  %v2070_v10 = vld [vmem:[#allocation2 + $0x8] sm:$0xff] }
 0x43b   : > { %1279 = vst.msk [vmem:[#allocation2 + $0x30] sm:$0xff] %vm1272_vm15, %v1270_v6  ;;  %2247 = vmatpush.msra.mxu2 %v5037_v57  ;;  %2165 = vmatpush.msra.mxu0 %v5037_v57 }
 0x43c   : > { %3573 = vrot.lane.b32.xlu2 %v3572_v17, %s3602_s22  ;;  %2270 = vmatpush.msra.mxu3 %v5001_v56 }
 0x43d   : > { %2188 = vmatpush.msra.mxu1 %v5001_v56  ;;  %2248 = vmatpush.msra.mxu2 %v5059_v0 }
 0x43e   : > { %2271 = vmatpush.msra.mxu3 %v5014_v38  ;;  %2166 = vmatpush.msra.mxu0 %v5059_v0 }
 0x43f   : > { %2189 = vmatpush.msra.mxu1 %v5014_v38  ;;  %2249 = vmatpush.msra.mxu2 %v5073_v47 }
 0x440   : > { %2272 = vmatpush.msra.mxu3 %v5028_v25  ;;  %2167 = vmatpush.msra.mxu0 %v5073_v47 }
 0x441   : > { %v5031_v29 = vld [vmem:[#allocation2 + $0x70] sm:$0xff]  ;;  %2190 = vmatpush.msra.mxu1 %v5028_v25  ;;  %2250 = vmatpush.msra.mxu2 %v5088_v52 }
 0x442   : > { %v5040_v61 = vld [vmem:[#allocation2 + $0x2e] sm:$0xff]  ;;  %2273 = vmatpush.msra.mxu3 %v5048_v13  ;;  %2168 = vmatpush.msra.mxu0 %v5088_v52 }
 0x443   : > { %v5042_v18 = vld [vmem:[#allocation2 + $0x30] sm:$0xff]  ;;  %2300 = vrot.lane.b32.xlu0 %v5040_v61, %s3602_s22  ;;  %2191 = vmatpush.msra.mxu1 %v5048_v13 }
 0x444   : > { %v3582_v20 = vpack.i.bf16 %v5031_v29, %v5042_v18  ;;  %2368 = vrot.lane.b32.xlu2 %v2093_v41, %s3602_s22  ;;  %2274 = vmatpush.msra.mxu3 %v5066_v46 }
 0x445   : > { %2192 = vmatpush.msra.mxu1 %v5066_v46  ;;  %2251 = vmatpush.msra.mxu2 %v5104_v12 }
 0x446   : > { %3583 = vrot.lane.b32.xlu1 %v3582_v20, %s3602_s22  ;;  %2275 = vmatpush.msra.mxu3 %v5081_v44  ;;  %v2071_v20 = vld [vmem:[#allocation2 + $0x10] sm:$0xff] }
 0x447   : > { %2252 = vmatpush.msra.mxu2 %v5120_v37  ;;  %2193 = vmatpush.msra.mxu1 %v5081_v44 }
 0x448   : > { %2276 = vmatpush.msra.mxu3 %v5097_v30  ;;  %2169 = vmatpush.msra.mxu0 %v5104_v12 }
 0x449   : > { %2253 = vmatpush.msra.mxu2 %v5136_v39  ;;  %2194 = vmatpush.msra.mxu1 %v5097_v30 }
 0x44a   : > { %2277 = vmatpush.msra.mxu3 %v5113_v33  ;;  %2170 = vmatpush.msra.mxu0 %v5120_v37 }
 0x44b   : > { %2195 = vmatpush.msra.mxu1 %v5113_v33  ;;  %2254 = vmatpush.msra.mxu2 %v5160_v58 }
 0x44c   : > { %1242 = vrot.lane.b32.xlu2 %v5107_v16, %s3602_s22  ;;  %2278 = vmatpush.msra.mxu3 %v5129_v36 }
 0x44d   : > { %2196 = vmatpush.msra.mxu1 %v5129_v36  ;;  %2171 = vmatpush.msra.mxu0 %v5136_v39 }
 0x44e   : > { %2370 = vrot.lane.b32.xlu1 %v2094_v28, %s3602_s22  ;;  %2279 = vmatpush.msra.mxu3 %v5142_v40  ;;  %v5281_v28 = vpop.f32.mrf.mxu3 }
 0x44f   : > { %2197 = vmatpush.msra.mxu1 %v5142_v40  ;;  %2172 = vmatpush.msra.mxu0 %v5160_v58 }
 0x450   : > { %2280 = vmatpush.msra.mxu3 %v5165_v22  ;;  %2255 = vmatpush.msra.mxu2 %v5170_v43 }
 0x451   : > { %2198 = vmatpush.msra.mxu1 %v5165_v22  ;;  %2173 = vmatpush.msra.mxu0 %v5170_v43 }
 0x452   : > { %2281 = vmatpush.msra.mxu3 %v5178_v50  ;;  %2380 = vmatpush.msrb.mxu2 %v4930_v51 }
 0x453   : > { %2199 = vmatpush.msra.mxu1 %v5178_v50  ;;  %2310 = vmatpush.msrb.mxu0 %v4930_v51 }
 0x454   : > { %2406 = vmatpush.msrb.mxu3 %v4935_v14  ;;  %2381 = vmatpush.msrb.mxu2 %v4940_v26 }
 0x455   : > { %2336 = vmatpush.msrb.mxu1 %v4935_v14  ;;  %2311 = vmatpush.msrb.mxu0 %v4940_v26 }
 0x456   : > { %2372 = vrot.lane.b32.xlu1 %v2095_v42, %s3602_s22  ;;  %2407 = vmatpush.msrb.mxu3 %v4948_v9 }
 0x457   : > { %2382 = vmatpush.msrb.mxu2 %v4954_v27  ;;  %2337 = vmatpush.msrb.mxu1 %v4948_v9 }
 0x458   : > { %2408 = vmatpush.msrb.mxu3 %v4959_v31  ;;  %2312 = vmatpush.msrb.mxu0 %v4954_v27  ;;  %v2079_v27 = vld [vmem:[#allocation2 + $0x48] sm:$0xff] }
 0x459   : > { %2383 = vmatpush.msrb.mxu2 %v4974_v63  ;;  %2338 = vmatpush.msrb.mxu1 %v4959_v31 }
 0x45a   : > { %2409 = vmatpush.msrb.mxu3 %v4986_v49  ;;  %2313 = vmatpush.msrb.mxu0 %v4974_v63 }
 0x45b   : > { %2384 = vmatpush.msrb.mxu2 %v4992_v21  ;;  %2339 = vmatpush.msrb.mxu1 %v4986_v49 }
 0x45c   : > { %2410 = vmatpush.msrb.mxu3 %v5001_v56  ;;  %2314 = vmatpush.msrb.mxu0 %v4992_v21 }
 0x45d   : > { %2385 = vmatpush.msrb.mxu2 %v5007_v34  ;;  %2340 = vmatpush.msrb.mxu1 %v5001_v56 }
 0x45e   : > { %2411 = vmatpush.msrb.mxu3 %v5014_v38  ;;  %2315 = vmatpush.msrb.mxu0 %v5007_v34 }
 0x45f   : > { %2386 = vmatpush.msrb.mxu2 %v5021_v7  ;;  %2341 = vmatpush.msrb.mxu1 %v5014_v38 }
 0x460   : > { %2412 = vmatpush.msrb.mxu3 %v5028_v25  ;;  %2316 = vmatpush.msrb.mxu0 %v5021_v7 }
 0x461   : > { %2387 = vmatpush.msrb.mxu2 %v5037_v57  ;;  %2342 = vmatpush.msrb.mxu1 %v5028_v25 }
 0x462   : > { %2413 = vmatpush.msrb.mxu3 %v5048_v13  ;;  %2317 = vmatpush.msrb.mxu0 %v5037_v57 }
 0x463   : > { %2388 = vmatpush.msrb.mxu2 %v5059_v0  ;;  %2343 = vmatpush.msrb.mxu1 %v5048_v13 }
 0x464   : > { %2414 = vmatpush.msrb.mxu3 %v5066_v46  ;;  %2318 = vmatpush.msrb.mxu0 %v5059_v0  ;;  %v2080_v0 = vld [vmem:[#allocation2 + $0x50] sm:$0xff] }
 0x465   : > { %2389 = vmatpush.msrb.mxu2 %v5073_v47  ;;  %2344 = vmatpush.msrb.mxu1 %v5066_v46 }
 0x466   : > { %2415 = vmatpush.msrb.mxu3 %v5081_v44  ;;  %2319 = vmatpush.msrb.mxu0 %v5073_v47 }
 0x467   : > { %2390 = vmatpush.msrb.mxu2 %v5088_v52  ;;  %2345 = vmatpush.msrb.mxu1 %v5081_v44 }
 0x468   : > { %2416 = vmatpush.msrb.mxu3 %v5097_v30  ;;  %2320 = vmatpush.msrb.mxu0 %v5088_v52  ;;  %v2087_v52 = vld [vmem:[#allocation2 + $0x6] sm:$0xff] }
 0x469   : > { %2391 = vmatpush.msrb.mxu2 %v5104_v12  ;;  %2346 = vmatpush.msrb.mxu1 %v5097_v30 }
 0x46a   : > { %2417 = vmatpush.msrb.mxu3 %v5113_v33  ;;  %2321 = vmatpush.msrb.mxu0 %v5104_v12 }
 0x46b   : > { %2392 = vmatpush.msrb.mxu2 %v5120_v37  ;;  %2347 = vmatpush.msrb.mxu1 %v5113_v33  ;;  %v2088_v33 = vld [vmem:[#allocation2 + $0xe] sm:$0xff] }
 0x46c   : > { %2418 = vmatpush.msrb.mxu3 %v5129_v36  ;;  %2322 = vmatpush.msrb.mxu0 %v5120_v37 }
 0x46d   : > { %2393 = vmatpush.msrb.mxu2 %v5136_v39  ;;  %2348 = vmatpush.msrb.mxu1 %v5129_v36 }
 0x46e   : > { %2419 = vmatpush.msrb.mxu3 %v5142_v40  ;;  %2323 = vmatpush.msrb.mxu0 %v5136_v39  ;;  %v2089_v39 = vld [vmem:[#allocation2 + $0x16] sm:$0xff] }
 0x46f   : > { %2394 = vmatpush.msrb.mxu2 %v5160_v58  ;;  %2349 = vmatpush.msrb.mxu1 %v5142_v40 }
 0x470   : > { %2420 = vmatpush.msrb.mxu3 %v5165_v22  ;;  %2324 = vmatpush.msrb.mxu0 %v5160_v58 }
 0x471   : > { %2395 = vmatpush.msrb.mxu2 %v5170_v43  ;;  %2350 = vmatpush.msrb.mxu1 %v5165_v22 }
 0x472   : > { %2421 = vmatpush.msrb.mxu3 %v5178_v50  ;;  %2325 = vmatpush.msrb.mxu0 %v5170_v43 }
 0x473   : > { %2351 = vmatpush.msrb.mxu1 %v5178_v50 }
 0x476   : > { %v3559_v53 = vpop.permute.xlu2 %3558 }
 0x477   : > { %v3561_v60 = vunpack.i.h.bf16 %v3559_v53  ;;  %v3560_v62 = vunpack.i.l.bf16 %v3559_v53 }
 0x479   : > { %v2234_v55 = vsel %vm1272_vm15, %v4904_v11, %v3560_v62  ;;  %v2237_v8 = vsel %vm1272_vm15, %v4906_v35, %v3561_v60 }
 0x47a   : > { %2256 = vmatmul.f32.vlgmr.msra.gmra.mxu2 %v2234_v55  ;;  %2282 = vmatmul.f32.vlgmr.msra.gmra.mxu3 %v2237_v8 }
 0x48f   : > { %v3564_v19 = vpop.permute.xlu0 %3563 }
 0x490   : > { %v3566_v32 = vunpack.i.h.bf16 %v3564_v19  ;;  %v3565_v11 = vunpack.i.l.bf16 %v3564_v19 }
 0x492   : > { %v2120_v35 = vsel %vm1272_vm15, %v2069_v5, %v3565_v11  ;;  %v2123_v15 = vsel %vm1272_vm15, %v2078_v1, %v3566_v32 }
 0x493   : > { %2174 = vmatmul.f32.vlgmr.msra.gmra.mxu0 %v2120_v35  ;;  %2200 = vmatmul.f32.vlgmr.msra.gmra.mxu1 %v2123_v15 }
 0x496   : > { %v3569_v51 = vpop.permute.xlu1 %3568  ;;  %v3574_v14 = vpop.permute.xlu2 %3573 }
 0x497   : > { %v3571_v26 = vunpack.i.h.bf16 %v3569_v51  ;;  %v3570_v23 = vunpack.i.l.bf16 %v3569_v51  ;;  %v3576_v54 = vunpack.i.h.bf16 %v3574_v14  ;;  %v3575_v9 = vunpack.i.l.bf16 %v3574_v14 }
 0x499   : > { %v2121_v31 = vsel %vm1272_vm15, %v2070_v10, %v3575_v9  ;;  %v2124_v24 = vsel %vm1272_vm15, %v2079_v27, %v3576_v54  ;;  %v2235_v6 = vsel %vm1272_vm15, %v4967_v4, %v3570_v23  ;;  %v2238_v63 = vsel %vm1272_vm15, %v4969_v45, %v3571_v26  ;;  %v3592_v45 = vld [vmem:[%s6522_s4] ss:$0 sm:$0xff] }
 0x49a   : > { %2259 = vmatmul.f32.gmra.mxu2 %v2235_v6  ;;  %2285 = vmatmul.f32.gmra.mxu3 %v2238_v63 }
 0x49b   : > { %2177 = vmatmul.f32.gmra.mxu0 %v2121_v31  ;;  %2203 = vmatmul.f32.gmra.mxu1 %v2124_v24  ;;  %v3591_v31 = vld [vmem:[%s6524_s6] ss:$0 sm:$0xff] }
 0x49e   : > { %v2369_v17 = vpop.permute.xlu2 %2368 }
 0x49f   : > { %v3579_v49 = vpop.permute.xlu0 %3578  ;;  %v2377_v57 = vsel %vm1272_vm15, %v4923_v2, %v2369_v17  ;;  %v2617_v17 = vld [vmem:[%s6525_s7 + $0x1b0] sm:$0xff] }
 0x4a0   : > { %v3581_v21 = vunpack.i.h.bf16 %v3579_v49  ;;  %v3580_v56 = vunpack.i.l.bf16 %v3579_v49 }
 0x4a2   : > { %v2236_v34 = vsel %vm1272_vm15, %v5042_v18, %v3580_v56  ;;  %v2239_v38 = vsel %vm1272_vm15, %v5031_v29, %v3581_v21 }
 0x4a3   : > { %2262 = vmatmul.f32.gmra.mxu2 %v2236_v34  ;;  %2288 = vmatmul.f32.gmra.mxu3 %v2239_v38 }
 0x4a6   : > { %v1243_v4 = vpop.permute.xlu2 %1242 }
 0x4a7   : > { %v1259_v7 = vmax.f32 %v5107_v16, %v1243_v4  ;;  %v2299_v2 = vpop.permute.xlu0 %2298 }
 0x4a8   : > { %v2307_v48 = vsel %vm1272_vm15, %v2087_v52, %v2299_v2 }
 0x4a9   : > { %v1271_v25 = vadd.f32 %v3592_v45, %v1259_v7 }
 0x4ab   : > { %1280 = vst.msk [vmem:[#allocation2 + $0x38] sm:$0xff] %vm1272_vm15, %v1271_v25  ;;  %2396 = vmatmul.f32.vlgmr.msrb.gmra.mxu2 %v2237_v8  ;;  %2422 = vmatmul.f32.vlgmr.msrb.gmra.mxu3 %v2377_v57 }
 0x4b2   : > { %v2092_v18 = vld [vmem:[#allocation2 + $0x36] sm:$0xff] }
 0x4b3   : > { %2399 = vmatmul.f32.gmra.mxu2 %v2238_v63  ;;  %2302 = vrot.lane.b32.xlu2 %v2092_v18, %s3602_s22 }
 0x4b5   : > { %v2301_v30 = vpop.permute.xlu0 %2300 }
 0x4b6   : > { %v2308_v37 = vsel %vm1272_vm15, %v2088_v33, %v2301_v30 }
 0x4b8   : > { %v3584_v29 = vpop.permute.xlu1 %3583 }
 0x4b9   : > { %v3586_v13 = vunpack.i.h.bf16 %v3584_v29  ;;  %v3585_v41 = vunpack.i.l.bf16 %v3584_v29 }
 0x4bb   : > { %v2122_v46 = vsel %vm1272_vm15, %v2071_v20, %v3585_v41  ;;  %v2125_v47 = vsel %vm1272_vm15, %v2080_v0, %v3586_v13  ;;  %2402 = vmatmul.f32.gmra.mxu2 %v2239_v38 }
 0x4bc   : > { %2180 = vmatmul.f32.gmra.mxu0 %v2122_v46  ;;  %2206 = vmatmul.f32.gmra.mxu1 %v2125_v47 }
 0x4c0   : > { %v2371_v59 = vpop.permute.xlu1 %2370 }
 0x4c1   : > { %v2378_v44 = vsel %vm1272_vm15, %v5040_v61, %v2371_v59  ;;  %v5283_v61 = vpop.f32.mrf.mxu2 }
 0x4c2   : > { %2425 = vmatmul.f32.gmra.mxu3 %v2378_v44 }
 0x4c4   : > { %2326 = vmatmul.f32.vlgmr.msrb.gmra.mxu0 %v2123_v15  ;;  %2352 = vmatmul.f32.vlgmr.msrb.gmra.mxu1 %v2307_v48 }
 0x4c8   : > { %v2373_v12 = vpop.permute.xlu1 %2372 }
 0x4c9   : > { %v2379_v16 = vsel %vm1272_vm15, %v2092_v18, %v2373_v12 }
 0x4ca   : > { %2428 = vmatmul.f32.gmra.mxu3 %v2379_v16 }
 0x4cc   : > { %2329 = vmatmul.f32.gmra.mxu0 %v2124_v24  ;;  %2355 = vmatmul.f32.gmra.mxu1 %v2308_v37  ;;  %v2442_v24 = vlaneseq }
 0x4ce   : > { %vm2454_vm2 = vcmp.ge.s32.totalorder %v2442_v24, 64  ;;  %vm2455_vm3 = vcmp.lt.s32.totalorder %v2442_v24, 128 }
 0x4cf   : > { %vm5357_vm4 = vmand %vm2454_vm2, %vm2455_vm3 }
 0x4d4   : > { %2332 = vmatmul.f32.gmra.mxu0 %v2125_v47 }
 0x4fd   : > { %v2257_v42 = vpop.f32.mrf.mxu2  ;;  %v2283_v58 = vpop.f32.mrf.mxu3 }
 0x4fe   : > { %v2284_v15 = vadd.f32 %v2283_v58, %v2257_v42 }
 0x50d   : > { %v2303_v36 = vpop.permute.xlu2 %2302 }
 0x50e   : > { %v2309_v40 = vsel %vm1272_vm15, %v2089_v39, %v2303_v36  ;;  %vm5296_vm15 = vcmp.lt.s32.totalorder %v2442_v24, 64 }
 0x50f   : > { %2358 = vmatmul.f32.gmra.mxu1 %v2309_v40 }
 0x510   : > { %v2175_v50 = vpop.f32.mrf.mxu0  ;;  %v2201_v53 = vpop.f32.mrf.mxu1 }
 0x511   : > { %v2202_v35 = vadd.f32 %v2201_v53, %v2175_v50  ;;  %v2593_v50 = vld [vmem:[%s6525_s7 + $0xf0] sm:$0xff] }
 0x512   : > { %v2625_v53 = vld [vmem:[%s6525_s7 + $0x1f0] sm:$0xff]  ;;  %2911 = vmatpush.msra.mxu0 %v2593_v50  ;;  %v2599_v50 = vld [vmem:[%s6525_s7 + $0x120] sm:$0xff] }
 0x513   : > { %v2292_v54 = vmax.f32 %v2202_v35, %v2284_v15  ;;  %2931 = vmatpush.msra.mxu1 %v2625_v53  ;;  %v2631_v53 = vld [vmem:[%s6525_s7 + $0x220] sm:$0xff] }
 0x518   : > { %v2178_v8 = vpop.f32.mrf.mxu0  ;;  %v2204_v19 = vpop.f32.mrf.mxu1 }
 0x519   : > { %v2205_v34 = vadd.f32 %v2204_v19, %v2178_v8  ;;  %v2687_v8 = vld [vmem:[%s6525_s7 + $0x3e0] sm:$0xff] }
 0x51d   : > { %v2260_v22 = vpop.f32.mrf.mxu2  ;;  %v2286_v43 = vpop.f32.mrf.mxu3 }
 0x51e   : > { %v2287_v56 = vadd.f32 %v2286_v43, %v2260_v22  ;;  %v1999_v43 = vadd.f32 %v5281_v28, %v5283_v61  ;;  %v2591_v28 = vld [vmem:[%s6525_s7 + $0xe0] sm:$0xff] }
 0x51f   : > { %v2623_v61 = vld [vmem:[%s6525_s7 + $0x1e0] sm:$0xff]  ;;  %2912 = vmatpush.msra.mxu0 %v2591_v28  ;;  %v2597_v28 = vld [vmem:[%s6525_s7 + $0x110] sm:$0xff] }
 0x520   : > { %v2293_v4 = vmax.f32 %v2205_v34, %v2287_v56  ;;  %v2008_v19 = vmax.f32 %v4831_v3, %v1999_v43  ;;  %2932 = vmatpush.msra.mxu1 %v2623_v61  ;;  %v2583_v56 = vld [vmem:[%s6525_s7 + $0xa0] sm:$0xff]  ;;  %v2629_v61 = vld [vmem:[%s6525_s7 + $0x210] sm:$0xff]  ;;  %v2604_v3 = vld [vmem:[%s6525_s7 + $0x148] sm:$0xff] }
 0x521   : > { %v2615_v34 = vld [vmem:[%s6525_s7 + $0x1a0] sm:$0xff] }
 0x522   : > { %v2567_v43 = vld [vmem:[%s6525_s7 + $0x20] sm:$0xff] }
 0x526   : > { %v2263_v60 = vpop.f32.mrf.mxu2  ;;  %v2289_v62 = vpop.f32.mrf.mxu3 }
 0x527   : > { %v5286_v55 = vadd.f32 %v2289_v62, %v2263_v60  ;;  %v2657_v60 = vld [vmem:[%s6525_s7 + $0x2f0] sm:$0xff] }
 0x528   : > { %v2689_v62 = vld [vmem:[%s6525_s7 + $0x3f0] sm:$0xff]  ;;  %2951 = vmatpush.msra.mxu2 %v2657_v60  ;;  %v2663_v60 = vld [vmem:[%s6525_s7 + $0x320] sm:$0xff] }
 0x529   : > { %2971 = vmatpush.msra.mxu3 %v2689_v62  ;;  %v2565_v62 = vld [vmem:[%s6525_s7 + $0x10] sm:$0xff] }
 0x52b   : > { %2972 = vmatpush.msra.mxu3 %v2687_v8  ;;  %v2563_v8 = vld [vmem:[%s6525_s7] sm:$0xff] }
 0x52e   : > { %v2397_v51 = vpop.f32.mrf.mxu2  ;;  %v2423_v14 = vpop.f32.mrf.mxu3 }
 0x52f   : > { %v2424_v10 = vadd.f32 %v2423_v14, %v2397_v51 }
 0x536   : > { %v2400_v25 = vpop.f32.mrf.mxu2 }
 0x539   : > { %v2181_v32 = vpop.f32.mrf.mxu0  ;;  %v2207_v11 = vpop.f32.mrf.mxu1 }
 0x53a   : > { %v5288_v5 = vadd.f32 %v2207_v11, %v2181_v32 }
 0x53c   : > { %v2294_v1 = vmax.f32 %v5288_v5, %v5286_v55  ;;  %v2655_v55 = vld [vmem:[%s6525_s7 + $0x2e0] sm:$0xff] }
 0x53d   : > { %2952 = vmatpush.msra.mxu2 %v2655_v55  ;;  %v2661_v55 = vld [vmem:[%s6525_s7 + $0x310] sm:$0xff] }
 0x53e   : > { %v2403_v12 = vpop.f32.mrf.mxu2 }
 0x541   : > { %v2327_v26 = vpop.f32.mrf.mxu0  ;;  %v2353_v23 = vpop.f32.mrf.mxu1 }
 0x542   : > { %v2354_v9 = vadd.f32 %v2353_v23, %v2327_v26  ;;  %v2589_v26 = vld [vmem:[%s6525_s7 + $0xd0] sm:$0xff] }
 0x543   : > { %v2621_v23 = vld [vmem:[%s6525_s7 + $0x1d0] sm:$0xff]  ;;  %2913 = vmatpush.msra.mxu0 %v2589_v26  ;;  %v2783_v26 = vld [vmem:[%s6525_s7 + $0x6e0] sm:$0xff] }
 0x544   : > { %v2362_v27 = vmax.f32 %v2292_v54, %v2354_v9  ;;  %v2653_v54 = vld [vmem:[%s6525_s7 + $0x2d0] sm:$0xff]  ;;  %2933 = vmatpush.msra.mxu1 %v2621_v23  ;;  %v2815_v23 = vld [vmem:[%s6525_s7 + $0x7e0] sm:$0xff] }
 0x545   : > { %v2426_v7 = vpop.f32.mrf.mxu3  ;;  %v2685_v9 = vld [vmem:[%s6525_s7 + $0x3d0] sm:$0xff]  ;;  %2953 = vmatpush.msra.mxu2 %v2653_v54 }
 0x546   : > { %v2432_v6 = vmax.f32 %v2362_v27, %v2424_v10  ;;  %v2427_v18 = vadd.f32 %v2426_v7, %v2400_v25  ;;  %v2587_v10 = vld [vmem:[%s6525_s7 + $0xc0] sm:$0xff]  ;;  %2973 = vmatpush.msra.mxu3 %v2685_v9  ;;  %v2581_v7 = vld [vmem:[%s6525_s7 + $0x90] sm:$0xff] }
 0x547   : > { %v2619_v27 = vld [vmem:[%s6525_s7 + $0x1c0] sm:$0xff]  ;;  %2914 = vmatpush.msra.mxu0 %v2587_v10  ;;  %v2645_v25 = vld [vmem:[%s6525_s7 + $0x290] sm:$0xff] }
 0x548   : > { %v2439_v63 = vadd.f32 %v3591_v31, %v2432_v6  ;;  %v2683_v6 = vld [vmem:[%s6525_s7 + $0x3c0] sm:$0xff]  ;;  %2934 = vmatpush.msra.mxu1 %v2619_v27  ;;  %v2717_v54 = vld [vmem:[%s6525_s7 + $0x4d0] sm:$0xff] }
 0x549   : > { %v2330_v49 = vpop.f32.mrf.mxu0  ;;  %v2356_v21 = vpop.f32.mrf.mxu1  ;;  %2974 = vmatpush.msra.mxu3 %v2683_v6  ;;  %v2749_v9 = vld [vmem:[%s6525_s7 + $0x5d0] sm:$0xff]  ;;  %v2715_v6 = vld [vmem:[%s6525_s7 + $0x4c0] sm:$0xff] }
 0x54a   : > { %2448 = vst [vmem:[#allocation1] sm:$0xff] %v2439_v63  ;;  %v2357_v38 = vadd.f32 %v2356_v21, %v2330_v49  ;;  %v2649_v49 = vld [vmem:[%s6525_s7 + $0x2b0] sm:$0xff]  ;;  %2935 = vmatpush.msra.mxu1 %v2617_v17  ;;  %v2779_v17 = vld [vmem:[%s6525_s7 + $0x6c0] sm:$0xff] }
 0x54b   : > { %2446 = vst.msk [vmem:[#allocation3] sm:$0x1] %vm5296_vm15, %v2439_v63  ;;  %v2681_v21 = vld [vmem:[%s6525_s7 + $0x3b0] sm:$0xff] }
 0x54c   : > { %v2363_v45 = vmax.f32 %v2293_v4, %v2357_v38  ;;  %v2647_v38 = vld [vmem:[%s6525_s7 + $0x2a0] sm:$0xff]  ;;  %2975 = vmatpush.msra.mxu3 %v2681_v21  ;;  %2936 = vmatpush.msra.mxu1 %v2615_v34  ;;  %v2781_v27 = vld [vmem:[%s6525_s7 + $0x6d0] sm:$0xff] }
 0x54d   : > { %v2429_v44 = vpop.f32.mrf.mxu3  ;;  %v2679_v4 = vld [vmem:[%s6525_s7 + $0x3a0] sm:$0xff]  ;;  %v2713_v21 = vld [vmem:[%s6525_s7 + $0x4b0] sm:$0xff] }
 0x54e   : > { %v2433_v29 = vmax.f32 %v2363_v45, %v2427_v18  ;;  %v2430_v16 = vadd.f32 %v2429_v44, %v2403_v12  ;;  %2976 = vmatpush.msra.mxu3 %v2679_v4  ;;  %v2613_v45 = vld [vmem:[%s6525_s7 + $0x190] sm:$0xff]  ;;  %v2579_v18 = vld [vmem:[%s6525_s7 + $0x80] sm:$0xff] }
 0x54f   : > { %2937 = vmatpush.msra.mxu1 %v2613_v45  ;;  %v2639_v44 = vld [vmem:[%s6525_s7 + $0x260] sm:$0xff]  ;;  %v2637_v12 = vld [vmem:[%s6525_s7 + $0x250] sm:$0xff] }
 0x550   : > { %v2440_v13 = vadd.f32 %v3591_v31, %v2433_v29  ;;  %v2611_v29 = vld [vmem:[%s6525_s7 + $0x180] sm:$0xff]  ;;  %v2777_v34 = vld [vmem:[%s6525_s7 + $0x6b0] sm:$0xff] }
 0x551   : > { %v2450_v57 = vld [vmem:[#allocation1 + $0x1] ss:$9 sm:$0xff]  ;;  %v2333_v52 = vpop.f32.mrf.mxu0  ;;  %2938 = vmatpush.msra.mxu1 %v2611_v29 }
 0x552   : > { %2458 = vst [vmem:[#allocation1] sm:$0xff] %v2439_v63  ;;  %2451 = vrot.lane.b32.xlu0 %v2450_v57, %s3602_s22  ;;  %v2677_v57 = vld [vmem:[%s6525_s7 + $0x390] sm:$0xff]  ;;  %v2711_v4 = vld [vmem:[%s6525_s7 + $0x4a0] sm:$0xff] }
 0x553   : > { %2977 = vmatpush.msra.mxu3 %v2677_v57  ;;  %v2775_v45 = vld [vmem:[%s6525_s7 + $0x6a0] sm:$0xff]  ;;  %v2709_v57 = vld [vmem:[%s6525_s7 + $0x490] sm:$0xff] }
 0x559   : > { %v2460_v41 = vld [vmem:[#allocation1 + $0x2] ss:$9 sm:$0xff] }
 0x55a   : > { %2463 = vst [vmem:[#allocation1] sm:$0xff] %v2439_v63  ;;  %2488 = vrot.lane.b32.xlu0 %v2440_v13, %s3602_s22 }
 0x55b   : > { %2462 = vst.msk [vmem:[#allocation3 + $0x1] sm:$0x1] %vm5296_vm15, %v2460_v41  ;;  %v2675_v41 = vld [vmem:[%s6525_s7 + $0x380] sm:$0xff] }
 0x55c   : > { %2978 = vmatpush.msra.mxu3 %v2675_v41  ;;  %v2805_v41 = vld [vmem:[%s6525_s7 + $0x790] sm:$0xff] }
 0x561   : > { %v2465_v20 = vld [vmem:[#allocation1 + $0x3] ss:$9 sm:$0xff] }
 0x562   : > { %2470 = vst [vmem:[#allocation1] sm:$0xff] %v2439_v63  ;;  %2466 = vrot.lane.b32.xlu1 %v2465_v20, %s3602_s22  ;;  %v2577_v20 = vld [vmem:[%s6525_s7 + $0x70] sm:$0xff] }
 0x569   : > { %v2472_v0 = vld [vmem:[#allocation1 + $0x4] ss:$9 sm:$0xff] }
 0x56a   : > { %2475 = vst [vmem:[#allocation1] sm:$0xff] %v2439_v63 }
 0x56b   : > { %2474 = vst.msk [vmem:[#allocation3 + $0x2] sm:$0x1] %vm5296_vm15, %v2472_v0  ;;  %v2609_v0 = vld [vmem:[%s6525_s7 + $0x170] sm:$0xff] }
 0x56c   : > { %2939 = vmatpush.msra.mxu1 %v2609_v0  ;;  %v2739_v0 = vld [vmem:[%s6525_s7 + $0x580] sm:$0xff] }
 0x571   : > { %v2477_v46 = vld [vmem:[#allocation1 + $0x6] ss:$9 sm:$0xff] }
 0x572   : > { %2482 = vst [vmem:[#allocation1] sm:$0xff] %v2439_v63  ;;  %2478 = vrot.lane.b32.xlu2 %v2477_v46, %s3602_s22  ;;  %v2585_v63 = vld [vmem:[%s6525_s7 + $0xb0] sm:$0xff] }
 0x573   : > { %2915 = vmatpush.msra.mxu0 %v2585_v63  ;;  %v2641_v46 = vld [vmem:[%s6525_s7 + $0x270] sm:$0xff]  ;;  %v2747_v63 = vld [vmem:[%s6525_s7 + $0x5c0] sm:$0xff] }
 0x575   : > { %2916 = vmatpush.msra.mxu0 %v2583_v56  ;;  %v2745_v56 = vld [vmem:[%s6525_s7 + $0x5b0] sm:$0xff] }
 0x577   : > { %2917 = vmatpush.msra.mxu0 %v2581_v7  ;;  %v2743_v7 = vld [vmem:[%s6525_s7 + $0x5a0] sm:$0xff] }
 0x579   : > { %v2484_v47 = vld [vmem:[#allocation1 + $0x7] ss:$9 sm:$0xff]  ;;  %2918 = vmatpush.msra.mxu0 %v2579_v18 }
 0x57a   : > { %2492 = vst [vmem:[#allocation1] sm:$0xff] %v2440_v13  ;;  %v2741_v18 = vld [vmem:[%s6525_s7 + $0x590] sm:$0xff] }
 0x57b   : > { %2486 = vst.msk [vmem:[#allocation3 + $0x3] sm:$0x1] %vm5296_vm15, %v2484_v47  ;;  %v2673_v47 = vld [vmem:[%s6525_s7 + $0x370] sm:$0xff]  ;;  %2919 = vmatpush.msra.mxu0 %v2577_v20  ;;  %v2707_v20 = vld [vmem:[%s6525_s7 + $0x480] sm:$0xff] }
 0x57c   : > { %2979 = vmatpush.msra.mxu3 %v2673_v47  ;;  %v2803_v47 = vld [vmem:[%s6525_s7 + $0x780] sm:$0xff] }
 0x581   : > { %v2494_v2 = vld [vmem:[#allocation1 + $0x1] ss:$9 sm:$0xff] }
 0x582   : > { %2497 = vst [vmem:[#allocation1] sm:$0xff] %v2440_v13 }
 0x583   : > { %2496 = vst.msk [vmem:[#allocation3 + $0x4] sm:$0x1] %vm5296_vm15, %v2494_v2  ;;  %v2575_v2 = vld [vmem:[%s6525_s7 + $0x60] sm:$0xff] }
 0x584   : > { %2920 = vmatpush.msra.mxu0 %v2575_v2  ;;  %v2705_v2 = vld [vmem:[%s6525_s7 + $0x470] sm:$0xff] }
 0x589   : > { %v2499_v59 = vld [vmem:[#allocation1 + $0x2] ss:$9 sm:$0xff] }
 0x58a   : > { %2500 = vrot.lane.b32.xlu1 %v2499_v59, %s3602_s22  ;;  %2504 = vst [vmem:[#allocation1] sm:$0xff] %v2440_v13  ;;  %v2607_v59 = vld [vmem:[%s6525_s7 + $0x160] sm:$0xff] }
 0x58b   : > { %2940 = vmatpush.msra.mxu1 %v2607_v59  ;;  %v2737_v59 = vld [vmem:[%s6525_s7 + $0x570] sm:$0xff] }
 0x58c   : > { %v2359_v48 = vpop.f32.mrf.mxu1 }
 0x58d   : > { %v2360_v30 = vadd.f32 %v2359_v48, %v2333_v52  ;;  %v2671_v52 = vld [vmem:[%s6525_s7 + $0x360] sm:$0xff]  ;;  %v2573_v48 = vld [vmem:[%s6525_s7 + $0x50] sm:$0xff] }
 0x58e   : > { %2980 = vmatpush.msra.mxu3 %v2671_v52  ;;  %2921 = vmatpush.msra.mxu0 %v2573_v48  ;;  %v2801_v52 = vld [vmem:[%s6525_s7 + $0x770] sm:$0xff]  ;;  %v2703_v48 = vld [vmem:[%s6525_s7 + $0x460] sm:$0xff] }
 0x58f   : > { %v2364_v33 = vmax.f32 %v2294_v1, %v2360_v30  ;;  %v2605_v30 = vld [vmem:[%s6525_s7 + $0x150] sm:$0xff] }
 0x590   : > { %2941 = vmatpush.msra.mxu1 %v2605_v30  ;;  %v2735_v30 = vld [vmem:[%s6525_s7 + $0x560] sm:$0xff] }
 0x591   : > { %v2506_v37 = vld [vmem:[#allocation1 + $0x4] ss:$9 sm:$0xff]  ;;  %v2434_v36 = vmax.f32 %v2364_v33, %v2430_v16 }
 0x592   : > { %2509 = vst [vmem:[#allocation1] sm:$0xff] %v2440_v13  ;;  %v2669_v16 = vld [vmem:[%s6525_s7 + $0x350] sm:$0xff]  ;;  %v2571_v33 = vld [vmem:[%s6525_s7 + $0x40] sm:$0xff] }
 0x593   : > { %2508 = vst.msk [vmem:[#allocation3 + $0x5] sm:$0x1] %vm5296_vm15, %v2506_v37  ;;  %v2441_v39 = vadd.f32 %v3591_v31, %v2434_v36  ;;  %v2651_v31 = vld [vmem:[%s6525_s7 + $0x2c0] sm:$0xff]  ;;  %2981 = vmatpush.msra.mxu3 %v2669_v16  ;;  %2922 = vmatpush.msra.mxu0 %v2571_v33  ;;  %v2701_v33 = vld [vmem:[%s6525_s7 + $0x450] sm:$0xff] }
 0x594   : > { %2954 = vmatpush.msra.mxu2 %v2651_v31  ;;  %v2603_v37 = vld [vmem:[%s6525_s7 + $0x140] sm:$0xff]  ;;  %v2813_v31 = vld [vmem:[%s6525_s7 + $0x7d0] sm:$0xff] }
 0x595   : > { %2528 = vst.msk [vmem:[#allocation3 + $0x7] sm:$0x1] %vm5296_vm15, %v2441_v39  ;;  %v2635_v36 = vld [vmem:[%s6525_s7 + $0x240] sm:$0xff]  ;;  %2942 = vmatpush.msra.mxu1 %v2603_v37  ;;  %v2733_v37 = vld [vmem:[%s6525_s7 + $0x550] sm:$0xff] }
 0x596   : > { %2955 = vmatpush.msra.mxu2 %v2649_v49  ;;  %v2811_v49 = vld [vmem:[%s6525_s7 + $0x7c0] sm:$0xff] }
 0x597   : > { %v2799_v16 = vld [vmem:[%s6525_s7 + $0x760] sm:$0xff] }
 0x598   : > { %2956 = vmatpush.msra.mxu2 %v2647_v38  ;;  %v2809_v38 = vld [vmem:[%s6525_s7 + $0x7b0] sm:$0xff] }
 0x599   : > { %v2511_v40 = vld [vmem:[#allocation1 + $0x5] ss:$9 sm:$0xff] }
 0x59a   : > { %2512 = vrot.lane.b32.xlu2 %v2511_v40, %s3602_s22  ;;  %2516 = vst [vmem:[#allocation1] sm:$0xff] %v2440_v13  ;;  %2957 = vmatpush.msra.mxu2 %v2645_v25  ;;  %v2569_v40 = vld [vmem:[%s6525_s7 + $0x30] sm:$0xff]  ;;  %v2807_v25 = vld [vmem:[%s6525_s7 + $0x7a0] sm:$0xff] }
 0x59b   : > { %2923 = vmatpush.msra.mxu0 %v2569_v40  ;;  %v2699_v40 = vld [vmem:[%s6525_s7 + $0x440] sm:$0xff] }
 0x59d   : > { %2924 = vmatpush.msra.mxu0 %v2567_v43  ;;  %v2697_v43 = vld [vmem:[%s6525_s7 + $0x430] sm:$0xff] }
 0x59f   : > { %2925 = vmatpush.msra.mxu0 %v2565_v62  ;;  %v2695_v62 = vld [vmem:[%s6525_s7 + $0x420] sm:$0xff] }
 0x5a1   : > { %v2518_v42 = vld [vmem:[#allocation1 + $0x6] ss:$9 sm:$0xff]  ;;  %2926 = vmatpush.msra.mxu0 %v2563_v8 }
 0x5a2   : > { %2521 = vst [vmem:[#allocation1] sm:$0xff] %v2440_v13  ;;  %v2643_v13 = vld [vmem:[%s6525_s7 + $0x280] sm:$0xff]  ;;  %v2693_v8 = vld [vmem:[%s6525_s7 + $0x410] sm:$0xff] }
 0x5a3   : > { %2520 = vst.msk [vmem:[#allocation3 + $0x6] sm:$0x1] %vm5296_vm15, %v2518_v42  ;;  %2958 = vmatpush.msra.mxu2 %v2643_v13  ;;  %v2601_v42 = vld [vmem:[%s6525_s7 + $0x130] sm:$0xff] }
 0x5a4   : > { %2943 = vmatpush.msra.mxu1 %v2601_v42  ;;  %v2773_v13 = vld [vmem:[%s6525_s7 + $0x690] sm:$0xff]  ;;  %v2731_v42 = vld [vmem:[%s6525_s7 + $0x540] sm:$0xff] }
 0x5a5   : > { %2959 = vmatpush.msra.mxu2 %v2641_v46  ;;  %v2771_v46 = vld [vmem:[%s6525_s7 + $0x680] sm:$0xff] }
 0x5a6   : > { %2944 = vmatpush.msra.mxu1 %v2599_v50  ;;  %v2729_v50 = vld [vmem:[%s6525_s7 + $0x530] sm:$0xff] }
 0x5a7   : > { %2960 = vmatpush.msra.mxu2 %v2639_v44  ;;  %v2769_v44 = vld [vmem:[%s6525_s7 + $0x670] sm:$0xff] }
 0x5a8   : > { %2945 = vmatpush.msra.mxu1 %v2597_v28  ;;  %v2727_v28 = vld [vmem:[%s6525_s7 + $0x520] sm:$0xff] }
 0x5a9   : > { %v2523_v58 = vld [vmem:[#allocation1 + $0x7] ss:$9 sm:$0xff]  ;;  %2961 = vmatpush.msra.mxu2 %v2637_v12 }
 0x5aa   : > { %2524 = vrot.lane.b32.xlu0 %v2523_v58, %s3602_s22  ;;  %2530 = vst [vmem:[#allocation1] sm:$0xff] %v2441_v39  ;;  %v2633_v58 = vld [vmem:[%s6525_s7 + $0x230] sm:$0xff]  ;;  %v2767_v12 = vld [vmem:[%s6525_s7 + $0x660] sm:$0xff] }
 0x5ab   : > { %2962 = vmatpush.msra.mxu2 %v2635_v36  ;;  %v2765_v36 = vld [vmem:[%s6525_s7 + $0x650] sm:$0xff] }
 0x5ad   : > { %2963 = vmatpush.msra.mxu2 %v2633_v58  ;;  %v2763_v58 = vld [vmem:[%s6525_s7 + $0x640] sm:$0xff] }
 0x5af   : > { %2964 = vmatpush.msra.mxu2 %v2631_v53  ;;  %v2761_v53 = vld [vmem:[%s6525_s7 + $0x630] sm:$0xff] }
 0x5b1   : > { %v2532_v22 = vld [vmem:[#allocation1 + $0x2] ss:$9 sm:$0xff]  ;;  %2965 = vmatpush.msra.mxu2 %v2629_v61 }
 0x5b2   : > { %2533 = vrot.lane.b32.xlu1 %v2532_v22, %s3602_s22  ;;  %2537 = vst [vmem:[#allocation1] sm:$0xff] %v2441_v39  ;;  %v2665_v22 = vld [vmem:[%s6525_s7 + $0x330] sm:$0xff]  ;;  %v2759_v61 = vld [vmem:[%s6525_s7 + $0x620] sm:$0xff] }
 0x5b9   : > { %v2539_v32 = vld [vmem:[#allocation1 + $0x3] ss:$9 sm:$0xff] }
 0x5ba   : > { %2542 = vst [vmem:[#allocation1] sm:$0xff] %v2441_v39  ;;  %2031 = vrot.lane.b32.xlu1 %v2008_v19, %s3602_s22  ;;  %v2595_v19 = vld [vmem:[%s6525_s7 + $0x100] sm:$0xff] }
 0x5bb   : > { %2541 = vst.msk [vmem:[#allocation3 + $0x8] sm:$0x1] %vm5296_vm15, %v2539_v32  ;;  %v2627_v32 = vld [vmem:[%s6525_s7 + $0x200] sm:$0xff]  ;;  %2946 = vmatpush.msra.mxu1 %v2595_v19  ;;  %v2725_v19 = vld [vmem:[%s6525_s7 + $0x510] sm:$0xff] }
 0x5bc   : > { %2966 = vmatpush.msra.mxu2 %v2627_v32  ;;  %v2757_v32 = vld [vmem:[%s6525_s7 + $0x610] sm:$0xff] }
 0x5c1   : > { %v2544_v11 = vld [vmem:[#allocation1 + $0x4] ss:$9 sm:$0xff] }
 0x5c2   : > { %2545 = vrot.lane.b32.xlu2 %v2544_v11, %s3602_s22  ;;  %2549 = vst [vmem:[#allocation1] sm:$0xff] %v2441_v39  ;;  %v2659_v11 = vld [vmem:[%s6525_s7 + $0x300] sm:$0xff] }
 0x5c4   : > { %v2452_v5 = vpop.permute.xlu0 %2451 }
 0x5c5   : > { %2457 = vst.msk [vmem:[#allocation3] sm:$0x1] %vm5357_vm4, %v2452_v5  ;;  %v2721_v5 = vld [vmem:[%s6525_s7 + $0x4f0] sm:$0xff] }
 0x5c6   : > { %2991 = vmatpush.msrb.mxu0 %v2721_v5  ;;  %v2691_v5 = vld [vmem:[%s6525_s7 + $0x400] sm:$0xff] }
 0x5c9   : > { %v2551_v1 = vld [vmem:[#allocation1 + $0x5] ss:$9 sm:$0xff] }
 0x5ca   : > { %2554 = vst [vmem:[#allocation1] sm:$0xff] %v2441_v39  ;;  %v2667_v39 = vld [vmem:[%s6525_s7 + $0x340] sm:$0xff] }
 0x5cb   : > { %2553 = vst.msk [vmem:[#allocation3 + $0x9] sm:$0x1] %vm5296_vm15, %v2551_v1  ;;  %2982 = vmatpush.msra.mxu3 %v2667_v39  ;;  %v2753_v1 = vld [vmem:[%s6525_s7 + $0x5f0] sm:$0xff] }
 0x5cc   : > { %v2479_v35 = vpop.permute.xlu2 %2478  ;;  %v2489_v15 = vpop.permute.xlu0 %2488  ;;  %3011 = vmatpush.msrb.mxu1 %v2753_v1  ;;  %v2797_v39 = vld [vmem:[%s6525_s7 + $0x750] sm:$0xff]  ;;  %v2723_v1 = vld [vmem:[%s6525_s7 + $0x500] sm:$0xff] }
 0x5cd   : > { %2481 = vst.msk [vmem:[#allocation3 + $0x2] sm:$0x1] %vm5357_vm4, %v2479_v35  ;;  %2983 = vmatpush.msra.mxu3 %v2665_v22  ;;  %v2785_v35 = vld [vmem:[%s6525_s7 + $0x6f0] sm:$0xff]  ;;  %v2795_v22 = vld [vmem:[%s6525_s7 + $0x740] sm:$0xff] }
 0x5ce   : > { %2491 = vst.msk [vmem:[#allocation3 + $0x3] sm:$0x1] %vm5357_vm4, %v2489_v15  ;;  %v2817_v15 = vld [vmem:[%s6525_s7 + $0x7f0] sm:$0xff]  ;;  %3031 = vmatpush.msrb.mxu2 %v2785_v35  ;;  %v2755_v35 = vld [vmem:[%s6525_s7 + $0x600] sm:$0xff] }
 0x5cf   : > { %2984 = vmatpush.msra.mxu3 %v2663_v60  ;;  %v2793_v60 = vld [vmem:[%s6525_s7 + $0x730] sm:$0xff] }
 0x5d0   : > { %3032 = vmatpush.msrb.mxu2 %v2783_v26 }
 0x5d1   : > { %v2556_v51 = vld [vmem:[#allocation1 + $0x6] ss:$9 sm:$0xff]  ;;  %2985 = vmatpush.msra.mxu3 %v2661_v55 }
 0x5d2   : > { %2557 = vrot.lane.b32.xlu0 %v2556_v51, %s3602_s22  ;;  %v2719_v51 = vld [vmem:[%s6525_s7 + $0x4e0] sm:$0xff]  ;;  %3033 = vmatpush.msrb.mxu2 %v2781_v27 }
 0x5d3   : > { %2986 = vmatpush.msra.mxu3 %v2659_v11  ;;  %2992 = vmatpush.msrb.mxu0 %v2719_v51  ;;  %v2791_v55 = vld [vmem:[%s6525_s7 + $0x720] sm:$0xff]  ;;  %v2789_v11 = vld [vmem:[%s6525_s7 + $0x710] sm:$0xff] }
 0x5d4   : > { %v2467_v14 = vpop.permute.xlu1 %2466  ;;  %3034 = vmatpush.msrb.mxu2 %v2779_v17  ;;  %v2594_v17 = vld [vmem:[%s6525_s7 + $0xf8] sm:$0xff] }
 0x5d5   : > { %2469 = vst.msk [vmem:[#allocation3 + $0x1] sm:$0x1] %vm5357_vm4, %v2467_v14  ;;  %v2751_v14 = vld [vmem:[%s6525_s7 + $0x5e0] sm:$0xff]  ;;  %3051 = vmatpush.msrb.mxu3 %v2817_v15  ;;  %2993 = vmatpush.msrb.mxu0 %v2717_v54 }
 0x5d6   : > { %3012 = vmatpush.msrb.mxu1 %v2751_v14  ;;  %3035 = vmatpush.msrb.mxu2 %v2777_v34  ;;  %v2787_v15 = vld [vmem:[%s6525_s7 + $0x700] sm:$0xff]  ;;  %v2592_v34 = vld [vmem:[%s6525_s7 + $0xe8] sm:$0xff] }
 0x5d7   : > { %3052 = vmatpush.msrb.mxu3 %v2815_v23  ;;  %2994 = vmatpush.msrb.mxu0 %v2715_v6  ;;  %v2849_v6 = vld [vmem:[%s6525_s7 + $0x8f0] sm:$0xff] }
 0x5d8   : > { %3013 = vmatpush.msrb.mxu1 %v2749_v9  ;;  %3036 = vmatpush.msrb.mxu2 %v2775_v45  ;;  %v2590_v45 = vld [vmem:[%s6525_s7 + $0xd8] sm:$0xff] }
 0x5d9   : > { %3053 = vmatpush.msrb.mxu3 %v2813_v31  ;;  %2995 = vmatpush.msrb.mxu0 %v2713_v21  ;;  %v2847_v21 = vld [vmem:[%s6525_s7 + $0x8e0] sm:$0xff] }
 0x5da   : > { %3014 = vmatpush.msrb.mxu1 %v2747_v63  ;;  %3037 = vmatpush.msrb.mxu2 %v2773_v13  ;;  %v2881_v63 = vld [vmem:[%s6525_s7 + $0x9f0] sm:$0xff]  ;;  %v2620_v13 = vld [vmem:[%s6525_s7 + $0x1c8] sm:$0xff] }
 0x5db   : > { %3054 = vmatpush.msrb.mxu3 %v2811_v49  ;;  %2996 = vmatpush.msrb.mxu0 %v2711_v4  ;;  %v2626_v49 = vld [vmem:[%s6525_s7 + $0x1f8] sm:$0xff]  ;;  %v2845_v4 = vld [vmem:[%s6525_s7 + $0x8d0] sm:$0xff] }
 0x5dc   : > { %3015 = vmatpush.msrb.mxu1 %v2745_v56  ;;  %3038 = vmatpush.msrb.mxu2 %v2771_v46  ;;  %v2879_v56 = vld [vmem:[%s6525_s7 + $0x9e0] sm:$0xff] }
 0x5dd   : > { %3055 = vmatpush.msrb.mxu3 %v2809_v38  ;;  %2997 = vmatpush.msrb.mxu0 %v2709_v57  ;;  %v2624_v38 = vld [vmem:[%s6525_s7 + $0x1e8] sm:$0xff]  ;;  %v2843_v57 = vld [vmem:[%s6525_s7 + $0x8c0] sm:$0xff] }
 0x5de   : > { %3016 = vmatpush.msrb.mxu1 %v2743_v7  ;;  %3039 = vmatpush.msrb.mxu2 %v2769_v44  ;;  %v2877_v7 = vld [vmem:[%s6525_s7 + $0x9d0] sm:$0xff]  ;;  %v2618_v44 = vld [vmem:[%s6525_s7 + $0x1b8] sm:$0xff] }
 0x5df   : > { %3056 = vmatpush.msrb.mxu3 %v2807_v25  ;;  %2998 = vmatpush.msrb.mxu0 %v2707_v20  ;;  %v2622_v25 = vld [vmem:[%s6525_s7 + $0x1d8] sm:$0xff] }
 0x5e0   : > { %3017 = vmatpush.msrb.mxu1 %v2741_v18  ;;  %3040 = vmatpush.msrb.mxu2 %v2767_v12  ;;  %v2875_v18 = vld [vmem:[%s6525_s7 + $0x9c0] sm:$0xff]  ;;  %v2616_v12 = vld [vmem:[%s6525_s7 + $0x1a8] sm:$0xff] }
 0x5e1   : > { %3057 = vmatpush.msrb.mxu3 %v2805_v41  ;;  %2999 = vmatpush.msrb.mxu0 %v2705_v2  ;;  %v2873_v2 = vld [vmem:[%s6525_s7 + $0x9b0] sm:$0xff] }
 0x5e2   : > { %3018 = vmatpush.msrb.mxu1 %v2739_v0  ;;  %3041 = vmatpush.msrb.mxu2 %v2765_v36  ;;  %v2614_v36 = vld [vmem:[%s6525_s7 + $0x198] sm:$0xff] }
 0x5e3   : > { %3058 = vmatpush.msrb.mxu3 %v2803_v47  ;;  %3000 = vmatpush.msrb.mxu0 %v2703_v48  ;;  %v2841_v47 = vld [vmem:[%s6525_s7 + $0x8b0] sm:$0xff]  ;;  %v2871_v48 = vld [vmem:[%s6525_s7 + $0x9a0] sm:$0xff] }
 0x5e4   : > { %3019 = vmatpush.msrb.mxu1 %v2737_v59  ;;  %3042 = vmatpush.msrb.mxu2 %v2763_v58  ;;  %v2586_v59 = vld [vmem:[%s6525_s7 + $0xb8] sm:$0xff]  ;;  %v2612_v58 = vld [vmem:[%s6525_s7 + $0x188] sm:$0xff] }
 0x5e5   : > { %3059 = vmatpush.msrb.mxu3 %v2801_v52  ;;  %3001 = vmatpush.msrb.mxu0 %v2701_v33  ;;  %v2839_v52 = vld [vmem:[%s6525_s7 + $0x8a0] sm:$0xff]  ;;  %v2869_v33 = vld [vmem:[%s6525_s7 + $0x990] sm:$0xff] }
 0x5e6   : > { %3020 = vmatpush.msrb.mxu1 %v2735_v30  ;;  %3043 = vmatpush.msrb.mxu2 %v2761_v53  ;;  %v2584_v30 = vld [vmem:[%s6525_s7 + $0xa8] sm:$0xff]  ;;  %v2610_v53 = vld [vmem:[%s6525_s7 + $0x178] sm:$0xff] }
 0x5e7   : > { %3060 = vmatpush.msrb.mxu3 %v2799_v16  ;;  %3002 = vmatpush.msrb.mxu0 %v2699_v40  ;;  %v2837_v16 = vld [vmem:[%s6525_s7 + $0x890] sm:$0xff]  ;;  %v2867_v40 = vld [vmem:[%s6525_s7 + $0x980] sm:$0xff] }
 0x5e8   : > { %3021 = vmatpush.msrb.mxu1 %v2733_v37  ;;  %3044 = vmatpush.msrb.mxu2 %v2759_v61  ;;  %v2582_v37 = vld [vmem:[%s6525_s7 + $0x98] sm:$0xff]  ;;  %v2608_v61 = vld [vmem:[%s6525_s7 + $0x168] sm:$0xff] }
 0x5e9   : > { %3061 = vmatpush.msrb.mxu3 %v2797_v39  ;;  %3003 = vmatpush.msrb.mxu0 %v2697_v43  ;;  %v2835_v39 = vld [vmem:[%s6525_s7 + $0x880] sm:$0xff]  ;;  %v2865_v43 = vld [vmem:[%s6525_s7 + $0x970] sm:$0xff] }
 0x5ea   : > { %3022 = vmatpush.msrb.mxu1 %v2731_v42  ;;  %3045 = vmatpush.msrb.mxu2 %v2757_v32  ;;  %v2580_v42 = vld [vmem:[%s6525_s7 + $0x88] sm:$0xff]  ;;  %v2574_v32 = vld [vmem:[%s6525_s7 + $0x58] sm:$0xff] }
 0x5eb   : > { %3062 = vmatpush.msrb.mxu3 %v2795_v22  ;;  %3004 = vmatpush.msrb.mxu0 %v2695_v62  ;;  %v2833_v22 = vld [vmem:[%s6525_s7 + $0x870] sm:$0xff]  ;;  %v2863_v62 = vld [vmem:[%s6525_s7 + $0x960] sm:$0xff] }
 0x5ec   : > { %3023 = vmatpush.msrb.mxu1 %v2729_v50  ;;  %3046 = vmatpush.msrb.mxu2 %v2755_v35  ;;  %v2578_v50 = vld [vmem:[%s6525_s7 + $0x78] sm:$0xff]  ;;  %v2572_v35 = vld [vmem:[%s6525_s7 + $0x48] sm:$0xff] }
 0x5ed   : > { %3063 = vmatpush.msrb.mxu3 %v2793_v60  ;;  %3005 = vmatpush.msrb.mxu0 %v2693_v8  ;;  %v2831_v60 = vld [vmem:[%s6525_s7 + $0x860] sm:$0xff]  ;;  %v2861_v8 = vld [vmem:[%s6525_s7 + $0x950] sm:$0xff] }
 0x5ee   : > { %3024 = vmatpush.msrb.mxu1 %v2727_v28  ;;  %v2576_v28 = vld [vmem:[%s6525_s7 + $0x68] sm:$0xff] }
 0x5ef   : > { %3064 = vmatpush.msrb.mxu3 %v2791_v55  ;;  %3006 = vmatpush.msrb.mxu0 %v2691_v5  ;;  %v2829_v55 = vld [vmem:[%s6525_s7 + $0x850] sm:$0xff]  ;;  %v2827_v5 = vld [vmem:[%s6525_s7 + $0x840] sm:$0xff] }
 0x5f0   : > { %3025 = vmatpush.msrb.mxu1 %v2725_v19 }
 0x5f1   : > { %3065 = vmatpush.msrb.mxu3 %v2789_v11  ;;  %v2606_v11 = vld [vmem:[%s6525_s7 + $0x158] sm:$0xff] }
 0x5f2   : > { %3026 = vmatpush.msrb.mxu1 %v2723_v1  ;;  %v2859_v1 = vld [vmem:[%s6525_s7 + $0x940] sm:$0xff] }
 0x5f3   : > { %3066 = vmatpush.msrb.mxu3 %v2787_v15  ;;  %v2825_v15 = vld [vmem:[%s6525_s7 + $0x830] sm:$0xff] }
 0x5f4   : > { %v2513_v10 = vpop.permute.xlu2 %2512 }
 0x5f5   : > { %2515 = vst.msk [vmem:[#allocation3 + $0x5] sm:$0x1] %vm5357_vm4, %v2513_v10 }
 0x5fc   : > { %v2501_v29 = vpop.permute.xlu1 %2500 }
 0x5fd   : > { %2503 = vst.msk [vmem:[#allocation3 + $0x4] sm:$0x1] %vm5357_vm4, %v2501_v29  ;;  %v2588_v29 = vld [vmem:[%s6525_s7 + $0xc8] sm:$0xff] }
 0x61c   : > { %v2525_v51 = vpop.permute.xlu0 %2524  ;;  %v2546_v14 = vpop.permute.xlu2 %2545 }
 0x61d   : > { %2527 = vst.msk [vmem:[#allocation3 + $0x6] sm:$0x1] %vm5357_vm4, %v2525_v51  ;;  %v2857_v51 = vld [vmem:[%s6525_s7 + $0x930] sm:$0xff] }
 0x61e   : > { %2548 = vst.msk [vmem:[#allocation3 + $0x8] sm:$0x1] %vm5357_vm4, %v2546_v14  ;;  %v2570_v14 = vld [vmem:[%s6525_s7 + $0x38] sm:$0xff] }
 0x624   : > { %v2534_v26 = vpop.permute.xlu1 %2533 }
 0x625   : > { %2536 = vst.msk [vmem:[#allocation3 + $0x7] sm:$0x1] %vm5357_vm4, %v2534_v26  ;;  %v2602_v26 = vld [vmem:[%s6525_s7 + $0x138] sm:$0xff] }
 0x62c   : > { %v2032_v23 = vpop.permute.xlu1 %2031  ;;  %v5742_v54 = vld [vmem:[#allocation3] sm:$0xff] }
 0x62d   : > { %v2886_v9 = vperm.slane %v5742_v54, 0  ;;  %v2887_v10 = vperm.slane %v5742_v54, 1  ;;  %v2888_v27 = vperm.slane %v5742_v54, 2  ;;  %v2889_v31 = vperm.slane %v5742_v54, 3  ;;  %v2823_v23 = vld [vmem:[%s6525_s7 + $0x820] sm:$0xff] }
 0x62e   : > { %v2890_v41 = vperm.slane %v5742_v54, 4  ;;  %v2891_v20 = vperm.slane %v5742_v54, 5  ;;  %v2892_v0 = vperm.slane %v5742_v54, 6  ;;  %v2893_v46 = vperm.slane %v5742_v54, 7  ;;  %v3330_v54 = vld [vmem:[%s6527_s9 + $0x68] sm:$0xff] }
 0x62f   : > { %2927 = vmatmul.f32.vlgmr.msra.gmra.mxu0 %v2886_v9  ;;  %2947 = vmatmul.f32.vlgmr.msra.gmra.mxu1 %v2887_v10 }
 0x630   : > { %2967 = vmatmul.f32.vlgmr.msra.gmra.mxu2 %v2888_v27  ;;  %2987 = vmatmul.f32.vlgmr.msra.gmra.mxu3 %v2889_v31 }
 0x631   : > { %3071 = vmatpush.msra.mxu0 %v2849_v6  ;;  %3091 = vmatpush.msra.mxu1 %v2881_v63  ;;  %v2855_v6 = vld [vmem:[%s6525_s7 + $0x920] sm:$0xff]  ;;  %v2568_v63 = vld [vmem:[%s6525_s7 + $0x28] sm:$0xff] }
 0x632   : > { %3111 = vmatpush.msra.mxu2 %v2594_v17  ;;  %3131 = vmatpush.msra.mxu3 %v2626_v49  ;;  %v2600_v17 = vld [vmem:[%s6525_s7 + $0x128] sm:$0xff]  ;;  %v2821_v49 = vld [vmem:[%s6525_s7 + $0x810] sm:$0xff] }
 0x633   : > { %3072 = vmatpush.msra.mxu0 %v2847_v21  ;;  %3092 = vmatpush.msra.mxu1 %v2879_v56  ;;  %v2853_v21 = vld [vmem:[%s6525_s7 + $0x910] sm:$0xff]  ;;  %v2566_v56 = vld [vmem:[%s6525_s7 + $0x18] sm:$0xff] }
 0x634   : > { %3112 = vmatpush.msra.mxu2 %v2592_v34  ;;  %3132 = vmatpush.msra.mxu3 %v2624_v38  ;;  %v2598_v34 = vld [vmem:[%s6525_s7 + $0x118] sm:$0xff]  ;;  %v2819_v38 = vld [vmem:[%s6525_s7 + $0x800] sm:$0xff] }
 0x635   : > { %3073 = vmatpush.msra.mxu0 %v2845_v4  ;;  %3093 = vmatpush.msra.mxu1 %v2877_v7  ;;  %v2851_v4 = vld [vmem:[%s6525_s7 + $0x900] sm:$0xff]  ;;  %v2564_v7 = vld [vmem:[%s6525_s7 + $0x8] sm:$0xff] }
 0x636   : > { %3113 = vmatpush.msra.mxu2 %v2590_v45  ;;  %3133 = vmatpush.msra.mxu3 %v2622_v25  ;;  %v2596_v45 = vld [vmem:[%s6525_s7 + $0x108] sm:$0xff] }
 0x637   : > { %3074 = vmatpush.msra.mxu0 %v2843_v57  ;;  %3094 = vmatpush.msra.mxu1 %v2875_v18  ;;  %v2658_v57 = vld [vmem:[%s6525_s7 + $0x2f8] sm:$0xff] }
 0x638   : > { %3114 = vmatpush.msra.mxu2 %v2588_v29  ;;  %3134 = vmatpush.msra.mxu3 %v2620_v13  ;;  %v2690_v18 = vld [vmem:[%s6525_s7 + $0x3f8] sm:$0xff] }
 0x639   : > { %3007 = vmatmul.f32.vlgmr.msrb.gmra.mxu0 %v2890_v41  ;;  %3027 = vmatmul.f32.vlgmr.msrb.gmra.mxu1 %v2891_v20  ;;  %v2722_v29 = vld [vmem:[%s6525_s7 + $0x4f8] sm:$0xff] }
 0x63a   : > { %3047 = vmatmul.f32.vlgmr.msrb.gmra.mxu2 %v2892_v0  ;;  %3067 = vmatmul.f32.vlgmr.msrb.gmra.mxu3 %v2893_v46  ;;  %v2754_v13 = vld [vmem:[%s6525_s7 + $0x5f8] sm:$0xff] }
 0x63b   : > { %3075 = vmatpush.msra.mxu0 %v2841_v47  ;;  %3095 = vmatpush.msra.mxu1 %v2873_v2 }
 0x63c   : > { %3115 = vmatpush.msra.mxu2 %v2586_v59  ;;  %3135 = vmatpush.msra.mxu3 %v2618_v44  ;;  %v2656_v59 = vld [vmem:[%s6525_s7 + $0x2e8] sm:$0xff] }
 0x63d   : > { %3076 = vmatpush.msra.mxu0 %v2839_v52  ;;  %3096 = vmatpush.msra.mxu1 %v2871_v48  ;;  %v2688_v44 = vld [vmem:[%s6525_s7 + $0x3e8] sm:$0xff]  ;;  %v2686_v48 = vld [vmem:[%s6525_s7 + $0x3d8] sm:$0xff] }
 0x63e   : > { %3116 = vmatpush.msra.mxu2 %v2584_v30  ;;  %3136 = vmatpush.msra.mxu3 %v2616_v12  ;;  %v2720_v52 = vld [vmem:[%s6525_s7 + $0x4e8] sm:$0xff]  ;;  %v2718_v30 = vld [vmem:[%s6525_s7 + $0x4d8] sm:$0xff] }
 0x63f   : > { %3077 = vmatpush.msra.mxu0 %v2837_v16  ;;  %3097 = vmatpush.msra.mxu1 %v2869_v33  ;;  %v2750_v12 = vld [vmem:[%s6525_s7 + $0x5d8] sm:$0xff]  ;;  %v2652_v16 = vld [vmem:[%s6525_s7 + $0x2c8] sm:$0xff] }
 0x640   : > { %3117 = vmatpush.msra.mxu2 %v2582_v37  ;;  %3137 = vmatpush.msra.mxu3 %v2614_v36  ;;  %v2684_v33 = vld [vmem:[%s6525_s7 + $0x3c8] sm:$0xff] }
 0x641   : > { %3078 = vmatpush.msra.mxu0 %v2835_v39  ;;  %3098 = vmatpush.msra.mxu1 %v2867_v40  ;;  %v2716_v37 = vld [vmem:[%s6525_s7 + $0x4c8] sm:$0xff]  ;;  %v2650_v39 = vld [vmem:[%s6525_s7 + $0x2b8] sm:$0xff] }
 0x642   : > { %3118 = vmatpush.msra.mxu2 %v2580_v42  ;;  %3138 = vmatpush.msra.mxu3 %v2612_v58  ;;  %v2748_v36 = vld [vmem:[%s6525_s7 + $0x5c8] sm:$0xff]  ;;  %v2682_v40 = vld [vmem:[%s6525_s7 + $0x3b8] sm:$0xff] }
 0x643   : > { %3079 = vmatpush.msra.mxu0 %v2833_v22  ;;  %3099 = vmatpush.msra.mxu1 %v2865_v43  ;;  %v2714_v42 = vld [vmem:[%s6525_s7 + $0x4b8] sm:$0xff]  ;;  %v2648_v22 = vld [vmem:[%s6525_s7 + $0x2a8] sm:$0xff] }
 0x644   : > { %3119 = vmatpush.msra.mxu2 %v2578_v50  ;;  %3139 = vmatpush.msra.mxu3 %v2610_v53  ;;  %v2558_v19 = vpop.permute.xlu0 %2557  ;;  %v2746_v58 = vld [vmem:[%s6525_s7 + $0x5b8] sm:$0xff]  ;;  %v2680_v43 = vld [vmem:[%s6525_s7 + $0x3a8] sm:$0xff] }
 0x645   : > { %3080 = vmatpush.msra.mxu0 %v2831_v60  ;;  %3100 = vmatpush.msra.mxu1 %v2863_v62  ;;  %2560 = vst.msk [vmem:[#allocation3 + $0x9] sm:$0x1] %vm5357_vm4, %v2558_v19  ;;  %v2712_v50 = vld [vmem:[%s6525_s7 + $0x4a8] sm:$0xff]  ;;  %v2646_v60 = vld [vmem:[%s6525_s7 + $0x298] sm:$0xff] }
 0x646   : > { %3120 = vmatpush.msra.mxu2 %v2576_v28  ;;  %3140 = vmatpush.msra.mxu3 %v2608_v61  ;;  %v2744_v53 = vld [vmem:[%s6525_s7 + $0x5a8] sm:$0xff]  ;;  %v2678_v62 = vld [vmem:[%s6525_s7 + $0x398] sm:$0xff] }
 0x647   : > { %3081 = vmatpush.msra.mxu0 %v2829_v55  ;;  %3101 = vmatpush.msra.mxu1 %v2861_v8  ;;  %v2710_v28 = vld [vmem:[%s6525_s7 + $0x498] sm:$0xff]  ;;  %v2644_v55 = vld [vmem:[%s6525_s7 + $0x288] sm:$0xff] }
 0x648   : > { %3121 = vmatpush.msra.mxu2 %v2574_v32  ;;  %3141 = vmatpush.msra.mxu3 %v2606_v11  ;;  %v2742_v61 = vld [vmem:[%s6525_s7 + $0x598] sm:$0xff]  ;;  %v2676_v8 = vld [vmem:[%s6525_s7 + $0x388] sm:$0xff] }
 0x649   : > { %3082 = vmatpush.msra.mxu0 %v2827_v5  ;;  %3102 = vmatpush.msra.mxu1 %v2859_v1  ;;  %v2708_v19 = vld [vmem:[%s6525_s7 + $0x488] sm:$0xff]  ;;  %v2642_v11 = vld [vmem:[%s6525_s7 + $0x278] sm:$0xff] }
 0x64a   : > { %3122 = vmatpush.msra.mxu2 %v2572_v35  ;;  %3142 = vmatpush.msra.mxu3 %v2604_v3  ;;  %v2740_v32 = vld [vmem:[%s6525_s7 + $0x588] sm:$0xff]  ;;  %v2674_v5 = vld [vmem:[%s6525_s7 + $0x378] sm:$0xff] }
 0x64b   : > { %3083 = vmatpush.msra.mxu0 %v2825_v15  ;;  %3103 = vmatpush.msra.mxu1 %v2857_v51  ;;  %v2706_v1 = vld [vmem:[%s6525_s7 + $0x478] sm:$0xff]  ;;  %v2640_v3 = vld [vmem:[%s6525_s7 + $0x268] sm:$0xff] }
 0x64c   : > { %3123 = vmatpush.msra.mxu2 %v2570_v14  ;;  %3143 = vmatpush.msra.mxu3 %v2602_v26  ;;  %v5962_v25 = vld [vmem:[#allocation3 + $0x8] sm:$0x3]  ;;  %v2738_v35 = vld [vmem:[%s6525_s7 + $0x578] sm:$0xff]  ;;  %v2672_v15 = vld [vmem:[%s6525_s7 + $0x368] sm:$0xff] }
 0x64d   : > { %3084 = vmatpush.msra.mxu0 %v2823_v23  ;;  %3104 = vmatpush.msra.mxu1 %v2855_v6  ;;  %v2894_v47 = vperm.slane %v5962_v25, 0  ;;  %v2895_v2 = vperm.slane %v5962_v25, 1  ;;  %v2704_v51 = vld [vmem:[%s6525_s7 + $0x468] sm:$0xff]  ;;  %v2638_v26 = vld [vmem:[%s6525_s7 + $0x258] sm:$0xff]  ;;  %v3327_v25 = vld [vmem:[%s6527_s9 + $0x50] sm:$0xff] }
 0x64e   : > { %3124 = vmatpush.msra.mxu2 %v2568_v63  ;;  %3144 = vmatpush.msra.mxu3 %v2600_v17  ;;  %v2736_v14 = vld [vmem:[%s6525_s7 + $0x568] sm:$0xff]  ;;  %v2670_v23 = vld [vmem:[%s6525_s7 + $0x358] sm:$0xff] }
 0x64f   : > { %3085 = vmatpush.msra.mxu0 %v2821_v49  ;;  %3105 = vmatpush.msra.mxu1 %v2853_v21  ;;  %v2702_v6 = vld [vmem:[%s6525_s7 + $0x458] sm:$0xff]  ;;  %v2636_v17 = vld [vmem:[%s6525_s7 + $0x248] sm:$0xff] }
 0x650   : > { %3125 = vmatpush.msra.mxu2 %v2566_v56  ;;  %3145 = vmatpush.msra.mxu3 %v2598_v34  ;;  %v2734_v63 = vld [vmem:[%s6525_s7 + $0x558] sm:$0xff]  ;;  %v2668_v49 = vld [vmem:[%s6525_s7 + $0x348] sm:$0xff] }
 0x651   : > { %3086 = vmatpush.msra.mxu0 %v2819_v38  ;;  %3106 = vmatpush.msra.mxu1 %v2851_v4  ;;  %v2700_v21 = vld [vmem:[%s6525_s7 + $0x448] sm:$0xff]  ;;  %v2634_v34 = vld [vmem:[%s6525_s7 + $0x238] sm:$0xff] }
 0x652   : > { %3126 = vmatpush.msra.mxu2 %v2564_v7  ;;  %3146 = vmatpush.msra.mxu3 %v2596_v45  ;;  %v2732_v56 = vld [vmem:[%s6525_s7 + $0x548] sm:$0xff]  ;;  %v2666_v38 = vld [vmem:[%s6525_s7 + $0x338] sm:$0xff] }
 0x653   : > { %3127 = vmatmul.f32.vlgmr.msra.gmra.mxu2 %v2886_v9  ;;  %3147 = vmatmul.f32.vlgmr.msra.gmra.mxu3 %v2887_v10  ;;  %v2752_v9 = vld [vmem:[%s6525_s7 + $0x5e8] sm:$0xff]  ;;  %v2654_v10 = vld [vmem:[%s6525_s7 + $0x2d8] sm:$0xff] }
 0x654   : > { %3151 = vmatpush.msrb.mxu0 %v2658_v57  ;;  %3171 = vmatpush.msrb.mxu1 %v2690_v18  ;;  %v2698_v4 = vld [vmem:[%s6525_s7 + $0x438] sm:$0xff]  ;;  %v2632_v45 = vld [vmem:[%s6525_s7 + $0x228] sm:$0xff] }
 0x655   : > { %3191 = vmatpush.msrb.mxu2 %v2722_v29  ;;  %3211 = vmatpush.msrb.mxu3 %v2754_v13  ;;  %v2730_v7 = vld [vmem:[%s6525_s7 + $0x538] sm:$0xff]  ;;  %v2664_v57 = vld [vmem:[%s6525_s7 + $0x328] sm:$0xff] }
 0x656   : > { %3087 = vmatmul.f32.vlgmr.msra.gmra.mxu0 %v2894_v47  ;;  %3107 = vmatmul.f32.vlgmr.msra.gmra.mxu1 %v2895_v2  ;;  %v2696_v18 = vld [vmem:[%s6525_s7 + $0x428] sm:$0xff]  ;;  %v2630_v13 = vld [vmem:[%s6525_s7 + $0x218] sm:$0xff] }
 0x657   : > { %3152 = vmatpush.msrb.mxu0 %v2656_v59  ;;  %3172 = vmatpush.msrb.mxu1 %v2688_v44  ;;  %v2728_v29 = vld [vmem:[%s6525_s7 + $0x528] sm:$0xff]  ;;  %v2662_v59 = vld [vmem:[%s6525_s7 + $0x318] sm:$0xff] }
 0x658   : > { %3192 = vmatpush.msrb.mxu2 %v2720_v52  ;;  %3212 = vmatpush.msrb.mxu3 %v2752_v9  ;;  %v2694_v44 = vld [vmem:[%s6525_s7 + $0x418] sm:$0xff]  ;;  %v2628_v9 = vld [vmem:[%s6525_s7 + $0x208] sm:$0xff] }
 0x659   : > { %3153 = vmatpush.msrb.mxu0 %v2654_v10  ;;  %3173 = vmatpush.msrb.mxu1 %v2686_v48  ;;  %v2726_v52 = vld [vmem:[%s6525_s7 + $0x518] sm:$0xff]  ;;  %v2660_v10 = vld [vmem:[%s6525_s7 + $0x308] sm:$0xff] }
 0x65a   : > { %3193 = vmatpush.msrb.mxu2 %v2718_v30  ;;  %3213 = vmatpush.msrb.mxu3 %v2750_v12  ;;  %v2692_v48 = vld [vmem:[%s6525_s7 + $0x408] sm:$0xff]  ;;  %v2786_v12 = vld [vmem:[%s6525_s7 + $0x6f8] sm:$0xff] }
 0x65b   : > { %3154 = vmatpush.msrb.mxu0 %v2652_v16  ;;  %3174 = vmatpush.msrb.mxu1 %v2684_v33  ;;  %v2724_v30 = vld [vmem:[%s6525_s7 + $0x508] sm:$0xff]  ;;  %v2818_v16 = vld [vmem:[%s6525_s7 + $0x7f8] sm:$0xff] }
 0x65c   : > { %3194 = vmatpush.msrb.mxu2 %v2716_v37  ;;  %3214 = vmatpush.msrb.mxu3 %v2748_v36  ;;  %v2850_v33 = vld [vmem:[%s6525_s7 + $0x8f8] sm:$0xff]  ;;  %v2848_v36 = vld [vmem:[%s6525_s7 + $0x8e8] sm:$0xff] }
 0x65d   : > { %3155 = vmatpush.msrb.mxu0 %v2650_v39  ;;  %3175 = vmatpush.msrb.mxu1 %v2682_v40  ;;  %v2882_v37 = vld [vmem:[%s6525_s7 + $0x9f8] sm:$0xff] }
 0x65e   : > { %3195 = vmatpush.msrb.mxu2 %v2714_v42  ;;  %3215 = vmatpush.msrb.mxu3 %v2746_v58  ;;  %v2814_v39 = vld [vmem:[%s6525_s7 + $0x7d8] sm:$0xff]  ;;  %v2780_v58 = vld [vmem:[%s6525_s7 + $0x6c8] sm:$0xff] }
 0x65f   : > { %3156 = vmatpush.msrb.mxu0 %v2648_v22  ;;  %3176 = vmatpush.msrb.mxu1 %v2680_v43  ;;  %v2846_v40 = vld [vmem:[%s6525_s7 + $0x8d8] sm:$0xff]  ;;  %v2812_v22 = vld [vmem:[%s6525_s7 + $0x7c8] sm:$0xff] }
 0x660   : > { %3196 = vmatpush.msrb.mxu2 %v2712_v50  ;;  %3216 = vmatpush.msrb.mxu3 %v2744_v53  ;;  %v2878_v42 = vld [vmem:[%s6525_s7 + $0x9d8] sm:$0xff]  ;;  %v2844_v43 = vld [vmem:[%s6525_s7 + $0x8c8] sm:$0xff] }
 0x661   : > { %3157 = vmatpush.msrb.mxu0 %v2646_v60  ;;  %3177 = vmatpush.msrb.mxu1 %v2678_v62  ;;  %v2876_v50 = vld [vmem:[%s6525_s7 + $0x9c8] sm:$0xff]  ;;  %v2778_v53 = vld [vmem:[%s6525_s7 + $0x6b8] sm:$0xff] }
 0x662   : > { %3197 = vmatpush.msrb.mxu2 %v2710_v28  ;;  %3217 = vmatpush.msrb.mxu3 %v2742_v61  ;;  %v2810_v60 = vld [vmem:[%s6525_s7 + $0x7b8] sm:$0xff]  ;;  %v2776_v61 = vld [vmem:[%s6525_s7 + $0x6a8] sm:$0xff] }
 0x663   : > { %3158 = vmatpush.msrb.mxu0 %v2644_v55  ;;  %3178 = vmatpush.msrb.mxu1 %v2676_v8  ;;  %v2842_v62 = vld [vmem:[%s6525_s7 + $0x8b8] sm:$0xff]  ;;  %v2808_v55 = vld [vmem:[%s6525_s7 + $0x7a8] sm:$0xff] }
 0x664   : > { %3198 = vmatpush.msrb.mxu2 %v2708_v19  ;;  %3218 = vmatpush.msrb.mxu3 %v2740_v32  ;;  %v2874_v28 = vld [vmem:[%s6525_s7 + $0x9b8] sm:$0xff]  ;;  %v2840_v8 = vld [vmem:[%s6525_s7 + $0x8a8] sm:$0xff] }
 0x665   : > { %3159 = vmatpush.msrb.mxu0 %v2642_v11  ;;  %3179 = vmatpush.msrb.mxu1 %v2674_v5  ;;  %v2872_v19 = vld [vmem:[%s6525_s7 + $0x9a8] sm:$0xff]  ;;  %v2774_v32 = vld [vmem:[%s6525_s7 + $0x698] sm:$0xff] }
 0x666   : > { %3199 = vmatpush.msrb.mxu2 %v2706_v1  ;;  %3219 = vmatpush.msrb.mxu3 %v2738_v35  ;;  %v2806_v11 = vld [vmem:[%s6525_s7 + $0x798] sm:$0xff]  ;;  %v2772_v35 = vld [vmem:[%s6525_s7 + $0x688] sm:$0xff] }
 0x667   : > { %3160 = vmatpush.msrb.mxu0 %v2640_v3  ;;  %3180 = vmatpush.msrb.mxu1 %v2672_v15  ;;  %v2838_v5 = vld [vmem:[%s6525_s7 + $0x898] sm:$0xff]  ;;  %v2804_v3 = vld [vmem:[%s6525_s7 + $0x788] sm:$0xff] }
 0x668   : > { %3200 = vmatpush.msrb.mxu2 %v2704_v51  ;;  %3220 = vmatpush.msrb.mxu3 %v2736_v14  ;;  %v2870_v1 = vld [vmem:[%s6525_s7 + $0x998] sm:$0xff]  ;;  %v2836_v15 = vld [vmem:[%s6525_s7 + $0x888] sm:$0xff] }
 0x669   : > { %3161 = vmatpush.msrb.mxu0 %v2638_v26  ;;  %3181 = vmatpush.msrb.mxu1 %v2670_v23  ;;  %v2868_v51 = vld [vmem:[%s6525_s7 + $0x988] sm:$0xff]  ;;  %v2770_v14 = vld [vmem:[%s6525_s7 + $0x678] sm:$0xff] }
 0x66a   : > { %3201 = vmatpush.msrb.mxu2 %v2702_v6  ;;  %3221 = vmatpush.msrb.mxu3 %v2734_v63  ;;  %v2802_v26 = vld [vmem:[%s6525_s7 + $0x778] sm:$0xff]  ;;  %v2768_v63 = vld [vmem:[%s6525_s7 + $0x668] sm:$0xff] }
 0x66b   : > { %3162 = vmatpush.msrb.mxu0 %v2636_v17  ;;  %3182 = vmatpush.msrb.mxu1 %v2668_v49  ;;  %v2834_v23 = vld [vmem:[%s6525_s7 + $0x878] sm:$0xff]  ;;  %v2800_v17 = vld [vmem:[%s6525_s7 + $0x768] sm:$0xff] }
 0x66c   : > { %3202 = vmatpush.msrb.mxu2 %v2700_v21  ;;  %3222 = vmatpush.msrb.mxu3 %v2732_v56  ;;  %v2866_v6 = vld [vmem:[%s6525_s7 + $0x978] sm:$0xff]  ;;  %v2832_v49 = vld [vmem:[%s6525_s7 + $0x868] sm:$0xff] }
 0x66d   : > { %3163 = vmatpush.msrb.mxu0 %v2634_v34  ;;  %3183 = vmatpush.msrb.mxu1 %v2666_v38  ;;  %v2864_v21 = vld [vmem:[%s6525_s7 + $0x968] sm:$0xff]  ;;  %v2766_v56 = vld [vmem:[%s6525_s7 + $0x658] sm:$0xff] }
 0x66e   : > { %3203 = vmatpush.msrb.mxu2 %v2698_v4  ;;  %3223 = vmatpush.msrb.mxu3 %v2730_v7  ;;  %v2798_v34 = vld [vmem:[%s6525_s7 + $0x758] sm:$0xff]  ;;  %v2764_v7 = vld [vmem:[%s6525_s7 + $0x648] sm:$0xff] }
 0x66f   : > { %3164 = vmatpush.msrb.mxu0 %v2632_v45  ;;  %3184 = vmatpush.msrb.mxu1 %v2664_v57  ;;  %v2830_v38 = vld [vmem:[%s6525_s7 + $0x858] sm:$0xff]  ;;  %v2796_v45 = vld [vmem:[%s6525_s7 + $0x748] sm:$0xff] }
 0x670   : > { %3204 = vmatpush.msrb.mxu2 %v2696_v18  ;;  %3224 = vmatpush.msrb.mxu3 %v2728_v29  ;;  %v2862_v4 = vld [vmem:[%s6525_s7 + $0x958] sm:$0xff]  ;;  %v2828_v57 = vld [vmem:[%s6525_s7 + $0x848] sm:$0xff] }
 0x671   : > { %3165 = vmatpush.msrb.mxu0 %v2630_v13  ;;  %3185 = vmatpush.msrb.mxu1 %v2662_v59  ;;  %v2860_v18 = vld [vmem:[%s6525_s7 + $0x948] sm:$0xff]  ;;  %v2762_v29 = vld [vmem:[%s6525_s7 + $0x638] sm:$0xff] }
 0x672   : > { %3205 = vmatpush.msrb.mxu2 %v2694_v44  ;;  %3225 = vmatpush.msrb.mxu3 %v2726_v52  ;;  %v2794_v13 = vld [vmem:[%s6525_s7 + $0x738] sm:$0xff]  ;;  %v2760_v52 = vld [vmem:[%s6525_s7 + $0x628] sm:$0xff] }
 0x673   : > { %3166 = vmatpush.msrb.mxu0 %v2628_v9  ;;  %3186 = vmatpush.msrb.mxu1 %v2660_v10  ;;  %v2826_v59 = vld [vmem:[%s6525_s7 + $0x838] sm:$0xff]  ;;  %v2792_v9 = vld [vmem:[%s6525_s7 + $0x728] sm:$0xff] }
 0x674   : > { %3206 = vmatpush.msrb.mxu2 %v2692_v48  ;;  %3226 = vmatpush.msrb.mxu3 %v2724_v30  ;;  %v2858_v44 = vld [vmem:[%s6525_s7 + $0x938] sm:$0xff]  ;;  %v2824_v10 = vld [vmem:[%s6525_s7 + $0x828] sm:$0xff] }
 0x675   : > { %3167 = vmatmul.f32.vlgmr.msrb.gmra.mxu0 %v2888_v27  ;;  %3187 = vmatmul.f32.vlgmr.msrb.gmra.mxu1 %v2889_v31  ;;  %v2784_v27 = vld [vmem:[%s6525_s7 + $0x6e8] sm:$0xff]  ;;  %v2758_v30 = vld [vmem:[%s6525_s7 + $0x618] sm:$0xff] }
 0x676   : > { %3207 = vmatmul.f32.vlgmr.msrb.gmra.mxu2 %v2890_v41  ;;  %3227 = vmatmul.f32.vlgmr.msrb.gmra.mxu3 %v2891_v20  ;;  %v2816_v31 = vld [vmem:[%s6525_s7 + $0x7e8] sm:$0xff]  ;;  %v2782_v20 = vld [vmem:[%s6525_s7 + $0x6d8] sm:$0xff] }
 0x677   : > { %3231 = vmatpush.msra.mxu0 %v2786_v12  ;;  %3251 = vmatpush.msra.mxu1 %v2818_v16  ;;  %v2880_v41 = vld [vmem:[%s6525_s7 + $0x9e8] sm:$0xff]  ;;  %v2790_v12 = vld [vmem:[%s6525_s7 + $0x718] sm:$0xff] }
 0x678   : > { %3271 = vmatpush.msra.mxu2 %v2850_v33  ;;  %3291 = vmatpush.msra.mxu3 %v2882_v37  ;;  %v2856_v48 = vld [vmem:[%s6525_s7 + $0x928] sm:$0xff]  ;;  %v2822_v16 = vld [vmem:[%s6525_s7 + $0x818] sm:$0xff] }
 0x679   : > { %3232 = vmatpush.msra.mxu0 %v2784_v27  ;;  %3252 = vmatpush.msra.mxu1 %v2816_v31  ;;  %v2854_v33 = vld [vmem:[%s6525_s7 + $0x918] sm:$0xff]  ;;  %v2756_v37 = vld [vmem:[%s6525_s7 + $0x608] sm:$0xff] }
 0x67a   : > { %3272 = vmatpush.msra.mxu2 %v2848_v36  ;;  %3292 = vmatpush.msra.mxu3 %v2880_v41  ;;  %v2788_v27 = vld [vmem:[%s6525_s7 + $0x708] sm:$0xff]  ;;  %v3332_v41 = vld [vmem:[%s6527_s9 + $0x78] sm:$0xff] }
 0x67b   : > { %3233 = vmatpush.msra.mxu0 %v2782_v20  ;;  %3253 = vmatpush.msra.mxu1 %v2814_v39  ;;  %v2820_v31 = vld [vmem:[%s6525_s7 + $0x808] sm:$0xff]  ;;  %v3331_v20 = vld [vmem:[%s6527_s9 + $0x70] sm:$0xff]  ;;  %v3324_v39 = vld [vmem:[%s6527_s9 + $0x38] sm:$0xff] }
 0x67c   : > { %3273 = vmatpush.msra.mxu2 %v2846_v40  ;;  %3293 = vmatpush.msra.mxu3 %v2878_v42  ;;  %v2852_v36 = vld [vmem:[%s6525_s7 + $0x908] sm:$0xff]  ;;  %v3323_v40 = vld [vmem:[%s6527_s9 + $0x30] sm:$0xff] }
 0x67d   : > { %3234 = vmatpush.msra.mxu0 %v2780_v58  ;;  %3254 = vmatpush.msra.mxu1 %v2812_v22  ;;  %v3322_v42 = vld [vmem:[%s6527_s9 + $0x28] sm:$0xff]  ;;  %v3321_v58 = vld [vmem:[%s6527_s9 + $0x20] sm:$0xff] }
 0x67e   : > { %3274 = vmatpush.msra.mxu2 %v2844_v43  ;;  %3294 = vmatpush.msra.mxu3 %v2876_v50  ;;  %v6413_v22 = vld [vmem:[%s6526_s8] sm:$0x3] }
 0x67f   : > { %3235 = vmatpush.msra.mxu0 %v2778_v53  ;;  %3255 = vmatpush.msra.mxu1 %v2810_v60  ;;  %v2907_v43 = vperm.slane %v6413_v22, 0  ;;  %v3320_v60 = vld [vmem:[%s6527_s9 + $0x18] sm:$0xff] }
 0x680   : > { %3275 = vmatpush.msra.mxu2 %v2842_v62  ;;  %3295 = vmatpush.msra.mxu3 %v2874_v28  ;;  %v3319_v62 = vld [vmem:[%s6527_s9 + $0x10] sm:$0xff]  ;;  %v3318_v28 = vld [vmem:[%s6527_s9 + $0x8] sm:$0xff] }
 0x681   : > { %3236 = vmatpush.msra.mxu0 %v2776_v61  ;;  %3256 = vmatpush.msra.mxu1 %v2808_v55 }
 0x682   : > { %3276 = vmatpush.msra.mxu2 %v2840_v8  ;;  %3296 = vmatpush.msra.mxu3 %v2872_v19  ;;  %v3317_v19 = vld [vmem:[%s6527_s9] sm:$0xff] }
 0x683   : > { %3237 = vmatpush.msra.mxu0 %v2774_v32  ;;  %3257 = vmatpush.msra.mxu1 %v2806_v11 }
 0x684   : > { %3277 = vmatpush.msra.mxu2 %v2838_v5  ;;  %3297 = vmatpush.msra.mxu3 %v2870_v1 }
 0x685   : > { %3238 = vmatpush.msra.mxu0 %v2772_v35  ;;  %3258 = vmatpush.msra.mxu1 %v2804_v3 }
 0x686   : > { %3278 = vmatpush.msra.mxu2 %v2836_v15  ;;  %3298 = vmatpush.msra.mxu3 %v2868_v51 }
 0x687   : > { %3239 = vmatpush.msra.mxu0 %v2770_v14  ;;  %3259 = vmatpush.msra.mxu1 %v2802_v26 }
 0x688   : > { %3279 = vmatpush.msra.mxu2 %v2834_v23  ;;  %3299 = vmatpush.msra.mxu3 %v2866_v6 }
 0x689   : > { %3240 = vmatpush.msra.mxu0 %v2768_v63  ;;  %3260 = vmatpush.msra.mxu1 %v2800_v17 }
 0x68a   : > { %3280 = vmatpush.msra.mxu2 %v2832_v49  ;;  %3300 = vmatpush.msra.mxu3 %v2864_v21 }
 0x68b   : > { %3241 = vmatpush.msra.mxu0 %v2766_v56  ;;  %3261 = vmatpush.msra.mxu1 %v2798_v34  ;;  %v3348_v34 = vld [vmem:[%s6527_s9 + $0xf8] sm:$0xff] }
 0x68c   : > { %3281 = vmatpush.msra.mxu2 %v2830_v38  ;;  %3301 = vmatpush.msra.mxu3 %v2862_v4  ;;  %v3347_v38 = vld [vmem:[%s6527_s9 + $0xf0] sm:$0xff]  ;;  %v3346_v4 = vld [vmem:[%s6527_s9 + $0xe8] sm:$0xff] }
 0x68d   : > { %3242 = vmatpush.msra.mxu0 %v2764_v7  ;;  %3262 = vmatpush.msra.mxu1 %v2796_v45  ;;  %v3345_v7 = vld [vmem:[%s6527_s9 + $0xe0] sm:$0xff]  ;;  %v3344_v45 = vld [vmem:[%s6527_s9 + $0xd8] sm:$0xff] }
 0x68e   : > { %3282 = vmatpush.msra.mxu2 %v2828_v57  ;;  %3302 = vmatpush.msra.mxu3 %v2860_v18  ;;  %v3343_v57 = vld [vmem:[%s6527_s9 + $0xd0] sm:$0xff]  ;;  %v3342_v18 = vld [vmem:[%s6527_s9 + $0xc8] sm:$0xff] }
 0x68f   : > { %3243 = vmatpush.msra.mxu0 %v2762_v29  ;;  %3263 = vmatpush.msra.mxu1 %v2794_v13  ;;  %v3341_v29 = vld [vmem:[%s6527_s9 + $0xc0] sm:$0xff]  ;;  %v3340_v13 = vld [vmem:[%s6527_s9 + $0xb8] sm:$0xff] }
 0x690   : > { %3283 = vmatpush.msra.mxu2 %v2826_v59  ;;  %3303 = vmatpush.msra.mxu3 %v2858_v44  ;;  %v3339_v59 = vld [vmem:[%s6527_s9 + $0xb0] sm:$0xff]  ;;  %v3338_v44 = vld [vmem:[%s6527_s9 + $0xa8] sm:$0xff] }
 0x691   : > { %3244 = vmatpush.msra.mxu0 %v2760_v52  ;;  %3264 = vmatpush.msra.mxu1 %v2792_v9  ;;  %v3337_v52 = vld [vmem:[%s6527_s9 + $0xa0] sm:$0xff]  ;;  %v3336_v9 = vld [vmem:[%s6527_s9 + $0x98] sm:$0xff] }
 0x692   : > { %3284 = vmatpush.msra.mxu2 %v2824_v10  ;;  %3304 = vmatpush.msra.mxu3 %v2856_v48  ;;  %v3335_v10 = vld [vmem:[%s6527_s9 + $0x90] sm:$0xff]  ;;  %v3334_v48 = vld [vmem:[%s6527_s9 + $0x88] sm:$0xff] }
 0x693   : > { %3245 = vmatpush.msra.mxu0 %v2758_v30  ;;  %3265 = vmatpush.msra.mxu1 %v2790_v12  ;;  %v2908_v30 = vperm.slane %v6413_v22, 1 }
 0x694   : > { %3285 = vmatpush.msra.mxu2 %v2822_v16  ;;  %3305 = vmatpush.msra.mxu3 %v2854_v33  ;;  %v3333_v16 = vld [vmem:[%s6527_s9 + $0x80] sm:$0xff] }
 0x695   : > { %3246 = vmatpush.msra.mxu0 %v2756_v37  ;;  %3266 = vmatpush.msra.mxu1 %v2788_v27 }
 0x696   : > { %3286 = vmatpush.msra.mxu2 %v2820_v31  ;;  %3306 = vmatpush.msra.mxu3 %v2852_v36 }
 0x697   : > { %3247 = vmatmul.f32.vlgmr.msra.gmra.mxu0 %v2892_v0  ;;  %3267 = vmatmul.f32.vlgmr.msra.gmra.mxu1 %v2893_v46  ;;  %v3329_v0 = vld [vmem:[%s6527_s9 + $0x60] sm:$0xff]  ;;  %v3328_v46 = vld [vmem:[%s6527_s9 + $0x58] sm:$0xff] }
 0x698   : > { %3287 = vmatmul.f32.vlgmr.msra.gmra.mxu2 %v2894_v47  ;;  %3307 = vmatmul.f32.vlgmr.msra.gmra.mxu3 %v2895_v2  ;;  %v3326_v47 = vld [vmem:[%s6527_s9 + $0x48] sm:$0xff]  ;;  %v3325_v2 = vld [vmem:[%s6527_s9 + $0x40] sm:$0xff] }
 0x699   : > { %3350 = vmatpush.msrb.mxu0 %v3332_v41  ;;  %3370 = vmatpush.msrb.mxu1 %v3348_v34 }
 0x69b   : > { %3351 = vmatpush.msrb.mxu0 %v3331_v20  ;;  %3371 = vmatpush.msrb.mxu1 %v3347_v38 }
 0x69d   : > { %3352 = vmatpush.msrb.mxu0 %v3330_v54  ;;  %3372 = vmatpush.msrb.mxu1 %v3346_v4 }
 0x69f   : > { %3353 = vmatpush.msrb.mxu0 %v3329_v0  ;;  %3373 = vmatpush.msrb.mxu1 %v3345_v7 }
 0x6a1   : > { %3354 = vmatpush.msrb.mxu0 %v3328_v46  ;;  %3374 = vmatpush.msrb.mxu1 %v3344_v45 }
 0x6a3   : > { %3355 = vmatpush.msrb.mxu0 %v3327_v25  ;;  %3375 = vmatpush.msrb.mxu1 %v3343_v57 }
 0x6a5   : > { %3356 = vmatpush.msrb.mxu0 %v3326_v47  ;;  %3376 = vmatpush.msrb.mxu1 %v3342_v18 }
 0x6a7   : > { %3357 = vmatpush.msrb.mxu0 %v3325_v2  ;;  %3377 = vmatpush.msrb.mxu1 %v3341_v29 }
 0x6a9   : > { %3358 = vmatpush.msrb.mxu0 %v3324_v39  ;;  %3378 = vmatpush.msrb.mxu1 %v3340_v13 }
 0x6ab   : > { %3359 = vmatpush.msrb.mxu0 %v3323_v40  ;;  %3379 = vmatpush.msrb.mxu1 %v3339_v59 }
 0x6ac   : > { %v2928_v50 = vpop.f32.mrf.mxu0  ;;  %v2948_v61 = vpop.f32.mrf.mxu1 }
 0x6ad   : > { %3360 = vmatpush.msrb.mxu0 %v3322_v42  ;;  %v2929_v53 = vadd.f32 %v2928_v50, %v2907_v43  ;;  %3380 = vmatpush.msrb.mxu1 %v3338_v44 }
 0x6af   : > { %3361 = vmatpush.msrb.mxu0 %v3321_v58  ;;  %v2949_v8 = vadd.f32 %v2948_v61, %v2929_v53  ;;  %3381 = vmatpush.msrb.mxu1 %v3337_v52  ;;  %v3391_v61 = vld [vmem:[%s6529_s11] sm:$0xff] }
 0x6b1   : > { %3362 = vmatpush.msrb.mxu0 %v3320_v60  ;;  %3382 = vmatpush.msrb.mxu1 %v3336_v9  ;;  %v3394_v60 = vld [vmem:[%s6529_s11 + $0x18] sm:$0xff] }
 0x6b2   : > { %3412 = vmatpush.msrb.mxu2 %v3394_v60 }
 0x6b3   : > { %v2968_v55 = vpop.f32.mrf.mxu2  ;;  %3363 = vmatpush.msrb.mxu0 %v3319_v62  ;;  %v2988_v11 = vpop.f32.mrf.mxu3  ;;  %3383 = vmatpush.msrb.mxu1 %v3335_v10  ;;  %v3393_v62 = vld [vmem:[%s6529_s11 + $0x10] sm:$0xff] }
 0x6b4   : > { %v2969_v32 = vadd.f32 %v2968_v55, %v2949_v8  ;;  %3413 = vmatpush.msrb.mxu2 %v3393_v62  ;;  %v3424_v55 = vld [vmem:[%s6531_s13 + $0x18] sm:$0xff]  ;;  %v3423_v8 = vld [vmem:[%s6531_s13 + $0x10] sm:$0xff] }
 0x6b5   : > { %3364 = vmatpush.msrb.mxu0 %v3318_v28  ;;  %3384 = vmatpush.msrb.mxu1 %v3334_v48  ;;  %v3392_v28 = vld [vmem:[%s6529_s11 + $0x8] sm:$0xff] }
 0x6b6   : > { %v2989_v5 = vadd.f32 %v2988_v11, %v2969_v32  ;;  %v3008_v1 = vpop.f32.mrf.mxu0  ;;  %v3028_v3 = vpop.f32.mrf.mxu1  ;;  %3414 = vmatpush.msrb.mxu2 %v3392_v28  ;;  %3441 = vmatpush.msrb.mxu3 %v3424_v55 }
 0x6b7   : > { %3365 = vmatpush.msrb.mxu0 %v3317_v19  ;;  %3385 = vmatpush.msrb.mxu1 %v3333_v16  ;;  %v3349_v19 = vld [vmem:[%s6528_s10] sm:$0x1] }
 0x6b8   : > { %v3009_v35 = vadd.f32 %v3008_v1, %v2989_v5  ;;  %3415 = vmatpush.msrb.mxu2 %v3391_v61  ;;  %3442 = vmatpush.msrb.mxu3 %v3423_v8 }
 0x6ba   : > { %v3029_v15 = vadd.f32 %v3028_v3, %v3009_v35  ;;  %v3422_v3 = vld [vmem:[%s6531_s13 + $0x8] sm:$0xff] }
 0x6bb   : > { %3443 = vmatpush.msrb.mxu3 %v3422_v3 }
 0x6bd   : > { %v3048_v51 = vpop.f32.mrf.mxu2  ;;  %v3068_v26 = vpop.f32.mrf.mxu3 }
 0x6be   : > { %v3049_v14 = vadd.f32 %v3048_v51, %v3029_v15  ;;  %v3421_v15 = vld [vmem:[%s6531_s13] sm:$0xff] }
 0x6bf   : > { %3444 = vmatpush.msrb.mxu3 %v3421_v15  ;;  %v3395_v51 = vld [vmem:[%s6530_s12] sm:$0x1] }
 0x6c0   : > { %v3069_v23 = vadd.f32 %v3068_v26, %v3049_v14 }
 0x6d3   : > { %v3088_v6 = vpop.f32.mrf.mxu0  ;;  %v3108_v17 = vpop.f32.mrf.mxu1 }
 0x6d4   : > { %v3089_v63 = vadd.f32 %v3088_v6, %v3069_v23  ;;  %v3425_v6 = vld [vmem:[%s6532_s14] sm:$0x1] }
 0x6d6   : > { %v3109_v49 = vadd.f32 %v3108_v17, %v3089_v63  ;;  %v3128_v12 = vpop.f32.mrf.mxu2  ;;  %v3148_v37 = vpop.f32.mrf.mxu3  ;;  %v3450_v17 = vand.u32 127, %v2442_v24 }
 0x6d7   : > { %v3129_v33 = vadd.f32 %v3128_v12, %v2908_v30 }
 0x6d8   : > { %vm3311_vm5 = vcmp.ge.f32.partialorder %v3109_v49, 0.0  ;;  %v3313_v21 = vmul.f32 0.01, %v3109_v49  ;;  %vm3451_vm8 = vcmp.ge.s32.totalorder %v3450_v17, 3 }
 0x6d9   : > { %v3149_v31 = vadd.f32 %v3148_v37, %v3129_v33 }
 0x6da   : > { %v3315_v56 = vsel %vm3311_vm5, %v3109_v49, %v3313_v21 }
 0x6db   : > { %3366 = vmatmul.f32.vlgmr.msrb.gmra.mxu0 %v3315_v56 }
 0x6f2   : > { %v3168_v27 = vpop.f32.mrf.mxu0  ;;  %v3188_v41 = vpop.f32.mrf.mxu1 }
 0x6f3   : > { %v3169_v36 = vadd.f32 %v3168_v27, %v3149_v31 }
 0x6f5   : > { %v3189_v54 = vadd.f32 %v3188_v41, %v3169_v36 }
 0x6f9   : > { %v3208_v20 = vpop.f32.mrf.mxu2  ;;  %v3228_v46 = vpop.f32.mrf.mxu3 }
 0x6fa   : > { %v3209_v0 = vadd.f32 %v3208_v20, %v3189_v54 }
 0x6fc   : > { %v3229_v25 = vadd.f32 %v3228_v46, %v3209_v0 }
 0x714   : > { %v3248_v47 = vpop.f32.mrf.mxu0  ;;  %v3268_v39 = vpop.f32.mrf.mxu1 }
 0x715   : > { %v3249_v2 = vadd.f32 %v3248_v47, %v3229_v25 }
 0x717   : > { %v3269_v40 = vadd.f32 %v3268_v39, %v3249_v2 }
 0x71b   : > { %v3288_v42 = vpop.f32.mrf.mxu2  ;;  %v3308_v22 = vpop.f32.mrf.mxu3 }
 0x71c   : > { %v3289_v58 = vadd.f32 %v3288_v42, %v3269_v40 }
 0x71e   : > { %v3309_v43 = vadd.f32 %v3308_v22, %v3289_v58 }
 0x720   : > { %vm3312_vm6 = vcmp.ge.f32.partialorder %v3309_v43, 0.0  ;;  %v3314_v50 = vmul.f32 0.01, %v3309_v43 }
 0x722   : > { %v3316_v53 = vsel %vm3312_vm6, %v3309_v43, %v3314_v50 }
 0x723   : > { %3386 = vmatmul.f32.vlgmr.msrb.gmra.mxu1 %v3316_v53 }
 0x758   : > { %v3367_v32 = vpop.f32.mrf.mxu0 }
 0x759   : > { %v3368_v11 = vadd.f32 %v3367_v32, %v3349_v19 }
 0x7a0   : > { %v3387_v5 = vpop.f32.mrf.mxu1 }
 0x7a1   : > { %v3388_v1 = vadd.f32 %v3387_v5, %v3368_v11 }
 0x7a3   : > { %v3390_v35 = vmax.f32 %v3388_v1, 0.0 }
 0x7a5   : > { %3543 = vmatmul.msk.f32.vlgmr.msrb.gmra.mxu2 %vm3396_vm7, %v3390_v35 }
 0x828   : > { %v3417_v14 = vpop.f32.mrf.mxu2 }
 0x829   : > { %v3418_v26 = vadd.f32 %v3417_v14, %v3395_v51 }
 0x82b   : > { %v3420_v23 = vmax.f32 %v3418_v26, 0.0 }
 0x82d   : > { %3544 = vmatmul.msk.f32.vlgmr.msrb.gmra.mxu3 %vm3396_vm7, %v3420_v23 }
 0x8b0   : > { %v3446_v63 = vpop.f32.mrf.mxu3 }
 0x8b1   : > { %v3447_v49 = vadd.f32 %v3446_v63, %v3425_v6 }
 0x8b3   : > { %v3452_v21 = vmax.f32 %v3447_v49, -20.0 }
 0x8b5   : > { %v3453_v56 = vmin.f32 %v3452_v21, 2.0 }
 0x8b7   : > { %v3454_v34 = vsel %vm3451_vm8, %v3453_v56, %v3447_v49 }
 0x8b8   : > { %3456 = vst.msk [vmem:[%s490_s24] sm:$0x1] %vm3455_vm9, %v3454_v34 }
 0x8b9 PF: > { %s25_s18 = sadd.s32 1, %s3600_s18  }
 0x8ba   : > { %p22_p4 = scmp.ge.s32.totalorder %s25_s18, 4  }
 0x8bc   :  { %24 = sbr.rel (!%p22_p4) target bundleno = 1 (0x1), region = 128 }

</bundles_post_ra>
